<compile_context>
chip_gen: v6e
topology: v6e:2x2x1
jax: 0.10.0
libtpu: 0.0.40
codegen_flags: <defaults>
</compile_context>

<pallas_src>
import jax
import jax.numpy as jnp
from jax import lax
from jax.experimental import pallas as pl
from jax.experimental.pallas import tpu as pltpu

MEM_SIZE = 128   # memory slots
H = 128          # hidden width (lane-dense: multiple of 128)
TS_DIM = 32      # time-embedding dim (Q_linear input features)
B = 256          # number of query timestamps
TILE_B = 128     # batch rows per grid step


def _memorynet_read_kernel(ts_ref, freq_ref, mem_ref, wq_ref, wk_ref, o_ref):
    # ts_ref:   (TILE_B, 1)   streamed per grid step
    # freq_ref: (1, TS_DIM)   resident
    # mem_ref:  (MEM_SIZE, H) resident
    # wq_ref:   (TS_DIM, H)   resident
    # wk_ref:   (H, H)        resident
    # o_ref:    (TILE_B, H)
    t_emb = jnp.sin(ts_ref[...] * freq_ref[...])                     # (TB, ts_dim)

    q = jnp.dot(t_emb, wq_ref[...],
                preferred_element_type=jnp.float32)                  # (TB, H)
    k = jnp.dot(mem_ref[...], wk_ref[...],
                preferred_element_type=jnp.float32)                  # (M, H)

    # q @ k.T / sqrt(h)  (contract both on their last dim — no explicit transpose)
    scale = 1.0 / jnp.sqrt(jnp.float32(k.shape[-1]))
    logits = lax.dot_general(q, k, (((1,), (1,)), ((), ())),
                             preferred_element_type=jnp.float32) * scale  # (TB, M)

    m = jnp.max(logits, axis=-1, keepdims=True)
    p = jnp.exp(logits - m)
    w = p / jnp.sum(p, axis=-1, keepdims=True)                       # softmax rows

    read = jnp.dot(w, mem_ref[...], preferred_element_type=jnp.float32)
    o_ref[...] = read.astype(o_ref.dtype)


def memorynet_forward(ts, memory, wq, wk, freqs, *, tile_b=TILE_B):
    """MemoryNet.forward: ts (B,), memory (M, H), Wq (ts_dim, H), Wk (H, H)."""
    bn = ts.shape[0]
    assert bn % tile_b == 0, "batch must be a multiple of the batch tile"
    m, h = memory.shape
    ts_dim = wq.shape[0]

    ts2d = ts.reshape(bn, 1).astype(jnp.float32)
    fr2d = freqs.reshape(1, ts_dim).astype(jnp.float32)

    return pl.pallas_call(
        _memorynet_read_kernel,
        out_shape=jax.ShapeDtypeStruct((bn, h), jnp.float32),
        grid_spec=pltpu.PrefetchScalarGridSpec(
            num_scalar_prefetch=0,
            grid=(bn // tile_b,),
            in_specs=[
                pl.BlockSpec((tile_b, 1), lambda i: (i, 0)),    # ts: streams
                pl.BlockSpec((1, ts_dim), lambda i: (0, 0)),    # freqs: resident
                pl.BlockSpec((m, h), lambda i: (0, 0)),         # memory: resident
                pl.BlockSpec((ts_dim, h), lambda i: (0, 0)),    # Wq: resident
                pl.BlockSpec((h, h), lambda i: (0, 0)),         # Wk: resident
            ],
            out_specs=pl.BlockSpec((tile_b, h), lambda i: (i, 0)),
        ),
        compiler_params=pltpu.CompilerParams(
            dimension_semantics=("parallel",)),
    )(ts2d, fr2d, memory, wq, wk)


def memorynet_forward_ref(ts, memory, wq, wk, freqs):
    """Pure-JAX reference mirroring the PyTorch module's forward()."""
    t_emb = jnp.sin(ts[:, None] * freqs[None, :])
    q = t_emb @ wq
    k = memory @ wk
    logits = (q @ k.T) / jnp.sqrt(jnp.float32(k.shape[-1]))
    w = jax.nn.softmax(logits, axis=1)
    return w @ memory


def make_params(key, mem_size=MEM_SIZE, h=H, ts_dim=TS_DIM):
    k_mem, k_wq, k_wk = jax.random.split(key, 3)
    # self.reset(): memory ~ randn(mem_size, h)
    memory = jax.random.normal(k_mem, (mem_size, h), jnp.float32)
    # nn.Linear default init (kaiming-uniform-ish bounds), stored as (in, out)
    lim_q = 1.0 / jnp.sqrt(jnp.float32(ts_dim))
    lim_k = 1.0 / jnp.sqrt(jnp.float32(h))
    wq = jax.random.uniform(k_wq, (ts_dim, h), jnp.float32, -lim_q, lim_q)
    wk = jax.random.uniform(k_wk, (h, h), jnp.float32, -lim_k, lim_k)
    # deterministic sinusoidal time-encoder frequencies
    freqs = jnp.exp(jnp.linspace(0.0, 4.0, ts_dim)).astype(jnp.float32)
    return memory, wq, wk, freqs


if __name__ == "__main__":
    key = jax.random.PRNGKey(0)
    k_params, k_ts = jax.random.split(key, 2)

    memory, wq, wk, freqs = make_params(k_params)
    ts = jax.random.uniform(k_ts, (B,), jnp.float32, 0.0, 1.0)

    out = memorynet_forward(ts, memory, wq, wk, freqs)
    out = jax.block_until_ready(out)

    ref = memorynet_forward_ref(ts, memory, wq, wk, freqs)
    assert out.shape == (B, H)
    max_err = jnp.max(jnp.abs(out - ref))
    assert jnp.allclose(out, ref, atol=1e-4, rtol=1e-4), (
        f"max abs err = {max_err}")

    print("KERNEL_OK")
</pallas_src>

<mosaic_0001>
module attributes {stable_mosaic.version = 11 : i64} {
  func.func @_memorynet_read_kernel(%arg0: i32, %arg1: memref<128x1xf32, #tpu.memory_space<vmem>>, %arg2: memref<1x32xf32, #tpu.memory_space<vmem>>, %arg3: memref<128x128xf32, #tpu.memory_space<vmem>>, %arg4: memref<32x128xf32, #tpu.memory_space<vmem>>, %arg5: memref<128x128xf32, #tpu.memory_space<vmem>>, %arg6: memref<128x128xf32, #tpu.memory_space<vmem>>) attributes {dimension_semantics = [#tpu.dimension_semantics<parallel>], iteration_bounds = array<i64: 2>, scalar_prefetch = 0 : i64, scratch_operands = 0 : i64, tpu.core_type = #tpu.core_type<tc>, window_params = [{transform_indices = @transform_0, window_bounds = array<i64: 128, 1>}, {pipeline_mode = #tpu.pipeline_mode<synchronous>, transform_indices = @transform_1, window_bounds = array<i64: 1, 32>}, {pipeline_mode = #tpu.pipeline_mode<synchronous>, transform_indices = @transform_2, window_bounds = array<i64: 128, 128>}, {pipeline_mode = #tpu.pipeline_mode<synchronous>, transform_indices = @transform_3, window_bounds = array<i64: 32, 128>}, {pipeline_mode = #tpu.pipeline_mode<synchronous>, transform_indices = @transform_4, window_bounds = array<i64: 128, 128>}, {transform_indices = @transform_5, window_bounds = array<i64: 128, 128>}]} {
    %c0 = arith.constant 0 : index
    %c0_0 = arith.constant 0 : index
    %0 = vector.load %arg1[%c0, %c0_0] : memref<128x1xf32, #tpu.memory_space<vmem>>, vector<128x1xf32>
    %c0_1 = arith.constant 0 : index
    %c0_2 = arith.constant 0 : index
    %1 = vector.load %arg2[%c0_1, %c0_2] : memref<1x32xf32, #tpu.memory_space<vmem>>, vector<1x32xf32>
    %2 = vector.broadcast %0 : vector<128x1xf32> to vector<128x32xf32>
    %3 = vector.broadcast %1 : vector<1x32xf32> to vector<128x32xf32>
    %4 = arith.mulf %2, %3 : vector<128x32xf32>
    %5 = math.sin %4 : vector<128x32xf32>
    %c0_3 = arith.constant 0 : index
    %c0_4 = arith.constant 0 : index
    %6 = vector.load %arg4[%c0_3, %c0_4] : memref<32x128xf32, #tpu.memory_space<vmem>>, vector<32x128xf32>
    %cst = arith.constant dense<0.000000e+00> : vector<128x128xf32>
    %7 = tpu.matmul %5, %6, %cst {dimension_numbers = #tpu.dot_dimension_numbers<[1], [0], [0], [1], [0, 0, 1, 1], [], []>} : vector<128x32xf32>, vector<32x128xf32>, vector<128x128xf32> -> vector<128x128xf32>
    %c0_5 = arith.constant 0 : index
    %c0_6 = arith.constant 0 : index
    %8 = vector.load %arg3[%c0_5, %c0_6] : memref<128x128xf32, #tpu.memory_space<vmem>>, vector<128x128xf32>
    %c0_7 = arith.constant 0 : index
    %c0_8 = arith.constant 0 : index
    %9 = vector.load %arg5[%c0_7, %c0_8] : memref<128x128xf32, #tpu.memory_space<vmem>>, vector<128x128xf32>
    %cst_9 = arith.constant dense<0.000000e+00> : vector<128x128xf32>
    %10 = tpu.matmul %8, %9, %cst_9 {dimension_numbers = #tpu.dot_dimension_numbers<[1], [0], [0], [1], [0, 0, 1, 1], [], []>} : vector<128x128xf32>, vector<128x128xf32>, vector<128x128xf32> -> vector<128x128xf32>
    %cst_10 = arith.constant 1.280000e+02 : f32
    %11 = math.sqrt %cst_10 : f32
    %cst_11 = arith.constant 1.000000e+00 : f32
    %12 = arith.divf %cst_11, %11 : f32
    %cst_12 = arith.constant dense<0.000000e+00> : vector<128x128xf32>
    %13 = tpu.matmul %7, %10, %cst_12 {dimension_numbers = #tpu.dot_dimension_numbers<[1], [1], [0], [0], [0, 0, 1, 0], [], []>} : vector<128x128xf32>, vector<128x128xf32>, vector<128x128xf32> -> vector<128x128xf32>
    %14 = vector.broadcast %12 : f32 to vector<128x128xf32>
    %15 = arith.mulf %13, %14 : vector<128x128xf32>
    %cst_13 = arith.constant dense<0xFF800000> : vector<128xf32>
    %16 = vector.multi_reduction <maximumf>, %15, %cst_13 [1] : vector<128x128xf32> to vector<128xf32>
    %17 = vector.shape_cast %16 : vector<128xf32> to vector<128x1xf32>
    %18 = vector.broadcast %17 : vector<128x1xf32> to vector<128x128xf32>
    %19 = arith.subf %15, %18 : vector<128x128xf32>
    %20 = math.exp %19 : vector<128x128xf32>
    %cst_14 = arith.constant dense<0.000000e+00> : vector<128xf32>
    %21 = vector.multi_reduction <add>, %20, %cst_14 [1] : vector<128x128xf32> to vector<128xf32>
    %22 = vector.shape_cast %21 : vector<128xf32> to vector<128x1xf32>
    %23 = vector.broadcast %22 : vector<128x1xf32> to vector<128x128xf32>
    %24 = arith.divf %20, %23 : vector<128x128xf32>
    %c0_15 = arith.constant 0 : index
    %c0_16 = arith.constant 0 : index
    %25 = vector.load %arg3[%c0_15, %c0_16] : memref<128x128xf32, #tpu.memory_space<vmem>>, vector<128x128xf32>
    %cst_17 = arith.constant dense<0.000000e+00> : vector<128x128xf32>
    %26 = tpu.matmul %24, %25, %cst_17 {dimension_numbers = #tpu.dot_dimension_numbers<[1], [0], [0], [1], [0, 0, 1, 1], [], []>} : vector<128x128xf32>, vector<128x128xf32>, vector<128x128xf32> -> vector<128x128xf32>
    %c0_18 = arith.constant 0 : index
    %c0_19 = arith.constant 0 : index
    %27 = vector.load %arg6[%c0_18, %c0_19] : memref<128x128xf32, #tpu.memory_space<vmem>>, vector<128x128xf32>
    tpu.vector_store %arg6[%c0_18, %c0_19], %26 {strides = array<i32>} : memref<128x128xf32, #tpu.memory_space<vmem>>, vector<128x128xf32>,
    return
  }
  func.func @transform_0(%arg0: i32) -> (i32, i32) {
    %c0_i32 = arith.constant 0 : i32
    %c0_i32_0 = arith.constant 0 : i32
    return %arg0, %c0_i32 : i32, i32
  }
  func.func @transform_1(%arg0: i32) -> (i32, i32) {
    %c0_i32 = arith.constant 0 : i32
    %c0_i32_0 = arith.constant 0 : i32
    %c0_i32_1 = arith.constant 0 : i32
    return %c0_i32, %c0_i32_0 : i32, i32
  }
  func.func @transform_2(%arg0: i32) -> (i32, i32) {
    %c0_i32 = arith.constant 0 : i32
    %c0_i32_0 = arith.constant 0 : i32
    %c0_i32_1 = arith.constant 0 : i32
    return %c0_i32, %c0_i32_0 : i32, i32
  }
  func.func @transform_3(%arg0: i32) -> (i32, i32) {
    %c0_i32 = arith.constant 0 : i32
    %c0_i32_0 = arith.constant 0 : i32
    %c0_i32_1 = arith.constant 0 : i32
    return %c0_i32, %c0_i32_0 : i32, i32
  }
  func.func @transform_4(%arg0: i32) -> (i32, i32) {
    %c0_i32 = arith.constant 0 : i32
    %c0_i32_0 = arith.constant 0 : i32
    %c0_i32_1 = arith.constant 0 : i32
    return %c0_i32, %c0_i32_0 : i32, i32
  }
  func.func @transform_5(%arg0: i32) -> (i32, i32) {
    %c0_i32 = arith.constant 0 : i32
    %c0_i32_0 = arith.constant 0 : i32
    return %arg0, %c0_i32 : i32, i32
  }
}

</mosaic_0001>

<bundles_post_ra>
// kernel: tpu_custom_call.1
= control target key start
LH: loop header
LB: loop body
LE: loop exit
PB: predicated region body
PF: predicated region fallthrough
CT: control target
= control target key end

     0   :  { %10 = vsyncpa [#allocation3], 0  ;;  %s5812_s0 = inlined_call_operand.vmem [shape: f32[256,1], index: 0, kind: input, shape index: {}]   ;;  %s5813_s1 = inlined_call_operand.vmem [shape: f32[1,32], index: 1, kind: input, shape index: {}]   ;;  %s5814_s2 = inlined_call_operand.vmem [shape: f32[128,128], index: 2, kind: input, shape index: {}]   ;;  %s5815_s3 = inlined_call_operand.hbm [shape: f32[32,128], index: 3, kind: input, shape index: {}]   ;;  %s5816_s4 = inlined_call_operand.vmem [shape: f32[128,128], index: 4, kind: input, shape index: {}]   ;;  %s5817_s5 = inlined_call_operand.hbm [shape: f32[256,128], index: 5, kind: output, shape index: {}]  }
   0x1   :  { %11 = vsyncpa [#allocation4], 0 }
   0x2   :  { %13 = vsyncpa [#allocation4 + $0x1], 0  ;;  %s3757_s18 = smov 0   ;;  %s3759_s19 = smov 0  }
   0x3   :  { %s3761_s20 = smov 0   ;;  %s3763_s21 = smov 0  }
   0x4 LB: > { %s3778_s22 = sadd.s32 4294967295, %s3712_s21   ;;  %s2953_s23 = sadd.s32 4294967294, %s3712_s21   ;;  %s3712_s21 = sphi %s3763_s21, %s6174_s21   ;;  %s3708_s20 = sphi %s3761_s20, %s6173_s20   ;;  %s3704_s19 = sphi %s3759_s19, %s6172_s19   ;;  %s3700_s18 = sphi %s3757_s18, %s6171_s18  }
   0x5   : > { %s3782_s24 = sadd.s32 1, %s3712_s21   ;;  %s136_s25 = sadd.s32 1, %s3708_s20 }
   0x6   : > { %s133_s26 = ssub.s32 %s3712_s21, %s3782_s24  ;;  %p146_p0 = scmp.ne.s32.totalorder %s3708_s20, %s3704_s19 }
   0x7   : > { %p134_p1 = scmp.eq.s32.totalorder %s133_s26, 0  ;;  %p147_p2 = scmp.eq.s32.totalorder %s3778_s22, 1 }
   0x8   : > { %p152_p3 = scmp.ne.s32.totalorder %s3704_s19, %s3700_s18  ;;  %p153_p4 = scmp.eq.s32.totalorder %s2953_s23, 1 }
   0x9   : > { %s3793_s27 = scalar_select %p134_p1, %s3708_s20, %s136_s25  }
   0xa   : > { %p3795_p5 = por %p147_p2, %p146_p0  ;;  %p3799_p6 = por %p153_p4, %p152_p3 }
   0xb   : > { %p2954_p7 = scmp.ge.s32.totalorder %s3712_s21, 1  ;;  %p160_p8 = scmp.lt.s32.totalorder %s3712_s21, 3 }
   0xc   : > { %s5939_s29 = scalar_select %p3799_p6, 1, 0 }
   0xd   : > { %p3443_p9 = scmp.eq.s32.totalorder %s3778_s22, 0  ;;  %p3806_p10 = pnand %p2954_p7, %p160_p8 }
   0xe   : > { %s3714_s6 = smov [#allocation2]  }
   0xf   : > { %s178_s7 = sshll.u32 %s3714_s6, 4  ;;  %p3435_p11 = pneg %p3806_p10  ;;  %s179_s7 = int_to_ptr.vmem [resolvable:$true] %s178_s7 }
  0x10   : > { %s3633_s8 = scalar_lea.vmem %s179_s7, 512  ;;  %p3641_p3 = scmp.lt.s32.totalorder %s179_s7, %s179_s7 }
  0x11   : > { %p3436_p12 = pnand %p3443_p9, %p3435_p11  ;;  %p3634_p0 = scmp.ne.s32.totalorder %s179_s7, %s3633_s8 }
  0x12   : > { %p3642_p4 = scmp.lt.s32.totalorder %s3633_s8, %s3633_s8 }
  0x13   : > { %p3624_p13 = pneg %p3436_p12 }
  0x14   : > { %p3643_p6 = por %p3642_p4, %p3641_p3 }
  0x15   : > { %p3636_p1 = pnand %p3634_p0, %p3624_p13 }
  0x17   : > { %p3637_p2 = pneg %p3636_p1 }
  0x19   : > { %p3644_p7 = pnand %p3643_p6, %p3637_p2 }
  0x1b   : > { %3647 = shalt.err (!%p3644_p7)
}
  0x1c   : > { %s3715_s9 = smov 128   ;;  %s3716_s10 = smov 8  }
  0x1d   : > { %3438 = dma.hbm_to_vmem [thread:$0]  (!%p3436_p12), %s5815_s3, 512, %s179_s7, [#allocation3], %s3715_s9, %s3715_s9, %s3716_s10  }
  0x1e   : > { %206 = sbr.rel (%p3806_p10) target bundleno = 1506 (0x5e2), region = 40 }
  0x23   : > { %3691 = dma.done.wait (%p3443_p9), [#allocation3], 512  }
  0x24   : > { %3693 = vsyncadd (%p3443_p9), [#allocation3], 4294966784  ;;  %s2960_s13 = sshll.u32 %s3778_s22, 4  ;;  %v3717_v0 = vmov 0   ;;  %v2253_v3 = vld [vmem:[%s5816_s4 + $0x78] sm:$0xff]  ;;  %v2252_v4 = vld [vmem:[%s5816_s4 + $0x70] sm:$0xff] }
  0x25   : > { %3491 = vset.pattern.permute.xlu1 %v3717_v0  ;;  %3490 = vset.pattern.permute.xlu0 %v3717_v0  ;;  %p235_p6 = scmp.lt.s32.totalorder %s2960_s13, 31  ;;  %v2251_v7 = vld [vmem:[%s5816_s4 + $0x68] sm:$0xff]  ;;  %v2250_v10 = vld [vmem:[%s5816_s4 + $0x60] sm:$0xff]  ;;  %v2249_v11 = vld [vmem:[%s5816_s4 + $0x58] sm:$0xff]  ;;  %s231_s9 = sand.u32 1, %s3704_s19  }
  0x26   : > { %3197 = vmatprep.subr.mxu1 %v2253_v3  ;;  %v3854_v13 = vld [vmem:[%s5814_s2] sm:$0xff]  ;;  %v2248_v15 = vld [vmem:[%s5816_s4 + $0x50] sm:$0xff]  ;;  %v2247_v16 = vld [vmem:[%s5816_s4 + $0x48] sm:$0xff]  ;;  %s2959_s10 = sshll.u32 %s231_s9, 7  ;;  %s3048_s12 = sshll.u32 %s3778_s22, 11 }
  0x27   : > { %s6176_s13 = smov (!%p235_p6, %s2960_s13), 31  ;;  %3198 = vmatpush3.msra.mxu1 %v2253_v3  ;;  %3229 = vmatprep.mubr.f32.mxu1 %v3854_v13  ;;  %v2246_v19 = vld [vmem:[%s5816_s4 + $0x40] sm:$0xff]  ;;  %v2245_v20 = vld [vmem:[%s5816_s4 + $0x38] sm:$0xff]  ;;  %v2244_v23 = vld [vmem:[%s5816_s4 + $0x30] sm:$0xff]  ;;  %s5743_s11 = scalar_lea.vmem [#allocation5], %s2959_s10 }
  0x28   : > { %s2961_s14 = sshll.u32 %s6176_s13, 3  ;;  %3199 = vmatprep.subr.mxu1 %v2252_v4  ;;  %v2243_v24 = vld [vmem:[%s5816_s4 + $0x28] sm:$0xff]  ;;  %v2242_v27 = vld [vmem:[%s5816_s4 + $0x20] sm:$0xff]  ;;  %v2241_v28 = vld [vmem:[%s5816_s4 + $0x18] sm:$0xff]  ;;  %s2879_s13 = sshll.u32 %s5743_s11, 4  ;;  %s5766_s13 = int_to_ptr.vmem [resolvable:$true] %s2879_s13 }
  0x29   : > { %s3827_s17 = scalar_lea.vmem %s5812_s0, %s2961_s14  ;;  %3200 = vmatpush3.msra.mxu1 %v2252_v4  ;;  %v2240_v31 = vld [vmem:[%s5816_s4 + $0x10] sm:$0xff]  ;;  %v2239_v32 = vld [vmem:[%s5816_s4 + $0x8] sm:$0xff]  ;;  %v2238_v33 = vld [vmem:[%s5816_s4] sm:$0xff]  ;;  %s5764_s16 = scalar_lea.hbm %s5817_s5, %s3048_s12 }
  0x2a   : > { %v243_v1 = vld [vmem:[%s3827_s17 + $0x10] sm:$0xff]  ;;  %v241_v2 = vld [vmem:[%s3827_s17] sm:$0xff]  ;;  %v244_v5 = vld [vmem:[%s3827_s17 + $0x18] sm:$0xff]  ;;  %3201 = vmatprep.subr.mxu1 %v2251_v7  ;;  %s5772_s23 = scalar_lea.sflag [#allocation4], %s231_s9  ;;  %s3648_s22 = scalar_lea.vmem %s5766_s13, 2048 }
  0x2b   : > { %270 = vperm.xlu1 %3491, %v243_v1   ;;  %260 = vperm.xlu0 %3490, %v241_v2   ;;  %v242_v6 = vld [vmem:[%s3827_s17 + $0x8] sm:$0xff]  ;;  %v245_v9 = vld [vmem:[%s3827_s17 + $0x20] sm:$0xff]  ;;  %v248_v12 = vld [vmem:[%s3827_s17 + $0x38] sm:$0xff]  ;;  %p3649_p8 = scmp.ne.s32.totalorder %s5766_s13, %s3648_s22  ;;  %s3724_s25 = smov [#allocation5]  }
  0x2c   : > { %v246_v8 = vld [vmem:[%s3827_s17 + $0x28] sm:$0xff]  ;;  %3202 = vmatpush3.msra.mxu1 %v2251_v7  ;;  %v247_v14 = vld [vmem:[%s3827_s17 + $0x30] sm:$0xff]  ;;  %v249_v18 = vld [vmem:[%s3827_s17 + $0x40] sm:$0xff]  ;;  %v5835_v7 = vmov 683565275   ;;  %s3652_s26 = sshll.u32 %s3724_s25, 4  ;;  %s3653_s26 = int_to_ptr.vmem [resolvable:$false] %s3652_s26 }
  0x2d   : > { %3203 = vmatprep.subr.mxu1 %v2250_v10  ;;  %v250_v17 = vld [vmem:[%s3827_s17 + $0x48] sm:$0xff]  ;;  %v252_v21 = vld [vmem:[%s3827_s17 + $0x58] sm:$0xff]  ;;  %v251_v22 = vld [vmem:[%s3827_s17 + $0x50] sm:$0xff]  ;;  %p3650_p9 = pnand %p3649_p8, %p3795_p5  ;;  %s3654_s30 = scalar_lea.vmem %s3653_s26, 4096 }
  0x2e   : > { %3204 = vmatpush3.msra.mxu1 %v2250_v10  ;;  %v254_v25 = vld [vmem:[%s3827_s17 + $0x68] sm:$0xff]  ;;  %v253_v26 = vld [vmem:[%s3827_s17 + $0x60] sm:$0xff]  ;;  %v256_v29 = vld [vmem:[%s3827_s17 + $0x78] sm:$0xff]  ;;  %p3655_p11 = scmp.lt.s32.totalorder %s5766_s13, %s3653_s26  ;;  %p3656_p12 = scmp.lt.s32.totalorder %s3654_s30, %s3648_s22 }
  0x2f   : > { %275 = vperm.xlu1 %3491, %v244_v5   ;;  %265 = vperm.xlu0 %3490, %v242_v6   ;;  %v255_v30 = vld [vmem:[%s3827_s17 + $0x70] sm:$0xff]  ;;  %v2223_v34 = vld [vmem:[%s5814_s2 + $0x8] sm:$0xff]  ;;  %v2237_v36 = vld [vmem:[%s5814_s2 + $0x78] sm:$0xff]  ;;  %p3651_p10 = pneg %p3650_p9 }
  0x30   : > { %3205 = vmatprep.subr.mxu1 %v2249_v11  ;;  %v2224_v35 = vld [vmem:[%s5814_s2 + $0x10] sm:$0xff]  ;;  %v2225_v37 = vld [vmem:[%s5814_s2 + $0x18] sm:$0xff]  ;;  %v2226_v39 = vld [vmem:[%s5814_s2 + $0x20] sm:$0xff]  ;;  %p3657_p13 = por %p3656_p12, %p3655_p11 }
  0x31   : > { %3206 = vmatpush3.msra.mxu1 %v2249_v11  ;;  %v2236_v38 = vld [vmem:[%s5814_s2 + $0x70] sm:$0xff]  ;;  %v2235_v40 = vld [vmem:[%s5814_s2 + $0x68] sm:$0xff]  ;;  %v2234_v42 = vld [vmem:[%s5814_s2 + $0x60] sm:$0xff]  ;;  %v5827_v11 = vmov 2131351028  }
  0x32   : > { %3207 = vmatprep.subr.mxu1 %v2248_v15  ;;  %v2227_v41 = vld [vmem:[%s5814_s2 + $0x28] sm:$0xff]  ;;  %v2228_v43 = vld [vmem:[%s5814_s2 + $0x30] sm:$0xff]  ;;  %v2233_v44 = vld [vmem:[%s5814_s2 + $0x58] sm:$0xff]  ;;  %p3658_p0 = pnand %p3657_p13, %p3651_p10 }
  0x33   : > { %285 = vperm.xlu1 %3491, %v246_v8   ;;  %280 = vperm.xlu0 %3490, %v245_v9   ;;  %v2229_v45 = vld [vmem:[%s5814_s2 + $0x38] sm:$0xff]  ;;  %v2232_v46 = vld [vmem:[%s5814_s2 + $0x50] sm:$0xff]  ;;  %v2230_v47 = vld [vmem:[%s5814_s2 + $0x40] sm:$0xff]  ;;  %v5830_v9 = vmov 2475754826  }
  0x34   : > { %3208 = vmatpush3.msra.mxu1 %v2248_v15  ;;  %v2231_v48 = vld [vmem:[%s5814_s2 + $0x48] sm:$0xff]  ;;  %v3949_v49 = vld [vmem:[%s5813_s1] ss:$0 sm:$0xff] }
  0x35   : > { %3209 = vmatprep.subr.mxu1 %v2247_v16 }
  0x36   : > { %3210 = vmatpush3.msra.mxu1 %v2247_v16  ;;  %v5837_v16 = vmov 920167782  }
  0x37   : > { %295 = vperm.xlu1 %3491, %v248_v12   ;;  %290 = vperm.xlu0 %3490, %v247_v14   ;;  %v5825_v14 = vmov 2102212464  }
  0x38   : > { %3211 = vmatprep.subr.mxu1 %v2246_v19 }
  0x39   : > { %3212 = vmatpush3.msra.mxu1 %v2246_v19 }
  0x3a   : > { %3213 = vmatprep.subr.mxu1 %v2245_v20 }
  0x3b   : > { %305 = vperm.xlu1 %3491, %v250_v17   ;;  %300 = vperm.xlu0 %3490, %v249_v18  }
  0x3c   : > { %3214 = vmatpush3.msra.mxu1 %v2245_v20 }
  0x3d   : > { %3215 = vmatprep.subr.mxu1 %v2244_v23 }
  0x3e   : > { %3216 = vmatpush3.msra.mxu1 %v2244_v23 }
  0x3f   : > { %315 = vperm.xlu1 %3491, %v252_v21   ;;  %310 = vperm.xlu0 %3490, %v251_v22  }
  0x40   : > { %3217 = vmatprep.subr.mxu1 %v2243_v24 }
  0x41   : > { %3218 = vmatpush3.msra.mxu1 %v2243_v24  ;;  %v5823_v24 = vmov 1326507024  }
  0x42   : > { %3219 = vmatprep.subr.mxu1 %v2242_v27 }
  0x43   : > { %325 = vperm.xlu1 %3491, %v254_v25   ;;  %320 = vperm.xlu0 %3490, %v253_v26  }
  0x44   : > { %3220 = vmatpush3.msra.mxu1 %v2242_v27 }
  0x45   : > { %3221 = vmatprep.subr.mxu1 %v2241_v28 }
  0x46   : > { %3222 = vmatpush3.msra.mxu1 %v2241_v28 }
  0x47   : > { %335 = vperm.xlu1 %3491, %v256_v29   ;;  %330 = vperm.xlu0 %3490, %v255_v30  }
  0x48   : > { %3223 = vmatprep.subr.mxu1 %v2240_v31 }
  0x49   : > { %3224 = vmatpush3.msra.mxu1 %v2240_v31 }
  0x4a   : > { %3225 = vmatprep.subr.mxu1 %v2239_v32 }
  0x4b   : > { %3226 = vmatpush3.msra.mxu1 %v2239_v32 }
  0x4c   : > { %3227 = vmatprep.subr.mxu1 %v2238_v33 }
  0x4d   : > { %3228 = vmatpush3.msra.mxu1 %v2238_v33 }
  0x4e   : > { %3230 = vmatmul.mubr.f32.vlgmr.msra.gmra.mxu1 %v2223_v34  ;;  %3309 = vmatprep.subr.mxu1 %v2237_v36 }
  0x4f   : > { %3232 = vmatprep.mubr.f32.mxu1 %v2224_v35  ;;  %3310 = vmatpush3.msra.mxu1 %v2237_v36 }
  0x50   : > { %3311 = vmatprep.subr.mxu1 %v2236_v38 }
  0x51   : > { %3312 = vmatpush3.msra.mxu1 %v2236_v38 }
  0x52   : > { %3233 = vmatmul.mubr.f32.gmra.mxu1 %v2225_v37  ;;  %3313 = vmatprep.subr.mxu1 %v2235_v40 }
  0x53   : > { %3235 = vmatprep.mubr.f32.mxu1 %v2226_v39  ;;  %3314 = vmatpush3.msra.mxu1 %v2235_v40 }
  0x54   : > { %3315 = vmatprep.subr.mxu1 %v2234_v42 }
  0x55   : > { %3316 = vmatpush3.msra.mxu1 %v2234_v42 }
  0x56   : > { %3236 = vmatmul.mubr.f32.gmra.mxu1 %v2227_v41  ;;  %3317 = vmatprep.subr.mxu1 %v2233_v44 }
  0x57   : > { %3238 = vmatprep.mubr.f32.mxu1 %v2228_v43  ;;  %3318 = vmatpush3.msra.mxu1 %v2233_v44 }
  0x58   : > { %3319 = vmatprep.subr.mxu1 %v2232_v46 }
  0x59   : > { %3320 = vmatpush3.msra.mxu1 %v2232_v46 }
  0x5a   : > { %3239 = vmatmul.mubr.f32.gmra.mxu1 %v2229_v45  ;;  %3321 = vmatprep.subr.mxu1 %v2231_v48 }
  0x5b   : > { %3241 = vmatprep.mubr.f32.mxu1 %v2230_v47  ;;  %3322 = vmatpush3.msra.mxu1 %v2231_v48 }
  0x5c   : > { %3323 = vmatprep.subr.mxu1 %v2230_v47 }
  0x5d   : > { %3324 = vmatpush3.msra.mxu1 %v2230_v47 }
  0x5e   : > { %3242 = vmatmul.mubr.f32.gmra.mxu1 %v2231_v48  ;;  %3325 = vmatprep.subr.mxu1 %v2229_v45 }
  0x5f   : > { %3244 = vmatprep.mubr.f32.mxu1 %v2232_v46  ;;  %3326 = vmatpush3.msra.mxu1 %v2229_v45 }
  0x60   : > { %3327 = vmatprep.subr.mxu1 %v2228_v43 }
  0x61   : > { %3328 = vmatpush3.msra.mxu1 %v2228_v43 }
  0x62   : > { %3245 = vmatmul.mubr.f32.gmra.mxu1 %v2233_v44  ;;  %3329 = vmatprep.subr.mxu1 %v2227_v41 }
  0x63   : > { %3247 = vmatprep.mubr.f32.mxu1 %v2234_v42  ;;  %3330 = vmatpush3.msra.mxu1 %v2227_v41 }
  0x64   : > { %3331 = vmatprep.subr.mxu1 %v2226_v39 }
  0x65   : > { %3332 = vmatpush3.msra.mxu1 %v2226_v39 }
  0x66   : > { %3248 = vmatmul.mubr.f32.gmra.mxu1 %v2235_v40  ;;  %3333 = vmatprep.subr.mxu1 %v2225_v37 }
  0x67   : > { %3250 = vmatprep.mubr.f32.mxu1 %v2236_v38  ;;  %3334 = vmatpush3.msra.mxu1 %v2225_v37 }
  0x68   : > { %3335 = vmatprep.subr.mxu1 %v2224_v35 }
  0x69   : > { %3336 = vmatpush3.msra.mxu1 %v2224_v35 }
  0x6a   : > { %3251 = vmatmul.mubr.f32.gmra.mxu1 %v2237_v36  ;;  %3337 = vmatprep.subr.mxu1 %v2223_v34 }
  0x6b   : > { %3338 = vmatpush3.msra.mxu1 %v2223_v34 }
  0x6c   : > { %3339 = vmatprep.subr.mxu1 %v3854_v13 }
  0x6d   : > { %3340 = vmatpush3.msra.mxu1 %v3854_v13 }
  0xa6   : > { %v271_v50 = vpop.permute.xlu1 %270  ;;  %v3956_v54 = vpop.permute.xlu0 %260 }
  0xa7   : > { %v3952_v51 = vmul.f32 %v3949_v49, %v271_v50 }
  0xa9   : > { %5941 = vst [vmem:[#allocation8_spill] sm:$0xff] %v3952_v51  ;;  %v571_v52 = vand.u32 2139095040, %v3952_v51  ;;  %v5822_v53 = vand.u32 2147483647, %v3952_v51 }
  0xaa   : > { %v276_v55 = vpop.permute.xlu1 %275  ;;  %v266_v63 = vpop.permute.xlu0 %265 }
  0xab   : > { %v572_v56 = vshrl.u32 %v571_v52, 23  ;;  %v3959_v57 = vmul.f32 %v3949_v49, %v276_v55  ;;  %v575_v59 = vand.u32 8388607, %v5822_v53  ;;  %v3965_v3 = vmul.f32 %v3949_v49, %v266_v63 }
  0xad   : > { %5942 = vst [vmem:[#allocation9_spill] sm:$0xff] %v3959_v57  ;;  %v2971_v58 = vadd.s32 4294967169, %v572_v56  ;;  %v675_v60 = vand.u32 2139095040, %v3959_v57  ;;  %v576_v0 = vor.u32 8388608, %v575_v59  ;;  %5943 = vst [vmem:[#allocation10_spill] sm:$0xff] %v3965_v3  ;;  %v467_v22 = vand.u32 2139095040, %v3965_v3 }
  0xae   : > { %v5821_v4 = vand.u32 2147483647, %v3959_v57 }
  0xaf   : > { %v578_v61 = vadd.s32 1, %v2971_v58  ;;  %v676_v62 = vshrl.u32 %v675_v60, 23  ;;  %v616_v18 = vshll.u32 %v576_v0, 8  ;;  %v468_v37 = vshrl.u32 %v467_v22, 23 }
  0xb0   : > { %v679_v26 = vand.u32 8388607, %v5821_v4 }
  0xb1   : > { %vm579_vm0 = vcmp.gt.s32.totalorder %v578_v61, 0  ;;  %v2975_v5 = vadd.s32 4294967169, %v676_v62  ;;  %v2967_v56 = vadd.s32 4294967169, %v468_v37 }
  0xb2   : > { %v580_v1 = vsel %vm579_vm0, %v578_v61, 0  ;;  %v680_v46 = vor.u32 8388608, %v679_v26 }
  0xb3   : > { %v582_v2 = vand.u32 31, %v580_v1  ;;  %v581_v13 = vshrl.u32 %v580_v1, 5  ;;  %v682_v27 = vadd.s32 1, %v2975_v5  ;;  %v474_v5 = vadd.s32 1, %v2967_v56 }
  0xb4   : > { %v3992_v63 = vshll.u32 %v680_v46, 8  ;;  %v286_v46 = vpop.permute.xlu1 %285 }
  0xb5   : > { %v583_v6 = vsub.s32 32, %v582_v2  ;;  %v585_v8 = vshll.u32 %v5835_v7, %v582_v2  ;;  %v588_v10 = vshll.u32 %v5830_v9, %v582_v2  ;;  %v591_v12 = vshll.u32 %v5827_v11, %v582_v2 }
  0xb6   : > { %v594_v15 = vshll.u32 %v5825_v14, %v582_v2  ;;  %v597_v17 = vshll.u32 %v5837_v16, %v582_v2  ;;  %vm600_vm1 = vcmp.lt.s32.totalorder %v581_v13, 1  ;;  %vm603_vm2 = vcmp.lt.s32.totalorder %v581_v13, 4 }
  0xb7   : > { %v586_v19 = vshrl.u32 %v5830_v9, %v583_v6  ;;  %v589_v20 = vshrl.u32 %v5827_v11, %v583_v6  ;;  %v592_v21 = vshrl.u32 %v5825_v14, %v583_v6  ;;  %v595_v23 = vshrl.u32 %v5837_v16, %v583_v6 }
  0xb8   : > { %v598_v25 = vshrl.u32 %v5823_v24, %v583_v6  ;;  %v584_v28 = vshrl.u32 %v5835_v7, %v583_v6  ;;  %vm601_vm3 = vcmp.lt.s32.totalorder %v581_v13, 2  ;;  %vm602_vm4 = vcmp.lt.s32.totalorder %v581_v13, 3 }
  0xb9   : > { %v587_v29 = vor.u32 %v586_v19, %v585_v8  ;;  %v590_v30 = vor.u32 %v589_v20, %v588_v10  ;;  %v593_v31 = vor.u32 %v592_v21, %v591_v12  ;;  %v596_v32 = vor.u32 %v595_v23, %v594_v15 }
  0xba   : > { %v599_v33 = vor.u32 %v598_v25, %v597_v17  ;;  %vm683_vm5 = vcmp.gt.s32.totalorder %v682_v27, 0  ;;  %vm475_vm11 = vcmp.gt.s32.totalorder %v474_v5, 0 }
  0xbb   : > { %v605_v34 = vsel %vm603_vm2, %v593_v31, 2102212464  ;;  %v608_v35 = vsel %vm600_vm1, %v587_v29, %v590_v30  ;;  %v612_v36 = vsel %vm600_vm1, %v590_v30, %v593_v31  ;;  %v609_v38 = vsel %vm603_vm2, %v596_v32, 920167782 }
  0xbc   : > { %v613_v39 = vsel %vm603_vm2, %v599_v33, 1326507024  ;;  %v604_v40 = vsel %vm600_vm1, %v584_v28, %v587_v29  ;;  %v606_v41 = vsel %vm602_vm4, %v590_v30, %v605_v34  ;;  %v610_v42 = vsel %vm602_vm4, %v593_v31, %v609_v38 }
  0xbd   : > { %v614_v43 = vsel %vm602_vm4, %v596_v32, %v613_v39  ;;  %v611_v44 = vsel %vm601_vm3, %v608_v35, %v610_v42  ;;  %v607_v55 = vsel %vm601_vm3, %v604_v40, %v606_v41  ;;  %v684_v58 = vsel %vm683_vm5, %v682_v27, 0 }
  0xbe   : > { %v615_v45 = vsel %vm601_vm3, %v612_v36, %v614_v43  ;;  %v3985_v50 = vmul.u32.u64.low %v616_v18, %v611_v44  ;;  %v3986_v52 = vmul.u32.u64.high %v616_v18, %v611_v44, %v3985_v50  ;;  %v685_v59 = vshrl.u32 %v684_v58, 5 }
  0xbf   : > { %v3982_v47 = vmul.u32.u64.low %v616_v18, %v615_v45  ;;  %v3983_v48 = vmul.u32.u64.high %v616_v18, %v615_v45, %v3982_v47  ;;  %v686_v60 = vand.u32 31, %v684_v58  ;;  %v623_v61 = vmul.u32 %v616_v18, %v607_v55 }
  0xc0   : > { %v626_v62 = vadd.s32 1, %v3986_v52  ;;  %vm704_vm7 = vcmp.lt.s32.totalorder %v685_v59, 1  ;;  %vm705_vm8 = vcmp.lt.s32.totalorder %v685_v59, 2  ;;  %vm706_vm9 = vcmp.lt.s32.totalorder %v685_v59, 3 }
  0xc1   : > { %vm625_vm6 = vc.u32 %v3983_v48, %v3985_v50  ;;  %v687_v0 = vsub.s32 32, %v686_v60  ;;  %v689_v1 = vshll.u32 %v5835_v7, %v686_v60  ;;  %v692_v2 = vshll.u32 %v5830_v9, %v686_v60 }
  0xc2   : > { %v627_v6 = vsel %vm625_vm6, %v626_v62, %v3986_v52  ;;  %v695_v8 = vshll.u32 %v5827_v11, %v686_v60  ;;  %v698_v10 = vshll.u32 %v5825_v14, %v686_v60  ;;  %v701_v12 = vshll.u32 %v5837_v16, %v686_v60 }
  0xc3   : > { %v628_v13 = vadd.s32 %v627_v6, %v623_v61  ;;  %v690_v15 = vshrl.u32 %v5830_v9, %v687_v0  ;;  %v693_v17 = vshrl.u32 %v5827_v11, %v687_v0  ;;  %v688_v18 = vshrl.u32 %v5835_v7, %v687_v0 }
  0xc4   : > { %v696_v19 = vshrl.u32 %v5825_v14, %v687_v0  ;;  %v699_v20 = vshrl.u32 %v5837_v16, %v687_v0  ;;  %v702_v21 = vshrl.u32 %v5823_v24, %v687_v0  ;;  %vm707_vm10 = vcmp.lt.s32.totalorder %v685_v59, 4 }
  0xc5   : > { %v629_v22 = vadd.s32 536870912, %v628_v13  ;;  %v691_v23 = vor.u32 %v690_v15, %v689_v1  ;;  %v694_v25 = vor.u32 %v693_v17, %v692_v2  ;;  %v5820_v41 = vand.u32 2147483647, %v3965_v3 }
  0xc6   : > { %v697_v26 = vor.u32 %v696_v19, %v695_v8  ;;  %v700_v27 = vor.u32 %v699_v20, %v698_v10  ;;  %v703_v28 = vor.u32 %v702_v21, %v701_v12  ;;  %v476_v42 = vsel %vm475_vm11, %v474_v5, 0 }
  0xc7   : > { %v4006_v29 = vshrl.u32 %v629_v22, 30  ;;  %v712_v30 = vsel %vm704_vm7, %v691_v23, %v694_v25  ;;  %v708_v35 = vsel %vm704_vm7, %v688_v18, %v691_v23  ;;  %v478_v56 = vand.u32 31, %v476_v42 }
  0xc8   : > { %v709_v31 = vsel %vm707_vm10, %v697_v26, 2102212464  ;;  %v713_v32 = vsel %vm707_vm10, %v700_v27, 920167782  ;;  %v716_v33 = vsel %vm704_vm7, %v694_v25, %v697_v26  ;;  %v717_v34 = vsel %vm707_vm10, %v703_v28, 1326507024 }
  0xc9   : > { %5944 = vst [vmem:[#allocation11_spill] sm:$0xff] %v4006_v29  ;;  %v710_v36 = vsel %vm706_vm9, %v694_v25, %v709_v31  ;;  %v714_v37 = vsel %vm706_vm9, %v697_v26, %v713_v32  ;;  %v718_v38 = vsel %vm706_vm9, %v700_v27, %v717_v34  ;;  %v631_v43 = vshll.u32 %v4006_v29, 30 }
  0xca   : > { %v715_v39 = vsel %vm705_vm8, %v712_v30, %v714_v37  ;;  %v719_v40 = vsel %vm705_vm8, %v716_v33, %v718_v38  ;;  %v711_v47 = vsel %vm705_vm8, %v708_v35, %v710_v36  ;;  %v4027_v58 = vmul.f32 %v3949_v49, %v3956_v54 }
  0xcb   : > { %v4016_v44 = vmul.u32.u64.low %v3992_v63, %v719_v40  ;;  %v4017_v45 = vmul.u32.u64.high %v3992_v63, %v719_v40, %v4016_v44  ;;  %v4021_v52 = vmul.u32.u64.low %v3992_v63, %v715_v39  ;;  %v4022_v55 = vmul.u32.u64.high %v3992_v63, %v715_v39, %v4021_v52 }
  0xcc   : > { %v471_v60 = vand.u32 8388607, %v5820_v41  ;;  %v479_v61 = vsub.s32 32, %v478_v56  ;;  %v4032_v62 = vmul.f32 %v3949_v49, %v286_v46  ;;  %v4034_v0 = vsub.s32 %v628_v13, %v631_v43 }
  0xcd   : > { %v727_v59 = vmul.u32 %v3992_v63, %v711_v47  ;;  %vm729_vm12 = vc.u32 %v4017_v45, %v4021_v52  ;;  %v4039_v1 = vshrl.u32 %v476_v42, 5  ;;  %v730_v2 = vadd.s32 1, %v4022_v55 }
  0xce   : > { %5945 = vst [vmem:[#allocation12_spill] sm:$0xff] %v4032_v62  ;;  %v481_v54 = vshll.u32 %v5835_v7, %v478_v56  ;;  %v482_v5 = vshrl.u32 %v5830_v9, %v479_v61  ;;  %v485_v6 = vshrl.u32 %v5827_v11, %v479_v61  ;;  %v484_v8 = vshll.u32 %v5830_v9, %v478_v56 }
  0xcf   : > { %v488_v10 = vshrl.u32 %v5825_v14, %v479_v61  ;;  %v490_v12 = vshll.u32 %v5825_v14, %v478_v56  ;;  %v491_v63 = vshrl.u32 %v5837_v16, %v479_v61  ;;  %v731_v13 = vsel %vm729_vm12, %v730_v2, %v4022_v55 }
  0xd0   : > { %v487_v15 = vshll.u32 %v5827_v11, %v478_v56  ;;  %v493_v17 = vshll.u32 %v5837_v16, %v478_v56  ;;  %v494_v18 = vshrl.u32 %v5823_v24, %v479_v61  ;;  %v732_v19 = vadd.s32 %v731_v13, %v727_v59 }
  0xd1   : > { %v483_v20 = vor.u32 %v482_v5, %v481_v54  ;;  %v486_v21 = vor.u32 %v485_v6, %v484_v8  ;;  %v492_v22 = vor.u32 %v491_v63, %v490_v12  ;;  %vm499_vm13 = vcmp.lt.s32.totalorder %v4039_v1, 4 }
  0xd2   : > { %v489_v23 = vor.u32 %v488_v10, %v487_v15  ;;  %v495_v25 = vor.u32 %v494_v18, %v493_v17  ;;  %v733_v26 = vadd.s32 536870912, %v732_v19  ;;  %v472_v27 = vor.u32 8388608, %v471_v60 }
  0xd3   : > { %vm496_vm14 = vcmp.lt.s32.totalorder %v4039_v1, 1  ;;  %v505_v28 = vsel %vm499_vm13, %v492_v22, 920167782  ;;  %v883_v30 = vand.u32 2139095040, %v4032_v62  ;;  %v634_v31 = vsub.s32 0, %v4034_v0 }
  0xd4   : > { %v363_v32 = vand.u32 2139095040, %v4027_v58  ;;  %vm498_vm15 = vcmp.lt.s32.totalorder %v4039_v1, 3  ;;  %v504_v33 = vsel %vm496_vm14, %v483_v20, %v486_v21  ;;  %v508_v35 = vsel %vm496_vm14, %v486_v21, %v489_v23 }
  0xd5   : > { %v506_v34 = vsel %vm498_vm15, %v489_v23, %v505_v28  ;;  %v509_v36 = vsel %vm499_vm13, %v495_v25, 1326507024  ;;  %v4069_v37 = vshrl.u32 %v733_v26, 30  ;;  %vm497_vm0 = vcmp.lt.s32.totalorder %v4039_v1, 2  ;;  %v281_v26 = vpop.permute.xlu0 %280 }
  0xd6   : > { %v507_v38 = vsel %vm497_vm0, %v504_v33, %v506_v34  ;;  %v510_v39 = vsel %vm498_vm15, %v492_v22, %v509_v36  ;;  %v512_v40 = vshll.u32 %v472_v27, 8  ;;  %v884_v42 = vshrl.u32 %v883_v30, 23 }
  0xd7   : > { %5946 = vst [vmem:[#allocation13_spill] sm:$0xff] %v4069_v37  ;;  %v2972_v43 = vmin.u32 %v634_v31, %v4034_v0  ;;  %v364_v44 = vshrl.u32 %v363_v32, 23  ;;  %v511_v46 = vsel %vm497_vm0, %v508_v35, %v510_v39  ;;  %v735_v59 = vshll.u32 %v4069_v37, 30 }
  0xd8   : > { %v4079_v47 = vmul.u32.u64.low %v512_v40, %v511_v46  ;;  %v4080_v55 = vmul.u32.u64.high %v512_v40, %v511_v46, %v4079_v47  ;;  %v4082_v56 = vmul.u32.u64.low %v512_v40, %v507_v38  ;;  %v4083_v60 = vmul.u32.u64.high %v512_v40, %v507_v38, %v4082_v56 }
  0xd9   : > { %v2983_v2 = vadd.s32 4294967169, %v884_v42  ;;  %v2963_v54 = vadd.s32 4294967169, %v364_v44  ;;  %v501_v5 = vsel %vm499_vm13, %v489_v23, 2102212464  ;;  %v636_v8 = vclz %v2972_v43 }
  0xda   : > { %v480_v10 = vshrl.u32 %v5835_v7, %v479_v61  ;;  %v4090_v12 = vsub.s32 %v732_v19, %v735_v59  ;;  %v502_v13 = vsel %vm498_vm15, %v486_v21, %v501_v5  ;;  %v522_v18 = vadd.s32 1, %v4083_v60 }
  0xdb   : > { %v890_v6 = vadd.s32 1, %v2983_v2  ;;  %v370_v17 = vadd.s32 1, %v2963_v54  ;;  %v2973_v22 = vadd.s32 4294967294, %v636_v8  ;;  %vm521_vm2 = vc.u32 %v4080_v55, %v4082_v56 }
  0xdc   : > { %v500_v63 = vsel %vm496_vm14, %v480_v10, %v483_v20  ;;  %v5819_v23 = vand.u32 2147483647, %v4032_v62  ;;  %v738_v19 = vsub.s32 0, %v4090_v12  ;;  %v523_v21 = vsel %vm521_vm2, %v522_v18, %v4083_v60 }
  0xdd   : > { %vm891_vm1 = vcmp.gt.s32.totalorder %v890_v6, 0  ;;  %v503_v25 = vsel %vm497_vm0, %v500_v63, %v502_v13  ;;  %vm371_vm3 = vcmp.gt.s32.totalorder %v370_v17, 0  ;;  %vm2974_vm4 = vcmp.lt.s32.totalorder %v2973_v22, 0 }
  0xde   : > { %v892_v15 = vsel %vm891_vm1, %v890_v6, 0  ;;  %v519_v27 = vmul.u32 %v512_v40, %v503_v25  ;;  %v887_v28 = vand.u32 8388607, %v5819_v23  ;;  %v2976_v31 = vmin.u32 %v738_v19, %v4090_v12 }
  0xdf   : > { %v894_v61 = vand.u32 31, %v892_v15  ;;  %v4111_v1 = vmul.f32 %v3949_v49, %v281_v26  ;;  %v372_v39 = vsel %vm371_vm3, %v370_v17, 0  ;;  %v893_v40 = vshrl.u32 %v892_v15, 5 }
  0xe0   : > { %v4113_v34 = vadd.s32 %v523_v21, %v519_v27  ;;  %v4121_v60 = vsel %vm2974_vm4, 0, %v2973_v22  ;;  %v888_v59 = vor.u32 8388608, %v887_v28  ;;  %v740_v5 = vclz %v2976_v31 }
  0xe1   : > { %v895_v20 = vsub.s32 32, %v894_v61  ;;  %v897_v32 = vshll.u32 %v5835_v7, %v894_v61  ;;  %5947 = vst [vmem:[#allocation14_spill] sm:$0xff] %v4111_v1  ;;  %v900_v35 = vshll.u32 %v5830_v9, %v894_v61  ;;  %v903_v36 = vshll.u32 %v5827_v11, %v894_v61 }
  0xe2   : > { %v906_v46 = vshll.u32 %v5825_v14, %v894_v61  ;;  %v909_v2 = vshll.u32 %v5837_v16, %v894_v61  ;;  %v525_v6 = vadd.s32 536870912, %v4113_v34  ;;  %v779_v10 = vand.u32 2139095040, %v4111_v1 }
  0xe3   : > { %v898_v30 = vshrl.u32 %v5830_v9, %v895_v20  ;;  %v901_v33 = vshrl.u32 %v5827_v11, %v895_v20  ;;  %v904_v38 = vshrl.u32 %v5825_v14, %v895_v20  ;;  %v907_v47 = vshrl.u32 %v5837_v16, %v895_v20 }
  0xe4   : > { %v910_v54 = vshrl.u32 %v5823_v24, %v895_v20  ;;  %v896_v63 = vshrl.u32 %v5835_v7, %v895_v20  ;;  %vm912_vm5 = vcmp.lt.s32.totalorder %v893_v40, 1  ;;  %vm915_vm6 = vcmp.lt.s32.totalorder %v893_v40, 4 }
  0xe5   : > { %v899_v42 = vor.u32 %v898_v30, %v897_v32  ;;  %v902_v43 = vor.u32 %v901_v33, %v900_v35  ;;  %v905_v44 = vor.u32 %v904_v38, %v903_v36  ;;  %v908_v8 = vor.u32 %v907_v47, %v906_v46 }
  0xe6   : > { %v911_v13 = vor.u32 %v910_v54, %v909_v2  ;;  %vm914_vm7 = vcmp.lt.s32.totalorder %v893_v40, 3  ;;  %vm913_vm8 = vcmp.lt.s32.totalorder %v893_v40, 2  ;;  %v928_v19 = vshll.u32 %v888_v59, 8 }
  0xe7   : > { %v917_v15 = vsel %vm915_vm6, %v905_v44, 2102212464  ;;  %v920_v17 = vsel %vm912_vm5, %v899_v42, %v902_v43  ;;  %v921_v18 = vsel %vm915_vm6, %v908_v8, 920167782  ;;  %v924_v61 = vsel %vm912_vm5, %v902_v43, %v905_v44 }
  0xe8   : > { %v922_v22 = vsel %vm914_vm7, %v905_v44, %v921_v18  ;;  %v644_v25 = vsub.s32 4294967266, %v4121_v60  ;;  %v916_v26 = vsel %vm912_vm5, %v896_v63, %v899_v42  ;;  %v925_v27 = vsel %vm915_vm6, %v911_v13, 1326507024  ;;  %v296_v42 = vpop.permute.xlu1 %295 }
  0xe9   : > { %v923_v21 = vsel %vm913_vm8, %v920_v17, %v922_v22  ;;  %v918_v28 = vsel %vm914_vm7, %v902_v43, %v917_v15  ;;  %v926_v30 = vsel %vm914_vm7, %v908_v8, %v925_v27  ;;  %v4134_v32 = vand.u32 31, %v372_v39 }
  0xea   : > { %v4130_v20 = vmul.u32.u64.low %v928_v19, %v923_v21  ;;  %v4131_v31 = vmul.u32.u64.high %v928_v19, %v923_v21, %v4130_v20  ;;  %v4136_v33 = vshrl.u32 %v525_v6, 30  ;;  %v927_v35 = vsel %vm913_vm8, %v924_v61, %v926_v30 }
  0xeb   : > { %v780_v36 = vshrl.u32 %v779_v10, 23  ;;  %v2977_v38 = vadd.s32 4294967294, %v740_v5  ;;  %v4139_v44 = vmul.u32.u64.low %v928_v19, %v927_v35  ;;  %v4140_v46 = vmul.u32.u64.high %v928_v19, %v927_v35, %v4139_v44 }
  0xec   : > { %5948 = vst [vmem:[#allocation15_spill] sm:$0xff] %v4136_v33  ;;  %v640_v47 = vsub.s32 32, %v4121_v60  ;;  %v645_v43 = vadd.s32 127, %v644_v25  ;;  %v919_v59 = vsel %vm913_vm8, %v916_v26, %v918_v28  ;;  %v4144_v54 = vshrl.u32 %v372_v39, 5 }
  0xed   : > { %v2979_v2 = vadd.s32 4294967169, %v780_v36  ;;  %v938_v8 = vadd.s32 1, %v4131_v31  ;;  %v624_v6 = vadd.s32 %v3985_v50, %v3983_v48  ;;  %v4150_v10 = vsub.s32 32, %v4134_v32 }
  0xee   : > { %v527_v5 = vshll.u32 %v4136_v33, 30  ;;  %v4154_v63 = vmul.f32 %v3949_v49, %v296_v42  ;;  %vm2978_vm9 = vcmp.lt.s32.totalorder %v2977_v38, 0  ;;  %v935_v13 = vmul.u32 %v928_v19, %v919_v59 }
  0xef   : > { %vm937_vm10 = vc.u32 %v4140_v46, %v4130_v20  ;;  %v786_v39 = vadd.s32 1, %v2979_v2  ;;  %v642_v40 = vshrl.u32 %v624_v6, %v640_v47  ;;  %v646_v15 = vshll.u32 %v645_v43, 23 }
  0xf0   : > { %5949 = vst [vmem:[#allocation16_spill] sm:$0xff] %v4154_v63  ;;  %v4160_v17 = vshll.u32 %v5825_v14, %v4134_v32  ;;  %v939_v48 = vsel %vm937_vm10, %v938_v8, %v4131_v31  ;;  %v641_v50 = vshll.u32 %v4034_v0, %v4121_v60  ;;  %v5818_v22 = vand.u32 2147483647, %v4111_v1 }
  0xf1   : > { %v940_v18 = vadd.s32 %v939_v48, %v935_v13  ;;  %vm787_vm11 = vcmp.gt.s32.totalorder %v786_v39, 0  ;;  %v4166_v61 = vsel %vm2978_vm9, 0, %v2977_v38  ;;  %v4169_v19 = vsub.s32 %v4113_v34, %v527_v5 }
  0xf2   : > { %v788_v25 = vsel %vm787_vm11, %v786_v39, 0  ;;  %v1091_v26 = vand.u32 2139095040, %v4154_v63  ;;  %v387_v21 = vshrl.u32 %v5837_v16, %v4150_v10  ;;  %v4176_v27 = vshll.u32 %v5837_v16, %v4134_v32 }
  0xf3   : > { %v941_v0 = vadd.s32 536870912, %v940_v18  ;;  %v790_v60 = vand.u32 31, %v788_v25  ;;  %v4178_v28 = vor.u32 %v642_v40, %v641_v50  ;;  %v4180_v30 = vor.u32 4788187, %v646_v15 }
  0xf4   : > { %v4184_v34 = vshrl.u32 %v5823_v24, %v4150_v10  ;;  %v728_v31 = vadd.s32 %v4021_v52, %v4017_v45  ;;  %v748_v35 = vsub.s32 4294967266, %v4166_v61  ;;  %v783_v38 = vand.u32 8388607, %v5818_v22 }
  0xf5   : > { %v4189_v36 = vshrl.u32 %v941_v0, 30  ;;  %v791_v44 = vsub.s32 32, %v790_v60  ;;  %v530_v42 = vsub.s32 0, %v4169_v19  ;;  %v789_v47 = vshrl.u32 %v788_v25, 5 }
  0xf6   : > { %v793_v43 = vshll.u32 %v5835_v7, %v790_v60  ;;  %v1092_v59 = vshrl.u32 %v1091_v26, 23  ;;  %v796_v8 = vshll.u32 %v5830_v9, %v790_v60  ;;  %v799_v52 = vshll.u32 %v5827_v11, %v790_v60 }
  0xf7   : > { %5950 = vst [vmem:[#allocation17_spill] sm:$0xff] %v4189_v36  ;;  %v794_v2 = vshrl.u32 %v5830_v9, %v791_v44  ;;  %v797_v45 = vshrl.u32 %v5827_v11, %v791_v44  ;;  %v800_v6 = vshrl.u32 %v5825_v14, %v791_v44  ;;  %v802_v5 = vshll.u32 %v5825_v14, %v790_v60 }
  0xf8   : > { %v803_v13 = vshrl.u32 %v5837_v16, %v791_v44  ;;  %v806_v39 = vshrl.u32 %v5823_v24, %v791_v44  ;;  %v943_v40 = vshll.u32 %v4189_v36, 30  ;;  %v805_v50 = vshll.u32 %v5837_v16, %v790_v60 }
  0xf9   : > { %v795_v15 = vor.u32 %v794_v2, %v793_v43  ;;  %v798_v48 = vor.u32 %v797_v45, %v796_v8  ;;  %v744_v25 = vsub.s32 32, %v4166_v61  ;;  %v784_v26 = vor.u32 8388608, %v783_v38 }
  0xfa   : > { %v801_v0 = vor.u32 %v800_v6, %v799_v52  ;;  %v804_v22 = vor.u32 %v803_v13, %v802_v5  ;;  %v749_v23 = vadd.s32 127, %v748_v35  ;;  %v2968_v41 = vmin.u32 %v530_v42, %v4169_v19 }
  0xfb   : > { %v807_v4 = vor.u32 %v806_v39, %v805_v50  ;;  %vm808_vm12 = vcmp.lt.s32.totalorder %v789_v47, 1  ;;  %v792_v53 = vshrl.u32 %v5835_v7, %v791_v44  ;;  %vm811_vm13 = vcmp.lt.s32.totalorder %v789_v47, 4  ;;  %v291_v50 = vpop.permute.xlu0 %290 }
  0xfc   : > { %v816_v24 = vsel %vm808_vm12, %v795_v15, %v798_v48  ;;  %v2991_v14 = vadd.s32 4294967169, %v1092_v59  ;;  %v4208_v11 = vsub.s32 %v940_v18, %v943_v40  ;;  %vm810_vm14 = vcmp.lt.s32.totalorder %v789_v47, 3 }
  0xfd   : > { %v813_v43 = vsel %vm811_vm13, %v801_v0, 2102212464  ;;  %v817_v60 = vsel %vm811_vm13, %v804_v22, 920167782  ;;  %vm809_vm15 = vcmp.lt.s32.totalorder %v789_v47, 2  ;;  %v820_v38 = vsel %vm808_vm12, %v798_v48, %v801_v0 }
  0xfe   : > { %v818_v2 = vsel %vm810_vm14, %v801_v0, %v817_v60  ;;  %v824_v8 = vshll.u32 %v784_v26, 8  ;;  %v532_v45 = vclz %v2968_v41  ;;  %v812_v35 = vsel %vm808_vm12, %v792_v53, %v795_v15 }
  0xff   : > { %v819_v42 = vsel %vm809_vm15, %v816_v24, %v818_v2  ;;  %v821_v52 = vsel %vm811_vm13, %v807_v4, 1326507024  ;;  %v814_v6 = vsel %vm810_vm14, %v798_v48, %v813_v43  ;;  %v946_v18 = vsub.s32 0, %v4208_v11 }
 0x100   : > { %v822_v5 = vsel %vm810_vm14, %v804_v22, %v821_v52  ;;  %v4211_v44 = vmul.u32.u64.low %v824_v8, %v819_v42  ;;  %v4212_v13 = vmul.u32.u64.high %v824_v8, %v819_v42, %v4211_v44  ;;  %v5829_v39 = vand.u32 2147483647, %v4154_v63 }
 0x101   : > { %v823_v59 = vsel %vm809_vm15, %v820_v38, %v822_v5  ;;  %v1098_v40 = vadd.s32 1, %v2991_v14  ;;  %v648_v41 = vand.u32 2147483647, %v4180_v30  ;;  %v4220_v53 = vor.u32 %v387_v21, %v4160_v17 }
 0x102   : > { %v4222_v4 = vmul.u32.u64.low %v824_v8, %v823_v59  ;;  %v4223_v24 = vmul.u32.u64.high %v824_v8, %v823_v59, %v4222_v4  ;;  %v746_v22 = vshrl.u32 %v728_v31, %v744_v25  ;;  %v750_v15 = vshll.u32 %v749_v23, 23 }
 0x103   : > { %v815_v48 = vsel %vm809_vm15, %v812_v35, %v814_v6  ;;  %vm1099_vm0 = vcmp.gt.s32.totalorder %v1098_v40, 0  ;;  %v2969_v26 = vadd.s32 4294967294, %v532_v45  ;;  %v834_v0 = vadd.s32 1, %v4212_v13 }
 0x104   : > { %v1100_v43 = vsel %vm1099_vm0, %v1098_v40, 0  ;;  %v4228_v14 = vmul.f32 %v3949_v49, %v291_v50  ;;  %v650_v30 = vcvt.s32.f32 %v4178_v28  ;;  %v745_v17 = vshll.u32 %v4090_v12, %v4166_v61 }
 0x105   : > { %v2984_v21 = vmin.u32 %v946_v18, %v4208_v11  ;;  %v1095_v23 = vand.u32 8388607, %v5829_v39  ;;  %v831_v47 = vmul.u32 %v824_v8, %v815_v48  ;;  %vm833_vm1 = vc.u32 %v4223_v24, %v4211_v44 }
 0x106   : > { %v1102_v25 = vand.u32 31, %v1100_v43  ;;  %v4240_v60 = vmul.f32 %v650_v30, %v648_v41  ;;  %v4242_v2 = vor.u32 %v746_v22, %v745_v17  ;;  %v4244_v28 = vor.u32 4788187, %v750_v15 }
 0x107   : > { %v835_v12 = vsel %vm833_vm1, %v834_v0, %v4212_v13  ;;  %vm2970_vm2 = vcmp.lt.s32.totalorder %v2969_v26, 0  ;;  %v987_v45 = vand.u32 2139095040, %v4228_v14  ;;  %v948_v35 = vclz %v2984_v21 }
 0x108   : > { %v836_v61 = vadd.s32 %v835_v12, %v831_v47  ;;  %v1103_v38 = vsub.s32 32, %v1102_v25  ;;  %v1096_v42 = vor.u32 8388608, %v1095_v23  ;;  %v1101_v8 = vshrl.u32 %v1100_v43, 5 }
 0x109   : > { %v1105_v52 = vshll.u32 %v5835_v7, %v1102_v25  ;;  %v1108_v18 = vshll.u32 %v5830_v9, %v1102_v25  ;;  %v5951_v59 = vmov 2131351028   ;;  %v5952_v13 = vmov 2102212464  }
 0x10a   : > { %v837_v6 = vadd.s32 536870912, %v836_v61  ;;  %v1106_v5 = vshrl.u32 %v5830_v9, %v1103_v38  ;;  %v1109_v40 = vshrl.u32 %v5951_v59, %v1103_v38  ;;  %v1111_v50 = vshll.u32 %v5951_v59, %v1102_v25 }
 0x10b   : > { %v1112_v41 = vshrl.u32 %v5952_v13, %v1103_v38  ;;  %v1114_v4 = vshll.u32 %v5952_v13, %v1102_v25  ;;  %v1115_v22 = vshrl.u32 %v5837_v16, %v1103_v38  ;;  %v988_v43 = vshrl.u32 %v987_v45, 23 }
 0x10c   : > { %v4256_v15 = vshrl.u32 %v837_v6, 30  ;;  %v1107_v48 = vor.u32 %v1106_v5, %v1105_v52  ;;  %v1110_v0 = vor.u32 %v1109_v40, %v1108_v18  ;;  %v1117_v21 = vshll.u32 %v5837_v16, %v1102_v25  ;;  %v306_v18 = vpop.permute.xlu1 %305 }
 0x10d   : > { %v1113_v30 = vor.u32 %v1112_v41, %v1111_v50  ;;  %v1116_v17 = vor.u32 %v1115_v22, %v1114_v4  ;;  %v5954_v23 = vmov 1326507024   ;;  %v4261_v12 = vsel %vm2970_vm2, 0, %v2969_v26 }
 0x10e   : > { %5953 = vst [vmem:[#allocation18_spill] sm:$0xff] %v4256_v15  ;;  %v1118_v47 = vshrl.u32 %v5954_v23, %v1103_v38  ;;  %v2985_v39 = vadd.s32 4294967294, %v948_v35  ;;  %vm1120_vm3 = vcmp.lt.s32.totalorder %v1101_v8, 1  ;;  %v1136_v31 = vshll.u32 %v1096_v42, 8 }
 0x10f   : > { %v839_v9 = vshll.u32 %v4256_v15, 30  ;;  %v1104_v6 = vshrl.u32 %v5835_v7, %v1103_v38  ;;  %vm1123_vm4 = vcmp.lt.s32.totalorder %v1101_v8, 4  ;;  %vm1122_vm5 = vcmp.lt.s32.totalorder %v1101_v8, 3 }
 0x110   : > { %v1119_v36 = vor.u32 %v1118_v47, %v1117_v21  ;;  %v1125_v45 = vsel %vm1123_vm4, %v1113_v30, 2102212464  ;;  %v1128_v52 = vsel %vm1120_vm3, %v1107_v48, %v1110_v0  ;;  %v1129_v5 = vsel %vm1123_vm4, %v1116_v17, 920167782 }
 0x111   : > { %vm5925_vm6 = vcmp.lt.s32.totalorder %v3952_v51, 0  ;;  %vm1121_vm7 = vcmp.lt.s32.totalorder %v1101_v8, 2  ;;  %v1130_v25 = vsel %vm1122_vm5, %v1113_v30, %v1129_v5  ;;  %v1132_v26 = vsel %vm1120_vm3, %v1110_v0, %v1113_v30 }
 0x112   : > { %v2987_v35 = vadd.s32 4294967169, %v988_v43  ;;  %vm2986_vm8 = vcmp.lt.s32.totalorder %v2985_v39, 0  ;;  %v1124_v42 = vsel %vm1120_vm3, %v1104_v6, %v1107_v48  ;;  %v1131_v38 = vsel %vm1121_vm7, %v1128_v52, %v1130_v25 }
 0x113   : > { %v1133_v40 = vsel %vm1123_vm4, %v1119_v36, 1326507024  ;;  %v1126_v50 = vsel %vm1122_vm5, %v1110_v0, %v1125_v45  ;;  %v4270_v4 = vmul.u32.u64.low %v1136_v31, %v1131_v38  ;;  %v4271_v22 = vmul.u32.u64.high %v1136_v31, %v1131_v38, %v4270_v4 }
 0x114   : > { %v1134_v41 = vsel %vm1122_vm5, %v1116_v17, %v1133_v40  ;;  %v540_v21 = vsub.s32 4294967266, %v4261_v12  ;;  %v4275_v47 = vsub.s32 %v836_v61, %v839_v9  ;;  %v4279_v43 = vmul.f32 %v3949_v49, %v306_v18 }
 0x115   : > { %v1135_v30 = vsel %vm1121_vm7, %v1132_v26, %v1134_v41  ;;  %v4281_v5 = vsel %vm2986_vm8, 0, %v2985_v39  ;;  %v994_v36 = vadd.s32 1, %v2987_v35  ;;  %v652_v0 = vxor.u32 2147483648, %v4240_v60 }
 0x116   : > { %v4283_v48 = vmul.u32.u64.low %v1136_v31, %v1135_v30  ;;  %v4284_v6 = vmul.u32.u64.high %v1136_v31, %v1135_v30, %v4283_v48  ;;  %v752_v17 = vand.u32 2147483647, %v4244_v28  ;;  %v1127_v45 = vsel %vm1121_vm7, %v1124_v42, %v1126_v50 }
 0x117   : > { %v5834_v9 = vand.u32 2147483647, %v4228_v14  ;;  %v754_v61 = vcvt.s32.f32 %v4242_v2  ;;  %v536_v52 = vsub.s32 32, %v4261_v12  ;;  %v1146_v49 = vadd.s32 1, %v4271_v22 }
 0x118   : > { %vm995_vm9 = vcmp.gt.s32.totalorder %v994_v36, 0  ;;  %v541_v39 = vadd.s32 127, %v540_v21  ;;  %v956_v25 = vsub.s32 4294967266, %v4281_v5  ;;  %v842_v26 = vsub.s32 0, %v4275_v47 }
 0x119   : > { %v996_v35 = vsel %vm995_vm9, %v994_v36, 0  ;;  %v520_v28 = vadd.s32 %v4082_v56, %v4080_v55  ;;  %v1143_v8 = vmul.u32 %v1136_v31, %v1127_v45  ;;  %vm1145_vm10 = vc.u32 %v4284_v6, %v4270_v4 }
 0x11a   : > { %v998_v18 = vand.u32 31, %v996_v35  ;;  %v4302_v2 = vsel %vm5925_vm6, %v652_v0, %v4240_v60  ;;  %v4304_v42 = vmul.f32 %v754_v61, %v752_v17  ;;  %v1147_v38 = vsel %vm1145_vm10, %v1146_v49, %v4271_v22 }
 0x11b   : > { %v991_v40 = vand.u32 8388607, %v5834_v9  ;;  %v537_v55 = vshll.u32 %v4169_v19, %v4261_v12  ;;  %v936_v56 = vadd.s32 %v4130_v20, %v4140_v46  ;;  %v1148_v31 = vadd.s32 %v1147_v38, %v1143_v8 }
 0x11c   : > { %v999_v50 = vsub.s32 32, %v998_v18  ;;  %v538_v41 = vshrl.u32 %v520_v28, %v536_v52  ;;  %v542_v21 = vshll.u32 %v541_v39, 23  ;;  %v4313_v30 = vadd.s32 127, %v956_v25 }
 0x11d   : > { %v2980_v60 = vmin.u32 %v842_v26, %v4275_v47  ;;  %v1149_v48 = vadd.s32 536870912, %v1148_v31  ;;  %v1001_v22 = vshll.u32 %v5835_v7, %v998_v18  ;;  %v5955_v36 = vmov 2475754826  }
 0x11e   : > { %v1002_v0 = vshrl.u32 %v5955_v36, %v999_v50  ;;  %v1005_v17 = vshrl.u32 %v5951_v59, %v999_v50  ;;  %v992_v45 = vor.u32 8388608, %v991_v40  ;;  %v1004_v19 = vshll.u32 %v5955_v36, %v998_v18 }
 0x11f   : > { %v1007_v20 = vshll.u32 %v5951_v59, %v998_v18  ;;  %v1008_v46 = vshrl.u32 %v5952_v13, %v999_v50  ;;  %v4322_v12 = vshrl.u32 %v1149_v48, 30  ;;  %v997_v61 = vshrl.u32 %v996_v35, 5 }
 0x120   : > { %v1003_v52 = vor.u32 %v1002_v0, %v1001_v22  ;;  %v1299_v49 = vand.u32 2139095040, %v4279_v43  ;;  %v1006_v39 = vor.u32 %v1005_v17, %v1004_v19  ;;  %v1010_v26 = vshll.u32 %v5952_v13, %v998_v18 }
 0x121   : > { %5956 = vst [vmem:[#allocation19_spill] sm:$0xff] %v4322_v12  ;;  %v1009_v25 = vor.u32 %v1008_v46, %v1007_v20  ;;  %v1011_v28 = vshrl.u32 %v5837_v16, %v999_v50  ;;  %v539_v8 = vor.u32 %v538_v41, %v537_v55  ;;  %v543_v38 = vor.u32 4788187, %v542_v21 }
 0x122   : > { %v1013_v40 = vshll.u32 %v5837_v16, %v998_v18  ;;  %v1014_v9 = vshrl.u32 %v5954_v23, %v999_v50  ;;  %v952_v7 = vsub.s32 32, %v4281_v5  ;;  %v958_v48 = vshll.u32 %v4313_v30, 23 }
 0x123   : > { %v844_v35 = vclz %v2980_v60  ;;  %v1012_v22 = vor.u32 %v1011_v28, %v1010_v26  ;;  %v5957_v0 = vand.u32 2147483647, %v3952_v51  ;;  %v5958_v17 = vmov 0 }
 0x124   : > { %v1015_v19 = vor.u32 %v1014_v9, %v1013_v40  ;;  %vm1016_vm12 = vcmp.lt.s32.totalorder %v997_v61, 1  ;;  %vm1019_vm13 = vcmp.lt.s32.totalorder %v997_v61, 4  ;;  %v1032_v55 = vshll.u32 %v992_v45, 8 }
 0x125   : > { %vm4333_vm11 = vcmp.le.f32.partialorder %v5957_v0, 0.7853982  ;;  %v1151_v18 = vshll.u32 %v4322_v12, 30  ;;  %v1021_v41 = vsel %vm1019_vm13, %v1009_v25, 2102212464  ;;  %v1024_v21 = vsel %vm1016_vm12, %v1003_v52, %v1006_v39 }
 0x126   : > { %v5959_v17 = vsel %vm4333_vm11, 4294967295, %v5958_v17  ;;  %v1300_v20 = vshrl.u32 %v1299_v49, 23  ;;  %vm5905_vm14 = vcmp.lt.s32.totalorder %v3959_v57, 0  ;;  %v5961_v30 = vmov 683565275  }
 0x127   : > { %5960 = vst [vmem:[#allocation20_spill] sm:$0xff] %v5959_v17  ;;  %v1000_v60 = vshrl.u32 %v5961_v30, %v999_v50  ;;  %vm1018_vm15 = vcmp.lt.s32.totalorder %v997_v61, 3  ;;  %v1025_v46 = vsel %vm1019_vm13, %v1012_v22, 920167782  ;;  %v1028_v26 = vsel %vm1016_vm12, %v1006_v39, %v1009_v25 }
 0x128   : > { %v2981_v28 = vadd.s32 4294967294, %v844_v35  ;;  %vm1017_vm0 = vcmp.lt.s32.totalorder %v997_v61, 2  ;;  %v1026_v9 = vsel %vm1018_vm15, %v1009_v25, %v1025_v46  ;;  %v1029_v40 = vsel %vm1019_vm13, %v1015_v19, 1326507024  ;;  %v301_v35 = vpop.permute.xlu0 %300 }
 0x129   : > { %vm5927_vm1 = vcmp.lt.s32.totalorder %v4144_v54, 4  ;;  %v1020_v45 = vsel %vm1016_vm12, %v1000_v60, %v1003_v52  ;;  %v1022_v0 = vsel %vm1018_vm15, %v1006_v39, %v1021_v41  ;;  %v1027_v16 = vsel %vm1017_vm0, %v1024_v21, %v1026_v9 }
 0x12a   : > { %v1030_v49 = vsel %vm1018_vm15, %v1012_v22, %v1029_v40  ;;  %v4345_v12 = vsub.s32 %v1148_v31, %v1151_v18  ;;  %v4348_v15 = vmul.u32.u64.low %v1032_v55, %v1027_v16  ;;  %v4349_v37 = vmul.u32.u64.high %v1032_v55, %v1027_v16, %v4348_v15 }
 0x12b   : > { %v1031_v50 = vsel %vm1017_vm0, %v1028_v26, %v1030_v49  ;;  %v5962_v25 = vand.u32 2147483647, %v3959_v57  ;;  %v5963_v19 = vmov 0  ;;  %v954_v52 = vshrl.u32 %v936_v56, %v952_v7  ;;  %v4368_v26 = vld [vmem:[%s5813_s1] ss:$0 sm:$0xff] }
 0x12c   : > { %v4358_v39 = vmul.u32.u64.low %v1032_v55, %v1031_v50  ;;  %v4359_v41 = vmul.u32.u64.high %v1032_v55, %v1031_v50, %v4358_v39  ;;  %v2999_v22 = vadd.s32 4294967169, %v1300_v20  ;;  %v756_v31 = vxor.u32 2147483648, %v4304_v42 }
 0x12d   : > { %vm4354_vm2 = vcmp.le.f32.partialorder %v5962_v25, 0.7853982  ;;  %v544_v18 = vand.u32 2147483647, %v543_v38  ;;  %vm2982_vm3 = vcmp.lt.s32.totalorder %v2981_v28, 0  ;;  %v1023_v16 = vsel %vm1017_vm0, %v1020_v45, %v1022_v0 }
 0x12e   : > { %v5964_v19 = vsel %vm4354_vm2, 4294967295, %v5963_v19  ;;  %v953_v21 = vshll.u32 %v4208_v11, %v4281_v5  ;;  %v959_v60 = vor.u32 4788187, %v958_v48  ;;  %v1306_v46 = vadd.s32 1, %v2999_v22 }
 0x12f   : > { %5965 = vst [vmem:[#allocation21_spill] sm:$0xff] %v5964_v19  ;;  %v4371_v7 = vmul.f32 %v4368_v26, %v301_v35  ;;  %v656_v56 = vsel %vm4333_vm11, %v3952_v51, %v4302_v2  ;;  %v546_v61 = vcvt.s32.f32 %v539_v8  ;;  %v1154_v38 = vsub.s32 0, %v4345_v12 }
 0x130   : > { %v1042_v11 = vadd.s32 1, %v4349_v37  ;;  %v955_v5 = vor.u32 %v954_v52, %v953_v21  ;;  %v4379_v48 = vsel %vm2982_vm3, 0, %v2981_v28  ;;  %v1039_v20 = vmul.u32 %v1032_v55, %v1023_v16 }
 0x131   : > { %vm1041_vm4 = vc.u32 %v4359_v41, %v4348_v15  ;;  %v757_v9 = vsel %vm5905_vm14, %v756_v31, %v4304_v42  ;;  %v4386_v40 = vmul.f32 %v546_v61, %v544_v18  ;;  %vm1307_vm5 = vcmp.gt.s32.totalorder %v1306_v46, 0 }
 0x132   : > { %v1043_v2 = vsel %vm1041_vm4, %v1042_v11, %v4349_v37  ;;  %v960_v8 = vand.u32 2147483647, %v959_v60  ;;  %v5845_v0 = vand.u32 2147483647, %v4279_v43  ;;  %v1195_v28 = vand.u32 2139095040, %v4371_v7 }
 0x133   : > { %v1044_v45 = vadd.s32 %v1043_v2, %v1039_v20  ;;  %v4394_v55 = vsel %vm5927_vm1, %v4220_v53, 920167782  ;;  %v852_v49 = vsub.s32 4294967266, %v4379_v48  ;;  %v2992_v42 = vmin.u32 %v1154_v38, %v4345_v12 }
 0x134   : > { %v1308_v50 = vsel %vm1307_vm5, %v1306_v46, 0  ;;  %3492 = vcosq.f32 %v656_v56  ;;  %v5966_v37 = vor.u32 %v4184_v34, %v4176_v27  ;;  %v962_v25 = vcvt.s32.f32 %v955_v5 }
 0x135   : > { %v1045_v52 = vadd.s32 536870912, %v1044_v45  ;;  %3494 = vsinq.f32 %v656_v56  ;;  %v4408_v39 = vsel %vm4354_vm2, %v3959_v57, %v757_v9  ;;  %v1310_v31 = vand.u32 31, %v1308_v50 }
 0x136   : > { %v4403_v35 = vsel %vm5927_vm1, %v5966_v37, 1326507024  ;;  %v4411_v18 = vmul.f32 %v962_v25, %v960_v8  ;;  %v832_v27 = vadd.s32 %v4211_v44, %v4223_v24  ;;  %v1303_v34 = vand.u32 8388607, %v5845_v0 }
 0x137   : > { %v1196_v16 = vshrl.u32 %v1195_v28, 23  ;;  %v848_v21 = vsub.s32 32, %v4379_v48  ;;  %v4418_v60 = vadd.s32 127, %v852_v49  ;;  %v1156_v46 = vclz %v2992_v42 }
 0x138   : > { %v1311_v56 = vsub.s32 32, %v1310_v31  ;;  %v4420_v61 = vshrl.u32 %v1045_v52, 30  ;;  %v1309_v38 = vshrl.u32 %v1308_v50, 5  ;;  %v1313_v11 = vshll.u32 %v5961_v30, %v1310_v31 }
 0x139   : > { %v1316_v5 = vshll.u32 %v5955_v36, %v1310_v31  ;;  %v1319_v24 = vshll.u32 %v5951_v59, %v1310_v31  ;;  %v1322_v2 = vshll.u32 %v5952_v13, %v1310_v31  ;;  %v5968_v8 = vmov 920167782  }
 0x13a   : > { %5967 = vst [vmem:[#allocation22_spill] sm:$0xff] %v4420_v61  ;;  %v1314_v20 = vshrl.u32 %v5955_v36, %v1311_v56  ;;  %v1317_v44 = vshrl.u32 %v5951_v59, %v1311_v56  ;;  %v1320_v9 = vshrl.u32 %v5952_v13, %v1311_v56  ;;  %v1323_v28 = vshrl.u32 %v5968_v8, %v1311_v56 }
 0x13b   : > { %v1325_v49 = vshll.u32 %v5968_v8, %v1310_v31  ;;  %v2995_v42 = vadd.s32 4294967169, %v1196_v16  ;;  %v1326_v52 = vshrl.u32 %v5954_v23, %v1311_v56  ;;  %v850_v0 = vshrl.u32 %v832_v27, %v848_v21 }
 0x13c   : > { %v1315_v50 = vor.u32 %v1314_v20, %v1313_v11  ;;  %v1318_v37 = vor.u32 %v1317_v44, %v1316_v5  ;;  %v1321_v25 = vor.u32 %v1320_v9, %v1319_v24  ;;  %v1047_v22 = vshll.u32 %v4420_v61, 30 }
 0x13d   : > { %v1304_v19 = vor.u32 8388608, %v1303_v34  ;;  %v1324_v57 = vor.u32 %v1323_v28, %v1322_v2  ;;  %vm5926_vm7 = vcmp.lt.s32.totalorder %v3965_v3, 0  ;;  %v854_v17 = vshll.u32 %v4418_v60, 23 }
 0x13e   : > { %v2993_v51 = vadd.s32 4294967294, %v1156_v46  ;;  %v1327_v29 = vor.u32 %v1326_v52, %v1325_v49  ;;  %vm1328_vm8 = vcmp.lt.s32.totalorder %v1309_v38, 1  ;;  %vm1330_vm9 = vcmp.lt.s32.totalorder %v1309_v38, 3 }
 0x13f   : > { %vm1331_vm10 = vcmp.lt.s32.totalorder %v1309_v38, 4  ;;  %v1336_v31 = vsel %vm1328_vm8, %v1315_v50, %v1318_v37  ;;  %v1202_v16 = vadd.s32 1, %v2995_v42  ;;  %v1340_v27 = vsel %vm1328_vm8, %v1318_v37, %v1321_v25 }
 0x140   : > { %v1333_v11 = vsel %vm1331_vm10, %v1321_v25, 2102212464  ;;  %v1337_v5 = vsel %vm1331_vm10, %v1324_v57, 920167782  ;;  %v1341_v21 = vsel %vm1331_vm10, %v1327_v29, 1326507024  ;;  %v4437_v20 = vsub.s32 %v1044_v45, %v1047_v22 }
 0x141   : > { %v1312_v34 = vshrl.u32 %v5961_v30, %v1311_v56  ;;  %vm1329_vm12 = vcmp.lt.s32.totalorder %v1309_v38, 2  ;;  %v1338_v60 = vsel %vm1330_vm9, %v1321_v25, %v1337_v5  ;;  %v4441_v46 = vpop.eup %3492  ;;  %vm2994_vm13 = vcmp.lt.s32.totalorder %v2993_v51, 0 }
 0x142   : > { %5969 = vst [vmem:[#allocation23_spill] sm:$0xff] %v4441_v46  ;;  %v1339_v44 = vsel %vm1329_vm12, %v1336_v31, %v1338_v60  ;;  %v1342_v24 = vsel %vm1330_vm9, %v1324_v57, %v1341_v21  ;;  %v1344_v9 = vshll.u32 %v1304_v19, 8  ;;  %v4445_v2 = vpop.eup %3494  ;;  %v1334_v29 = vsel %vm1330_vm9, %v1318_v37, %v1333_v11 }
 0x143   : > { %5970 = vst [vmem:[#allocation24_spill] sm:$0xff] %v4445_v2  ;;  %v1332_v28 = vsel %vm1328_vm8, %v1312_v34, %v1315_v50  ;;  %v1343_v45 = vsel %vm1329_vm12, %v1340_v27, %v1342_v24  ;;  %vm1203_vm15 = vcmp.gt.s32.totalorder %v1202_v16, 0  ;;  %v5854_v49 = vand.u32 2147483647, %v4371_v7 }
 0x144   : > { %v4450_v22 = vmul.u32.u64.low %v1344_v9, %v1343_v45  ;;  %v4451_v56 = vmul.u32.u64.high %v1344_v9, %v1343_v45, %v4450_v22  ;;  %v1204_v42 = vsel %vm1203_vm15, %v1202_v16, 0  ;;  %v849_v25 = vshll.u32 %v4275_v47, %v4379_v48  ;;  %v316_v45 = vpop.permute.xlu1 %315 }
 0x145   : > { %v1050_v57 = vsub.s32 0, %v4437_v20  ;;  %v4457_v19 = vmul.u32.u64.low %v1344_v9, %v1339_v44  ;;  %v4458_v52 = vmul.u32.u64.high %v1344_v9, %v1339_v44, %v4457_v19  ;;  %3496 = vcosq.f32 %v4408_v39 }
 0x146   : > { %v4463_v50 = vsel %vm2994_vm13, 0, %v2993_v51  ;;  %v1335_v37 = vsel %vm1329_vm12, %v1332_v28, %v1334_v29  ;;  %v1206_v31 = vand.u32 31, %v1204_v42  ;;  %3498 = vsinq.f32 %v4408_v39 }
 0x147   : > { %v5971_v16 = vxor.u32 2147483648, %v4386_v40  ;;  %v4473_v11 = vor.u32 %v850_v0, %v849_v25  ;;  %v4475_v5 = vor.u32 4788187, %v854_v17  ;;  %vm1353_vm0 = vc.u32 %v4451_v56, %v4457_v19 }
 0x148   : > { %v1199_v51 = vand.u32 8388607, %v5854_v49  ;;  %v1207_v38 = vsub.s32 32, %v1206_v31  ;;  %v1164_v39 = vsub.s32 4294967266, %v4463_v50  ;;  %v2988_v27 = vmin.u32 %v1050_v57, %v4437_v20 }
 0x149   : > { %v549_v47 = vsel %vm5926_vm7, %v5971_v16, %v4386_v40  ;;  %v1351_v21 = vmul.u32 %v1344_v9, %v1335_v37  ;;  %v1354_v40 = vadd.s32 1, %v4458_v52  ;;  %v1205_v34 = vshrl.u32 %v1204_v42, 5 }
 0x14a   : > { %v1209_v0 = vshll.u32 %v5961_v30, %v1206_v31  ;;  %v1210_v17 = vshrl.u32 %v5955_v36, %v1207_v38  ;;  %v1213_v60 = vshrl.u32 %v5951_v59, %v1207_v38  ;;  %v1212_v24 = vshll.u32 %v5955_v36, %v1206_v31 }
 0x14b   : > { %v1355_v44 = vsel %vm1353_vm0, %v1354_v40, %v4458_v52  ;;  %v1215_v28 = vshll.u32 %v5951_v59, %v1206_v31  ;;  %v1216_v29 = vshrl.u32 %v5952_v13, %v1207_v38  ;;  %v5972_v9 = vand.u32 2147483647, %v3965_v3 }
 0x14c   : > { %v5973_v22 = vmov 0  ;;  %v1160_v42 = vsub.s32 32, %v4463_v50  ;;  %v1356_v25 = vadd.s32 %v1355_v44, %v1351_v21  ;;  %v1200_v57 = vor.u32 8388608, %v1199_v51 }
 0x14d   : > { %vm4493_vm3 = vcmp.le.f32.partialorder %v5972_v9, 0.7853982  ;;  %v1211_v37 = vor.u32 %v1210_v17, %v1209_v0  ;;  %vm5877_vm4 = vcmp.lt.s32.totalorder %v4032_v62, 0  ;;  %v1214_v52 = vor.u32 %v1213_v60, %v1212_v24 }
 0x14e   : > { %v5974_v22 = vsel %vm4493_vm3, 4294967295, %v5973_v22  ;;  %v1217_v16 = vor.u32 %v1216_v29, %v1215_v28  ;;  %v1218_v40 = vshll.u32 %v5952_v13, %v1206_v31  ;;  %v1219_v49 = vshrl.u32 %v5968_v8, %v1207_v38 }
 0x14f   : > { %5975 = vst [vmem:[#allocation25_spill] sm:$0xff] %v5974_v22  ;;  %v1357_v48 = vadd.s32 536870912, %v1356_v25  ;;  %v1221_v61 = vshll.u32 %v5968_v8, %v1206_v31  ;;  %v1222_v9 = vshrl.u32 %v5954_v23, %v1207_v38  ;;  %v4504_v46 = vmul.f32 %v4368_v26, %v316_v45 }
 0x150   : > { %v1165_v2 = vadd.s32 127, %v1164_v39  ;;  %v1052_v21 = vclz %v2988_v27  ;;  %v1220_v51 = vor.u32 %v1219_v49, %v1218_v40  ;;  %vm1224_vm5 = vcmp.lt.s32.totalorder %v1205_v34, 1 }
 0x151   : > { %v1208_v0 = vshrl.u32 %v5961_v30, %v1207_v38  ;;  %v1223_v17 = vor.u32 %v1222_v9, %v1221_v61  ;;  %vm1226_vm8 = vcmp.lt.s32.totalorder %v1205_v34, 3  ;;  %vm1227_vm9 = vcmp.lt.s32.totalorder %v1205_v34, 4 }
 0x152   : > { %v4507_v60 = vshrl.u32 %v1357_v48, 30  ;;  %v1229_v44 = vsel %vm1227_vm9, %v1217_v16, 2102212464  ;;  %v1232_v24 = vsel %vm1224_vm5, %v1211_v37, %v1214_v52  ;;  %v1233_v31 = vsel %vm1227_vm9, %v1220_v51, 920167782  ;;  %v4512_v27 = vpop.eup %3496 }
 0x153   : > { %vm1225_vm10 = vcmp.lt.s32.totalorder %v1205_v34, 2  ;;  %v1234_v28 = vsel %vm1226_vm8, %v1217_v16, %v1233_v31  ;;  %v1236_v29 = vsel %vm1224_vm5, %v1214_v52, %v1217_v16  ;;  %v1240_v39 = vshll.u32 %v1200_v57, 8  ;;  %5977 = vst [vmem:[#allocation27_spill] sm:$0xff] %v4512_v27  ;;  %v4522_v9 = vpop.eup %3498 }
 0x154   : > { %5976 = vst [vmem:[#allocation26_spill] sm:$0xff] %v4507_v60  ;;  %v5978_v49 = vand.u32 2147483647, %v4032_v62  ;;  %v5979_v61 = vmov 0  ;;  %v2989_v48 = vadd.s32 4294967294, %v1052_v21  ;;  %v1228_v38 = vsel %vm1224_vm5, %v1208_v0, %v1211_v37  ;;  %5982 = vst [vmem:[#allocation29_spill] sm:$0xff] %v4522_v9 }
 0x155   : > { %v1235_v45 = vsel %vm1225_vm10, %v1232_v24, %v1234_v28  ;;  %v1237_v40 = vsel %vm1227_vm9, %v1223_v17, 1326507024  ;;  %v1230_v31 = vsel %vm1226_vm8, %v1214_v52, %v1229_v44  ;;  %v1359_v21 = vshll.u32 %v4507_v60, 30 }
 0x156   : > { %vm4516_vm12 = vcmp.le.f32.partialorder %v5978_v49, 0.7853982  ;;  %v1238_v57 = vsel %vm1226_vm8, %v1220_v51, %v1237_v40  ;;  %v4526_v16 = vmul.u32.u64.low %v1240_v39, %v1235_v45  ;;  %v4527_v27 = vmul.u32.u64.high %v1240_v39, %v1235_v45, %v4526_v16  ;;  %v311_v45 = vpop.permute.xlu0 %310 }
 0x157   : > { %v5980_v61 = vsel %vm4516_vm12, 4294967295, %v5979_v61  ;;  %v552_v49 = vsel %vm4493_vm3, %v3965_v3, %v549_v47  ;;  %v1239_v37 = vsel %vm1225_vm10, %v1236_v29, %v1238_v57  ;;  %v1507_v0 = vand.u32 2139095040, %v4504_v46 }
 0x158   : > { %5981 = vst [vmem:[#allocation28_spill] sm:$0xff] %v5980_v61  ;;  %v5983_v17 = vxor.u32 2147483648, %v4411_v18  ;;  %v1144_v51 = vadd.s32 %v4270_v4, %v4284_v6  ;;  %v4543_v44 = vmul.u32.u64.low %v1240_v39, %v1239_v37  ;;  %v4544_v24 = vmul.u32.u64.high %v1240_v39, %v1239_v37, %v4543_v44 }
 0x159   : > { %v856_v47 = vand.u32 2147483647, %v4475_v5  ;;  %vm2990_vm13 = vcmp.lt.s32.totalorder %v2989_v48, 0  ;;  %v1231_v28 = vsel %vm1225_vm10, %v1228_v38, %v1230_v31  ;;  %v1508_v29 = vshrl.u32 %v1507_v0, 23 }
 0x15a   : > { %v965_v52 = vsel %vm5877_vm4, %v5983_v17, %v4411_v18  ;;  %v858_v40 = vcvt.s32.f32 %v4473_v11  ;;  %v1162_v57 = vshrl.u32 %v1144_v51, %v1160_v42  ;;  %v1166_v60 = vshll.u32 %v1165_v2, 23 }
 0x15b   : > { %v1250_v9 = vadd.s32 1, %v4527_v27  ;;  %v1161_v18 = vshll.u32 %v4345_v12, %v4463_v50  ;;  %v4552_v4 = vsub.s32 %v1356_v25, %v1359_v21  ;;  %v5863_v6 = vand.u32 2147483647, %v4504_v46 }
 0x15c   : > { %v3007_v37 = vadd.s32 4294967169, %v1508_v29  ;;  %v4555_v5 = vsel %vm2990_vm13, 0, %v2989_v48  ;;  %v1247_v34 = vmul.u32 %v1240_v39, %v1231_v28  ;;  %vm1249_vm15 = vc.u32 %v4544_v24, %v4526_v16 }
 0x15d   : > { %v4560_v11 = vmul.f32 %v4368_v26, %v311_v45  ;;  %3500 = vcosq.f32 %v552_v49  ;;  %v4562_v2 = vmul.f32 %v858_v40, %v856_v47  ;;  %v1251_v42 = vsel %vm1249_vm15, %v1250_v9, %v4527_v27 }
 0x15e   : > { %v1514_v12 = vadd.s32 1, %v3007_v37  ;;  %v4568_v50 = vsel %vm4516_vm12, %v4032_v62, %v965_v52  ;;  %v4570_v25 = vor.u32 %v1162_v57, %v1161_v18  ;;  %v4572_v39 = vor.u32 4788187, %v1166_v60 }
 0x15f   : > { %v1252_v48 = vadd.s32 %v1251_v42, %v1247_v34  ;;  %v1056_v38 = vsub.s32 32, %v4555_v5  ;;  %v1362_v31 = vsub.s32 0, %v4552_v4  ;;  %v1511_v21 = vand.u32 8388607, %v5863_v6 }
 0x160   : > { %vm1515_vm0 = vcmp.gt.s32.totalorder %v1514_v12, 0  ;;  %3502 = vsinq.f32 %v552_v49  ;;  %v1403_v0 = vand.u32 2139095040, %v4560_v11  ;;  %v1040_v60 = vadd.s32 %v4348_v15, %v4359_v41 }
 0x161   : > { %v1253_v27 = vadd.s32 536870912, %v1252_v48  ;;  %v1516_v9 = vsel %vm1515_vm0, %v1514_v12, 0  ;;  %3504 = vcosq.f32 %v4568_v50  ;;  %v1060_v47 = vsub.s32 4294967266, %v4555_v5 }
 0x162   : > { %v1518_v52 = vand.u32 31, %v1516_v9  ;;  %v4588_v49 = vshrl.u32 %v1040_v60, %v1056_v38  ;;  %v3000_v29 = vmin.u32 %v1362_v31, %v4552_v4  ;;  %v1512_v45 = vor.u32 8388608, %v1511_v21  ;;  %v326_v38 = vpop.permute.xlu1 %325 }
 0x163   : > { %v4586_v28 = vshrl.u32 %v1253_v27, 30  ;;  %v1404_v41 = vshrl.u32 %v1403_v0, 23  ;;  %v1517_v31 = vshrl.u32 %v1516_v9, 5  ;;  %vm5888_vm5 = vcmp.lt.s32.totalorder %v4111_v1, 0 }
 0x164   : > { %v1519_v40 = vsub.s32 32, %v1518_v52  ;;  %v1521_v18 = vshll.u32 %v5961_v30, %v1518_v52  ;;  %v1524_v15 = vshll.u32 %v5955_v36, %v1518_v52  ;;  %v1527_v42 = vshll.u32 %v5951_v59, %v1518_v52 }
 0x165   : > { %5984 = vst [vmem:[#allocation30_spill] sm:$0xff] %v4586_v28  ;;  %v1255_v57 = vshll.u32 %v4586_v28, 30  ;;  %v1530_v21 = vshll.u32 %v5952_v13, %v1518_v52  ;;  %v4603_v6 = vadd.s32 127, %v1060_v47  ;;  %v1552_v61 = vshll.u32 %v1512_v45, 8 }
 0x166   : > { %v1522_v37 = vshrl.u32 %v5955_v36, %v1519_v40  ;;  %v1525_v34 = vshrl.u32 %v5951_v59, %v1519_v40  ;;  %v1528_v12 = vshrl.u32 %v5952_v13, %v1519_v40  ;;  %v1531_v60 = vshrl.u32 %v5968_v8, %v1519_v40 }
 0x167   : > { %v4598_v27 = vsub.s32 %v1252_v48, %v1255_v57  ;;  %v4607_v62 = vmul.f32 %v4368_v26, %v326_v38  ;;  %v1364_v48 = vclz %v3000_v29  ;;  %v1533_v9 = vshll.u32 %v5968_v8, %v1518_v52 }
 0x168   : > { %v1523_v0 = vor.u32 %v1522_v37, %v1521_v18  ;;  %v1526_v44 = vor.u32 %v1525_v34, %v1524_v15  ;;  %v1529_v51 = vor.u32 %v1528_v12, %v1527_v42  ;;  %v1532_v28 = vor.u32 %v1531_v60, %v1530_v21 }
 0x169   : > { %v1258_v17 = vsub.s32 0, %v4598_v27  ;;  %v1534_v57 = vshrl.u32 %v5954_v23, %v1519_v40  ;;  %v3003_v22 = vadd.s32 4294967169, %v1404_v41  ;;  %vm1536_vm8 = vcmp.lt.s32.totalorder %v1517_v31, 1 }
 0x16a   : > { %v4611_v3 = vpop.eup %3500  ;;  %vm1538_vm9 = vcmp.lt.s32.totalorder %v1517_v31, 3  ;;  %vm1539_vm10 = vcmp.lt.s32.totalorder %v1517_v31, 4  ;;  %v5986_v18 = vand.u32 2147483647, %v4111_v1  ;;  %v5987_v45 = vmov 0 }
 0x16b   : > { %5985 = vst [vmem:[#allocation31_spill] sm:$0xff] %v4611_v3  ;;  %v2996_v47 = vmin.u32 %v1258_v17, %v4598_v27  ;;  %v1535_v15 = vor.u32 %v1534_v57, %v1533_v9  ;;  %v1541_v29 = vsel %vm1539_vm10, %v1529_v51, 2102212464  ;;  %v1544_v52 = vsel %vm1536_vm8, %v1523_v0, %v1526_v44 }
 0x16c   : > { %vm4616_vm13 = vcmp.le.f32.partialorder %v5986_v18, 0.7853982  ;;  %v1545_v37 = vsel %vm1539_vm10, %v1532_v28, 920167782  ;;  %v1520_v41 = vshrl.u32 %v5961_v30, %v1519_v40  ;;  %vm1537_vm15 = vcmp.lt.s32.totalorder %v1517_v31, 2 }
 0x16d   : > { %v5988_v45 = vsel %vm4616_vm13, 4294967295, %v5987_v45  ;;  %v1546_v34 = vsel %vm1538_vm9, %v1529_v51, %v1545_v37  ;;  %v4624_v42 = vpop.eup %3502  ;;  %v3001_v12 = vadd.s32 4294967294, %v1364_v48  ;;  %v1548_v21 = vsel %vm1536_vm8, %v1526_v44, %v1529_v51 }
 0x16e   : > { %5989 = vst [vmem:[#allocation32_spill] sm:$0xff] %v5988_v45  ;;  %v1547_v38 = vsel %vm1537_vm15, %v1544_v52, %v1546_v34  ;;  %v1549_v60 = vsel %vm1539_vm10, %v1535_v15, 1326507024  ;;  %v4628_v9 = vpop.eup %3504  ;;  %v1260_v57 = vclz %v2996_v47  ;;  %v1540_v18 = vsel %vm1536_vm8, %v1520_v41, %v1523_v0 }
 0x16f   : > { %5990 = vst [vmem:[#allocation33_spill] sm:$0xff] %v4628_v9  ;;  %v1542_v40 = vsel %vm1538_vm9, %v1526_v44, %v1541_v29  ;;  %v1550_v3 = vsel %vm1538_vm9, %v1532_v28, %v1549_v60  ;;  %v4634_v17 = vmul.u32.u64.low %v1552_v61, %v1547_v38  ;;  %v4635_v33 = vmul.u32.u64.high %v1552_v61, %v1547_v38, %v4634_v17 }
 0x170   : > { %v1551_v37 = vsel %vm1537_vm15, %v1548_v21, %v1550_v3  ;;  %v1410_v48 = vadd.s32 1, %v3003_v22  ;;  %v5991_v51 = vxor.u32 2147483648, %v4562_v2  ;;  %v1057_v0 = vshll.u32 %v4437_v20, %v4555_v5 }
 0x171   : > { %v4645_v47 = vmul.u32.u64.low %v1552_v61, %v1551_v37  ;;  %v4646_v44 = vmul.u32.u64.high %v1552_v61, %v1551_v37, %v4645_v47  ;;  %v5992_v28 = vand.u32 2147483647, %v4572_v39  ;;  %v5993_v3 = vcvt.s32.f32 %v4570_v25 }
 0x172   : > { %v861_v15 = vsel %vm5888_vm5, %v5991_v51, %v4562_v2  ;;  %vm3002_vm0 = vcmp.lt.s32.totalorder %v3001_v12, 0  ;;  %v1543_v22 = vsel %vm1537_vm15, %v1540_v18, %v1542_v40  ;;  %vm1411_vm8 = vcmp.gt.s32.totalorder %v1410_v48, 0 }
 0x173   : > { %v4652_v29 = vmul.f32 %v5993_v3, %v5992_v28  ;;  %3506 = vsinq.f32 %v4568_v50  ;;  %v4657_v2 = vor.u32 %v4588_v49, %v1057_v0  ;;  %v1062_v20 = vshll.u32 %v4603_v6, 23 }
 0x174   : > { %v5994_v5 = vand.u32 2147483647, %v4560_v11  ;;  %v2997_v41 = vadd.s32 4294967294, %v1260_v57  ;;  %v1562_v39 = vadd.s32 1, %v4635_v33  ;;  %v1412_v25 = vsel %vm1411_vm8, %v1410_v48, 0 }
 0x175   : > { %v1715_v34 = vand.u32 2139095040, %v4607_v62  ;;  %v4667_v31 = vsel %vm4616_vm13, %v4111_v1, %v861_v15  ;;  %v4669_v50 = vsel %vm3002_vm0, 0, %v3001_v12  ;;  %v1559_v49 = vmul.u32 %v1552_v61, %v1543_v22 }
 0x176   : > { %v1407_v52 = vand.u32 8388607, %v5994_v5  ;;  %vm1561_vm9 = vc.u32 %v4646_v44, %v4634_v17  ;;  %v1352_v38 = vadd.s32 %v4457_v19, %v4451_v56  ;;  %v1414_v60 = vand.u32 31, %v1412_v25 }
 0x177   : > { %v1563_v21 = vsel %vm1561_vm9, %v1562_v39, %v4635_v33  ;;  %v4677_v57 = vor.u32 4788187, %v1062_v20  ;;  %v1372_v12 = vsub.s32 4294967266, %v4669_v50  ;;  %vm2998_vm10 = vcmp.lt.s32.totalorder %v2997_v41, 0 }
 0x178   : > { %v1564_v40 = vadd.s32 %v1563_v21, %v1559_v49  ;;  %v1408_v37 = vor.u32 8388608, %v1407_v52  ;;  %v1415_v61 = vsub.s32 32, %v1414_v60  ;;  %v1716_v48 = vshrl.u32 %v1715_v34, 23  ;;  %v2027_v49 = vld [vmem:[#allocation2 + $0x18] sm:$0xff] }
 0x179   : > { %v4681_v15 = vshrl.u32 %v1412_v25, 5  ;;  %v1417_v0 = vshll.u32 %v5961_v30, %v1414_v60  ;;  %v1420_v56 = vshll.u32 %v5955_v36, %v1414_v60  ;;  %v1423_v47 = vshll.u32 %v5951_v59, %v1414_v60  ;;  %3165 = vmatprep.subr.mxu0 %v2027_v49 }
 0x17a   : > { %v1565_v51 = vadd.s32 536870912, %v1564_v40  ;;  %v1418_v33 = vshrl.u32 %v5955_v36, %v1415_v61  ;;  %v1421_v19 = vshrl.u32 %v5951_v59, %v1415_v61  ;;  %v1424_v28 = vshrl.u32 %v5952_v13, %v1415_v61  ;;  %3166 = vmatpush3.msra.mxu0 %v2027_v49 }
 0x17b   : > { %v1426_v22 = vshll.u32 %v5952_v13, %v1414_v60  ;;  %v1427_v20 = vshrl.u32 %v5968_v8, %v1415_v61  ;;  %v1429_v5 = vshll.u32 %v5968_v8, %v1414_v60  ;;  %v1430_v34 = vshrl.u32 %v5954_v23, %v1415_v61 }
 0x17c   : > { %v4689_v3 = vshrl.u32 %v1565_v51, 30  ;;  %v1419_v52 = vor.u32 %v1418_v33, %v1417_v0  ;;  %v1422_v39 = vor.u32 %v1421_v19, %v1420_v56  ;;  %v1425_v25 = vor.u32 %v1424_v28, %v1423_v47  ;;  %v2026_v56 = vld [vmem:[#allocation2 + $0x10] sm:$0xff]  ;;  %v2025_v47 = vld [vmem:[#allocation2 + $0x8] sm:$0xff] }
 0x17d   : > { %vm5887_vm15 = vcmp.lt.s32.totalorder %v4154_v63, 0  ;;  %v1064_v21 = vand.u32 2147483647, %v4677_v57  ;;  %v1428_v51 = vor.u32 %v1427_v20, %v1426_v22  ;;  %v4698_v6 = vshll.u32 %v1408_v37, 8  ;;  %3167 = vmatprep.subr.mxu0 %v2026_v56 }
 0x17e   : > { %5995 = vst [vmem:[#allocation34_spill] sm:$0xff] %v4689_v3  ;;  %v1567_v18 = vshll.u32 %v4689_v3, 30  ;;  %v1368_v9 = vsub.s32 32, %v4669_v50  ;;  %v1373_v45 = vadd.s32 127, %v1372_v12  ;;  %v4702_v60 = vsel %vm2998_vm10, 0, %v2997_v41  ;;  %3168 = vmatpush3.msra.mxu0 %v2026_v56 }
 0x17f   : > { %v1431_v0 = vor.u32 %v1430_v34, %v1429_v5  ;;  %v1416_v33 = vshrl.u32 %v5961_v30, %v1415_v61  ;;  %vm1432_vm0 = vcmp.lt.s32.totalorder %v4681_v15, 1  ;;  %vm1435_vm8 = vcmp.lt.s32.totalorder %v4681_v15, 4  ;;  %3169 = vmatprep.subr.mxu0 %v2025_v47 }
 0x180   : > { %v3015_v57 = vadd.s32 4294967169, %v1716_v48  ;;  %v4707_v37 = vpop.eup %3506  ;;  %v5997_v19 = vand.u32 2147483647, %v4154_v63  ;;  %v5998_v12 = vmov 0  ;;  %vm1434_vm10 = vcmp.lt.s32.totalorder %v4681_v15, 3  ;;  %3170 = vmatpush3.msra.mxu0 %v2025_v47 }
 0x181   : > { %5996 = vst [vmem:[#allocation35_spill] sm:$0xff] %v4707_v37  ;;  %v1437_v41 = vsel %vm1435_vm8, %v1425_v25, 2102212464  ;;  %v1440_v61 = vsel %vm1432_vm0, %v1419_v52, %v1422_v39  ;;  %v1441_v48 = vsel %vm1435_vm8, %v1428_v51, 920167782  ;;  %v4722_v28 = vsub.s32 %v1564_v40, %v1567_v18 }
 0x182   : > { %vm4711_vm9 = vcmp.le.f32.partialorder %v5997_v19, 0.7853982  ;;  %vm1433_vm4 = vcmp.lt.s32.totalorder %v4681_v15, 2  ;;  %v1442_v22 = vsel %vm1434_vm10, %v1425_v25, %v1441_v48  ;;  %v1444_v20 = vsel %vm1432_vm0, %v1422_v39, %v1425_v25 }
 0x183   : > { %v5999_v12 = vsel %vm4711_vm9, 4294967295, %v5998_v12  ;;  %v1369_v5 = vshll.u32 %v4552_v4, %v4669_v50  ;;  %v1370_v34 = vshrl.u32 %v1352_v38, %v1368_v9  ;;  %v1443_v49 = vsel %vm1433_vm4, %v1440_v61, %v1442_v22 }
 0x184   : > { %6000 = vst [vmem:[#allocation36_spill] sm:$0xff] %v5999_v12  ;;  %v1445_v18 = vsel %vm1435_vm8, %v1431_v0, 1326507024  ;;  %v1374_v40 = vshll.u32 %v1373_v45, 23  ;;  %v1436_v56 = vsel %vm1432_vm0, %v1416_v33, %v1419_v52  ;;  %v1438_v19 = vsel %vm1434_vm10, %v1422_v39, %v1437_v41 }
 0x185   : > { %v1446_v25 = vsel %vm1434_vm10, %v1428_v51, %v1445_v18  ;;  %v1268_v4 = vsub.s32 4294967266, %v4702_v60  ;;  %v4745_v50 = vmul.u32.u64.low %v4698_v6, %v1443_v49  ;;  %v4746_v38 = vmul.u32.u64.high %v4698_v6, %v1443_v49, %v4745_v50 }
 0x186   : > { %v1447_v9 = vsel %vm1433_vm4, %v1444_v20, %v1446_v25  ;;  %v1570_v45 = vsub.s32 0, %v4722_v28  ;;  %v1722_v39 = vadd.s32 1, %v3015_v57  ;;  %3508 = vcosq.f32 %v4667_v31 }
 0x187   : > { %v4751_v52 = vmul.u32.u64.low %v4698_v6, %v1447_v9  ;;  %v4752_v0 = vmul.u32.u64.high %v4698_v6, %v1447_v9, %v4751_v52  ;;  %v6001_v51 = vxor.u32 2147483648, %v4652_v29  ;;  %v6002_v41 = vcvt.s32.f32 %v4657_v2 }
 0x188   : > { %v1439_v48 = vsel %vm1433_vm4, %v1436_v56, %v1438_v19  ;;  %v4766_v47 = vor.u32 %v1370_v34, %v1369_v5  ;;  %v4768_v22 = vor.u32 4788187, %v1374_v40  ;;  %v5878_v57 = vand.u32 2147483647, %v4607_v62 }
 0x189   : > { %v1173_v33 = vsel %vm5887_vm15, %v6001_v51, %v4652_v29  ;;  %v4762_v61 = vmul.f32 %v6002_v41, %v1064_v21  ;;  %vm1723_vm0 = vcmp.gt.s32.totalorder %v1722_v39, 0  ;;  %v1264_v20 = vsub.s32 32, %v4702_v60 }
 0x18a   : > { %v1269_v49 = vadd.s32 127, %v1268_v4  ;;  %v1458_v18 = vadd.s32 1, %v4746_v38  ;;  %v1724_v29 = vsel %vm1723_vm0, %v1722_v39, 0  ;;  %v4776_v2 = vsel %vm4711_vm9, %v4154_v63, %v1173_v33 }
 0x18b   : > { %v3008_v15 = vmin.u32 %v1570_v45, %v4722_v28  ;;  %v1455_v21 = vmul.u32 %v4698_v6, %v1439_v48  ;;  %vm1457_vm4 = vc.u32 %v4752_v0, %v4745_v50  ;;  %v1248_v34 = vadd.s32 %v4526_v16, %v4544_v24 }
 0x18c   : > { %v1459_v40 = vsel %vm1457_vm4, %v1458_v18, %v4746_v38  ;;  %v1726_v56 = vand.u32 31, %v1724_v29  ;;  %v1265_v4 = vshll.u32 %v4598_v27, %v4702_v60  ;;  %v1270_v45 = vshll.u32 %v1269_v49, 23 }
 0x18d   : > { %v1460_v9 = vadd.s32 %v1459_v40, %v1455_v21  ;;  %v1266_v6 = vshrl.u32 %v1248_v34, %v1264_v20  ;;  %v1719_v52 = vand.u32 8388607, %v5878_v57  ;;  %v1572_v51 = vclz %v3008_v15  ;;  %v321_v15 = vpop.permute.xlu0 %320 }
 0x18e   : > { %v1727_v39 = vsub.s32 32, %v1726_v56  ;;  %v1729_v16 = vshll.u32 %v5961_v30, %v1726_v56  ;;  %v1732_v24 = vshll.u32 %v5955_v36, %v1726_v56  ;;  %v1735_v48 = vshll.u32 %v5951_v59, %v1726_v56 }
 0x18f   : > { %v1461_v33 = vadd.s32 536870912, %v1460_v9  ;;  %v1725_v20 = vshrl.u32 %v1724_v29, 5  ;;  %v1738_v49 = vshll.u32 %v5952_v13, %v1726_v56  ;;  %vm5904_vm8 = vcmp.lt.s32.totalorder %v4228_v14, 0 }
 0x190   : > { %v1730_v38 = vshrl.u32 %v5955_v36, %v1727_v39  ;;  %v1733_v41 = vshrl.u32 %v5951_v59, %v1727_v39  ;;  %v1736_v27 = vshrl.u32 %v5952_v13, %v1727_v39  ;;  %v1739_v18 = vshrl.u32 %v5968_v8, %v1727_v39 }
 0x191   : > { %v4798_v60 = vshrl.u32 %v1461_v33, 30  ;;  %v1267_v21 = vor.u32 %v1266_v6, %v1265_v4  ;;  %v1271_v25 = vor.u32 4788187, %v1270_v45  ;;  %v1720_v5 = vor.u32 8388608, %v1719_v52 }
 0x192   : > { %v1731_v34 = vor.u32 %v1730_v38, %v1729_v16  ;;  %v1734_v40 = vor.u32 %v1733_v41, %v1732_v24  ;;  %v1737_v57 = vor.u32 %v1736_v27, %v1735_v48  ;;  %v1740_v3 = vor.u32 %v1739_v18, %v1738_v49 }
 0x193   : > { %6003 = vst [vmem:[#allocation37_spill] sm:$0xff] %v4798_v60  ;;  %v1463_v19 = vshll.u32 %v4798_v60, 30  ;;  %v3009_v12 = vadd.s32 4294967294, %v1572_v51  ;;  %v1741_v33 = vshll.u32 %v5968_v8, %v1726_v56  ;;  %v1742_v29 = vshrl.u32 %v5954_v23, %v1727_v39  ;;  %v4809_v63 = vpop.eup %3508 }
 0x194   : > { %v4807_v37 = vmul.f32 %v4368_v26, %v321_v15  ;;  %6004 = vst [vmem:[#allocation38_spill] sm:$0xff] %v4809_v63  ;;  %vm1744_vm10 = vcmp.lt.s32.totalorder %v1725_v20, 1  ;;  %vm1746_vm0 = vcmp.lt.s32.totalorder %v1725_v20, 3  ;;  %vm1747_vm4 = vcmp.lt.s32.totalorder %v1725_v20, 4 }
 0x195   : > { %v4811_v1 = vsub.s32 %v1460_v9, %v1463_v19  ;;  %v6005_v4 = vand.u32 2147483647, %v4228_v14  ;;  %v6006_v6 = vmov 0  ;;  %v1743_v45 = vor.u32 %v1742_v29, %v1741_v33 }
 0x196   : > { %v1749_v56 = vsel %vm1747_vm4, %v1737_v57, 2102212464  ;;  %v1752_v52 = vsel %vm1744_vm10, %v1731_v34, %v1734_v40  ;;  %v1753_v51 = vsel %vm1747_vm4, %v1740_v3, 920167782  ;;  %v1728_v24 = vshrl.u32 %v5961_v30, %v1727_v39 }
 0x197   : > { %vm4815_vm15 = vcmp.le.f32.partialorder %v6005_v4, 0.7853982  ;;  %v1466_v16 = vsub.s32 0, %v4811_v1  ;;  %vm1745_vm5 = vcmp.lt.s32.totalorder %v1725_v20, 2  ;;  %v1754_v19 = vsel %vm1746_vm0, %v1737_v57, %v1753_v51 }
 0x198   : > { %v6007_v6 = vsel %vm4815_vm15, 4294967295, %v6006_v6  ;;  %v1755_v9 = vsel %vm1745_vm5, %v1752_v52, %v1754_v19  ;;  %v1756_v38 = vsel %vm1744_vm10, %v1734_v40, %v1737_v57  ;;  %v1757_v41 = vsel %vm1747_vm4, %v1743_v45, 1326507024  ;;  %v336_v52 = vpop.permute.xlu1 %335 }
 0x199   : > { %6008 = vst [vmem:[#allocation39_spill] sm:$0xff] %v6007_v6  ;;  %v1760_v48 = vshll.u32 %v1720_v5, 8  ;;  %v3004_v27 = vmin.u32 %v1466_v16, %v4811_v1  ;;  %v1748_v49 = vsel %vm1744_vm10, %v1728_v24, %v1731_v34  ;;  %v1750_v18 = vsel %vm1746_vm0, %v1734_v40, %v1749_v56 }
 0x19a   : > { %v1758_v15 = vsel %vm1746_vm0, %v1740_v3, %v1757_v41  ;;  %v1611_v4 = vand.u32 2139095040, %v4807_v37  ;;  %v6009_v57 = vxor.u32 2147483648, %v4762_v61  ;;  %vm5892_vm10 = vcmp.lt.s32.totalorder %v4279_v43, 0 }
 0x19b   : > { %v1759_v33 = vsel %vm1745_vm5, %v1756_v38, %v1758_v15  ;;  %v4830_v39 = vmul.u32.u64.low %v1760_v48, %v1755_v9  ;;  %v4831_v29 = vmul.u32.u64.high %v1760_v48, %v1755_v9, %v4830_v39  ;;  %vm3010_vm4 = vcmp.lt.s32.totalorder %v3009_v12, 0 }
 0x19c   : > { %v1069_v5 = vsel %vm5904_vm8, %v6009_v57, %v4762_v61  ;;  %v4841_v34 = vmul.u32.u64.low %v1760_v48, %v1759_v33  ;;  %v4842_v3 = vmul.u32.u64.high %v1760_v48, %v1759_v33, %v4841_v34  ;;  %v6010_v40 = vand.u32 2147483647, %v4768_v22 }
 0x19d   : > { %v6011_v45 = vcvt.s32.f32 %v4766_v47  ;;  %v1272_v51 = vand.u32 2147483647, %v1271_v25  ;;  %v1751_v16 = vsel %vm1745_vm5, %v1748_v49, %v1750_v18  ;;  %v1612_v24 = vshrl.u32 %v1611_v4, 23  ;;  %v2024_v34 = vld [vmem:[#allocation2] sm:$0xff] }
 0x19e   : > { %3510 = vsinq.f32 %v4667_v31  ;;  %v1274_v19 = vcvt.s32.f32 %v1267_v21  ;;  %v5889_v61 = vand.u32 2147483647, %v4807_v37  ;;  %v4852_v9 = vmul.f32 %v4368_v26, %v336_v52  ;;  %3171 = vmatprep.subr.mxu0 %v2024_v34 }
 0x19f   : > { %v1379_v56 = vmul.f32 %v6011_v45, %v6010_v40  ;;  %v1575_v38 = vsel %vm3010_vm4, 0, %v3009_v12  ;;  %v1468_v41 = vclz %v3004_v27  ;;  %v1770_v15 = vadd.s32 1, %v4831_v29  ;;  %3172 = vmatpush3.msra.mxu0 %v2024_v34 }
 0x1a0   : > { %6012 = vst [vmem:[#allocation40_spill] sm:$0xff] %v4852_v9  ;;  %v3011_v22 = vadd.s32 4294967169, %v1612_v24  ;;  %3512 = vcosq.f32 %v4776_v2  ;;  %v1072_v47 = vsel %vm4815_vm15, %v4228_v14, %v1069_v5  ;;  %v1767_v25 = vmul.u32 %v1760_v48, %v1751_v16 }
 0x1a1   : > { %vm1769_vm5 = vc.u32 %v4842_v3, %v4830_v39  ;;  %v1380_v31 = vxor.u32 2147483648, %v1379_v56  ;;  %v4861_v20 = vmul.f32 %v1274_v19, %v1272_v51  ;;  %3514 = vsinq.f32 %v4776_v2 }
 0x1a2   : > { %v1771_v26 = vsel %vm1769_vm5, %v1770_v15, %v4831_v29  ;;  %v1618_v12 = vadd.s32 1, %v3011_v22  ;;  %v1576_v21 = vsub.s32 32, %v1575_v38  ;;  %v1580_v27 = vsub.s32 4294967266, %v1575_v38 }
 0x1a3   : > { %v1772_v49 = vadd.s32 %v1771_v26, %v1767_v25  ;;  %v3005_v18 = vadd.s32 4294967294, %v1468_v41  ;;  %v1615_v33 = vand.u32 8388607, %v5889_v61  ;;  %v1923_v48 = vand.u32 2139095040, %v4852_v9 }
 0x1a4   : > { %vm1619_vm0 = vcmp.gt.s32.totalorder %v1618_v12, 0  ;;  %3516 = vcosq.f32 %v1072_v47  ;;  %v1560_v4 = vadd.s32 %v4634_v17, %v4646_v44  ;;  %v4872_v2 = vsel %vm5892_vm10, %v1380_v31, %v1379_v56 }
 0x1a5   : > { %v1773_v52 = vadd.s32 536870912, %v1772_v49  ;;  %v1620_v57 = vsel %vm1619_vm0, %v1618_v12, 0  ;;  %3518 = vsinq.f32 %v1072_v47  ;;  %v1577_v40 = vshll.u32 %v4722_v28, %v1575_v38 }
 0x1a6   : > { %v1622_v5 = vand.u32 31, %v1620_v57  ;;  %v1578_v45 = vshrl.u32 %v1560_v4, %v1576_v21  ;;  %v1581_v51 = vadd.s32 127, %v1580_v27  ;;  %vm3006_vm4 = vcmp.lt.s32.totalorder %v3005_v18, 0 }
 0x1a7   : > { %v4876_v16 = vshrl.u32 %v1773_v52, 30  ;;  %v1616_v17 = vor.u32 8388608, %v1615_v33  ;;  %v1924_v24 = vshrl.u32 %v1923_v48, 23  ;;  %v1621_v56 = vshrl.u32 %v1620_v57, 5 }
 0x1a8   : > { %v1623_v44 = vsub.s32 32, %v1622_v5  ;;  %v1625_v41 = vshll.u32 %v5961_v30, %v1622_v5  ;;  %v1628_v15 = vshll.u32 %v5955_v36, %v1622_v5  ;;  %v1631_v38 = vshll.u32 %v5951_v59, %v1622_v5 }
 0x1a9   : > { %6013 = vst [vmem:[#allocation41_spill] sm:$0xff] %v4876_v16  ;;  %v1775_v19 = vshll.u32 %v4876_v16, 30  ;;  %v1634_v31 = vshll.u32 %v5952_v13, %v1622_v5  ;;  %v1637_v12 = vshll.u32 %v5968_v8, %v1622_v5  ;;  %v4893_v52 = vor.u32 %v1578_v45, %v1577_v40 }
 0x1aa   : > { %v1626_v22 = vshrl.u32 %v5955_v36, %v1623_v44  ;;  %v1629_v28 = vshrl.u32 %v5951_v59, %v1623_v44  ;;  %v1632_v47 = vshrl.u32 %v5952_v13, %v1623_v44  ;;  %v1635_v26 = vshrl.u32 %v5968_v8, %v1623_v44 }
 0x1ab   : > { %v4885_v25 = vsub.s32 %v1772_v49, %v1775_v19  ;;  %v4890_v21 = vpop.eup %3510  ;;  %v1638_v4 = vshrl.u32 %v5954_v23, %v1623_v44  ;;  %v1582_v57 = vshll.u32 %v1581_v51, 23  ;;  %v4899_v61 = vsel %vm3006_vm4, 0, %v3005_v18 }
 0x1ac   : > { %v1627_v27 = vor.u32 %v1626_v22, %v1625_v41  ;;  %v1630_v33 = vor.u32 %v1629_v28, %v1628_v15  ;;  %v1633_v48 = vor.u32 %v1632_v47, %v1631_v38  ;;  %v1636_v49 = vor.u32 %v1635_v26, %v1634_v31 }
 0x1ad   : > { %v1778_v34 = vsub.s32 0, %v4885_v25  ;;  %v4896_v19 = vpop.eup %3512  ;;  %v1639_v29 = vor.u32 %v1638_v4, %v1637_v12  ;;  %v1656_v5 = vshll.u32 %v1616_v17, 8  ;;  %vm1640_vm5 = vcmp.lt.s32.totalorder %v1621_v56, 1 }
 0x1ae   : > { %6014 = vst [vmem:[#allocation42_spill] sm:$0xff] %v4896_v19  ;;  %vm1643_vm0 = vcmp.lt.s32.totalorder %v1621_v56, 4  ;;  %v3023_v15 = vadd.s32 4294967169, %v1924_v24  ;;  %v4903_v40 = vpop.eup %3514  ;;  %vm1642_vm10 = vcmp.lt.s32.totalorder %v1621_v56, 3  ;;  %v1648_v51 = vsel %vm1640_vm5, %v1627_v27, %v1630_v33 }
 0x1af   : > { %v3016_v41 = vmin.u32 %v1778_v34, %v4885_v25  ;;  %6015 = vst [vmem:[#allocation43_spill] sm:$0xff] %v4903_v40  ;;  %v1645_v45 = vsel %vm1643_vm0, %v1633_v48, 2102212464  ;;  %v1649_v22 = vsel %vm1643_vm0, %v1636_v49, 920167782  ;;  %v1624_v28 = vshrl.u32 %v5961_v30, %v1623_v44 }
 0x1b0   : > { %vm1641_vm4 = vcmp.lt.s32.totalorder %v1621_v56, 2  ;;  %v1650_v18 = vsel %vm1642_vm10, %v1633_v48, %v1649_v22  ;;  %v1652_v17 = vsel %vm1640_vm5, %v1630_v33, %v1633_v48  ;;  %v1476_v47 = vsub.s32 4294967266, %v4899_v61 }
 0x1b1   : > { %v4909_v38 = vpop.eup %3516  ;;  %v1780_v31 = vclz %v3016_v41  ;;  %v1651_v24 = vsel %vm1641_vm4, %v1648_v51, %v1650_v18  ;;  %v1653_v26 = vsel %vm1643_vm0, %v1639_v29, 1326507024  ;;  %v1644_v4 = vsel %vm1640_vm5, %v1624_v28, %v1627_v27  ;;  %v331_v41 = vpop.permute.xlu0 %330 }
 0x1b2   : > { %6016 = vst [vmem:[#allocation44_spill] sm:$0xff] %v4909_v38  ;;  %v4913_v12 = vpop.eup %3518  ;;  %v1646_v34 = vsel %vm1642_vm10, %v1630_v33, %v1645_v45  ;;  %v1654_v44 = vsel %vm1642_vm10, %v1636_v49, %v1653_v26  ;;  %v1930_v16 = vadd.s32 1, %v3023_v15  ;;  %v4918_v22 = vor.u32 4788187, %v1582_v57  ;;  %v4925_v51 = vpop.f32.mrf.mxu1  ;;  %v3621_v26 = vld [vmem:[%s5813_s1] ss:$0 sm:$0xff] }
 0x1b3   : > { %6017 = vst [vmem:[#allocation45_spill] sm:$0xff] %v4913_v12  ;;  %v1655_v48 = vsel %vm1641_vm4, %v1652_v17, %v1654_v44  ;;  %v4921_v19 = vmul.u32.u64.low %v1656_v5, %v1651_v24  ;;  %v4922_v40 = vmul.u32.u64.high %v1656_v5, %v1651_v24, %v4921_v19  ;;  %6018 = vst [vmem:[#allocation46_spill] sm:$0xff] %v4925_v51  ;;  %v1472_v29 = vsub.s32 32, %v4899_v61 }
 0x1b4   : > { %v4928_v18 = vmul.u32.u64.low %v1656_v5, %v1655_v48  ;;  %v4929_v27 = vmul.u32.u64.high %v1656_v5, %v1655_v48, %v4928_v18  ;;  %vm1931_vm5 = vcmp.gt.s32.totalorder %v1930_v16, 0  ;;  %v3017_v33 = vadd.s32 4294967294, %v1780_v31  ;;  %v4944_v31 = vpop.f32.mrf.mxu1 }
 0x1b5   : > { %v1647_v49 = vsel %vm1641_vm4, %v1644_v4, %v1646_v34  ;;  %v6019_v57 = vand.u32 2147483647, %v4852_v9  ;;  %v1932_v45 = vsel %vm1931_vm5, %v1930_v16, 0  ;;  %v1456_v17 = vadd.s32 %v4745_v50, %v4752_v0  ;;  %6020 = vst [vmem:[#allocation47_spill] sm:$0xff] %v4944_v31 }
 0x1b6   : > { %v4937_v24 = vadd.s32 127, %v1476_v47  ;;  %v4942_v44 = vmul.f32 %v3621_v26, %v331_v41  ;;  %v4949_v16 = vadd.s32 %v4830_v39, %v4842_v3  ;;  %v1666_v4 = vadd.s32 1, %v4922_v40  ;;  %v4958_v48 = vpop.f32.mrf.mxu1 }
 0x1b7   : > { %v1927_v15 = vand.u32 8388607, %v6019_v57  ;;  %v1934_v34 = vand.u32 31, %v1932_v45  ;;  %v4954_v0 = vshrl.u32 %v1456_v17, %v1472_v29  ;;  %v1663_v47 = vmul.u32 %v1656_v5, %v1647_v49  ;;  %6021 = vst [vmem:[#allocation48_spill] sm:$0xff] %v4958_v48 }
 0x1b8   : > { %vm1665_vm10 = vc.u32 %v4929_v27, %v4921_v19  ;;  %vm3018_vm0 = vcmp.lt.s32.totalorder %v3017_v33, 0  ;;  %v1478_v3 = vshll.u32 %v4937_v24, 23  ;;  %v4964_v29 = vpop.f32.mrf.mxu1  ;;  %vm5924_vm14 = vcmp.lt.s32.totalorder %v4371_v7, 0 }
 0x1b9   : > { %v1667_v41 = vsel %vm1665_vm10, %v1666_v4, %v4922_v40  ;;  %v1928_v18 = vor.u32 8388608, %v1927_v15  ;;  %v1935_v39 = vsub.s32 32, %v1934_v34  ;;  %v1937_v26 = vshll.u32 %v5961_v30, %v1934_v34  ;;  %6022 = vst [vmem:[#allocation49_spill] sm:$0xff] %v4964_v29 }
 0x1ba   : > { %v1668_v57 = vadd.s32 %v1667_v41, %v1663_v47  ;;  %v1940_v50 = vshll.u32 %v5955_v36, %v1934_v34  ;;  %v1943_v17 = vshll.u32 %v5951_v59, %v1934_v34  ;;  %v4970_v40 = vsel %vm3018_vm0, 0, %v3017_v33  ;;  %v4973_v47 = vpop.f32.mrf.mxu1 }
 0x1bb   : > { %v1938_v5 = vshrl.u32 %v5955_v36, %v1935_v39  ;;  %v1941_v49 = vshrl.u32 %v5951_v59, %v1935_v39  ;;  %v1944_v28 = vshrl.u32 %v5952_v13, %v1935_v39  ;;  %v1933_v4 = vshrl.u32 %v1932_v45, 5  ;;  %6023 = vst [vmem:[#allocation50_spill] sm:$0xff] %v4973_v47 }
 0x1bc   : > { %v1669_v15 = vadd.s32 536870912, %v1668_v57  ;;  %v1946_v24 = vshll.u32 %v5952_v13, %v1934_v34  ;;  %v1947_v51 = vshrl.u32 %v5968_v8, %v1935_v39  ;;  %v1949_v48 = vshll.u32 %v5968_v8, %v1934_v34  ;;  %v4982_v33 = vpop.f32.mrf.mxu1 }
 0x1bd   : > { %v1939_v41 = vor.u32 %v1938_v5, %v1937_v26  ;;  %v1942_v56 = vor.u32 %v1941_v49, %v1940_v50  ;;  %v1945_v31 = vor.u32 %v1944_v28, %v1943_v17  ;;  %v1950_v60 = vshrl.u32 %v5954_v23, %v1935_v39  ;;  %6025 = vst [vmem:[#allocation52_spill] sm:$0xff] %v4982_v33 }
 0x1be   : > { %v4976_v29 = vshrl.u32 %v1669_v15, 30  ;;  %v4980_v38 = vshll.u32 %v1928_v18, 8  ;;  %v1784_v45 = vsub.s32 32, %v4970_v40  ;;  %v1788_v12 = vsub.s32 4294967266, %v4970_v40  ;;  %v4988_v5 = vpop.f32.mrf.mxu1 }
 0x1bf   : > { %v1948_v47 = vor.u32 %v1947_v51, %v1946_v24  ;;  %v1819_v50 = vand.u32 2139095040, %v4942_v44  ;;  %v1951_v26 = vor.u32 %v1950_v60, %v1949_v48  ;;  %vm1952_vm4 = vcmp.lt.s32.totalorder %v1933_v4, 1  ;;  %6026 = vst [vmem:[#allocation53_spill] sm:$0xff] %v4988_v5 }
 0x1c0   : > { %6024 = vst [vmem:[#allocation51_spill] sm:$0xff] %v4976_v29  ;;  %v1671_v28 = vshll.u32 %v4976_v29, 30  ;;  %vm1955_vm5 = vcmp.lt.s32.totalorder %v1933_v4, 4  ;;  %vm1954_vm10 = vcmp.lt.s32.totalorder %v1933_v4, 3  ;;  %v1960_v18 = vsel %vm1952_vm4, %v1939_v41, %v1942_v56  ;;  %v4997_v24 = vpop.f32.mrf.mxu1 }
 0x1c1   : > { %v1957_v34 = vsel %vm1955_vm5, %v1945_v31, 2102212464  ;;  %v1961_v49 = vsel %vm1955_vm5, %v1948_v47, 920167782  ;;  %v1936_v51 = vshrl.u32 %v5961_v30, %v1935_v39  ;;  %vm1953_vm0 = vcmp.lt.s32.totalorder %v1933_v4, 2  ;;  %6027 = vst [vmem:[#allocation54_spill] sm:$0xff] %v4997_v24 }
 0x1c2   : > { %v4993_v17 = vsub.s32 %v1668_v57, %v1671_v28  ;;  %v1962_v15 = vsel %vm1954_vm10, %v1945_v31, %v1961_v49  ;;  %v6028_v60 = vand.u32 2147483647, %v4279_v43  ;;  %v6029_v48 = vmov 0  ;;  %v5013_v29 = vpop.f32.mrf.mxu1 }
 0x1c3   : > { %v1789_v33 = vadd.s32 127, %v1788_v12  ;;  %v1963_v5 = vsel %vm1953_vm0, %v1960_v18, %v1962_v15  ;;  %v1964_v57 = vsel %vm1952_vm4, %v1942_v56, %v1945_v31  ;;  %v1965_v39 = vsel %vm1955_vm5, %v1951_v26, 1326507024  ;;  %6032 = vst [vmem:[#allocation56_spill] sm:$0xff] %v5013_v29 }
 0x1c4   : > { %vm5001_vm8 = vcmp.le.f32.partialorder %v6028_v60, 0.7853982  ;;  %v1674_v28 = vsub.s32 0, %v4993_v17  ;;  %v1956_v49 = vsel %vm1952_vm4, %v1936_v51, %v1939_v41  ;;  %v1958_v24 = vsel %vm1954_vm10, %v1942_v56, %v1957_v34  ;;  %v5026_v56 = vpop.f32.mrf.mxu1 }
 0x1c5   : > { %v6030_v48 = vsel %vm5001_vm8, 4294967295, %v6029_v48  ;;  %v1966_v60 = vsel %vm1954_vm10, %v1948_v47, %v1965_v39  ;;  %v5017_v12 = vmul.u32.u64.low %v4980_v38, %v1963_v5  ;;  %v5018_v63 = vmul.u32.u64.high %v4980_v38, %v1963_v5, %v5017_v12  ;;  %6033 = vst [vmem:[#allocation57_spill] sm:$0xff] %v5026_v56 }
 0x1c6   : > { %6031 = vst [vmem:[#allocation55_spill] sm:$0xff] %v6030_v48  ;;  %v1967_v6 = vsel %vm1953_vm0, %v1964_v57, %v1966_v60  ;;  %v1479_v18 = vor.u32 4788187, %v1478_v3  ;;  %v3012_v26 = vmin.u32 %v1674_v28, %v4993_v17  ;;  %v1786_v47 = vshrl.u32 %v4949_v16, %v1784_v45  ;;  %v5041_v31 = vpop.f32.mrf.mxu1 }
 0x1c7   : > { %v5023_v15 = vmul.u32.u64.low %v4980_v38, %v1967_v6  ;;  %v5024_v41 = vmul.u32.u64.high %v4980_v38, %v1967_v6, %v5023_v15  ;;  %v1790_v34 = vshll.u32 %v1789_v33, 23  ;;  %v1959_v51 = vsel %vm1953_vm0, %v1956_v49, %v1958_v24  ;;  %6037 = vst [vmem:[#allocation58_spill] sm:$0xff] %v5041_v31 }
 0x1c8   : > { %v1820_v57 = vshrl.u32 %v1819_v50, 23  ;;  %v6034_v5 = vand.u32 2147483647, %v4918_v22  ;;  %v6035_v39 = vcvt.s32.f32 %v4893_v52  ;;  %v6036_v3 = vshll.u32 %v4811_v1, %v4899_v61  ;;  %v5050_v61 = vpop.f32.mrf.mxu1 }
 0x1c9   : > { %v1676_v28 = vclz %v3012_v26  ;;  %v5913_v15 = vand.u32 2147483647, %v4027_v58  ;;  %v1785_v16 = vshll.u32 %v4885_v25, %v4970_v40  ;;  %v1978_v4 = vadd.s32 1, %v5018_v63  ;;  %6039 = vst [vmem:[#allocation59_spill] sm:$0xff] %v5050_v61 }
 0x1ca   : > { %v5034_v60 = vmul.f32 %v6035_v39, %v6034_v5  ;;  %v1475_v6 = vor.u32 %v4954_v0, %v6036_v3  ;;  %v3019_v22 = vadd.s32 4294967169, %v1820_v57  ;;  %v6038_v52 = vand.u32 2147483647, %v4942_v44 }
 0x1cb   : > { %v1480_v45 = vand.u32 2147483647, %v1479_v18  ;;  %v3013_v50 = vadd.s32 4294967294, %v1676_v28  ;;  %v1975_v1 = vmul.u32 %v4980_v38, %v1959_v51  ;;  %vm1977_vm4 = vc.u32 %v5024_v41, %v5017_v12 }
 0x1cc   : > { %v1823_v33 = vand.u32 8388607, %v6038_v52  ;;  %v5052_v0 = vor.u32 %v1786_v47, %v1785_v16  ;;  %v5054_v24 = vor.u32 4788187, %v1790_v34  ;;  %v1979_v25 = vsel %vm1977_vm4, %v1978_v4, %v5018_v63  ;;  %v5070_v34 = vpop.f32.mrf.mxu1 }
 0x1cd   : > { %v1826_v40 = vadd.s32 1, %v3019_v22  ;;  %v5061_v49 = vsel %vm5001_vm8, %v4279_v43, %v4872_v2  ;;  %v6040_v38 = vxor.u32 2147483648, %v4861_v20  ;;  %v1482_v26 = vcvt.s32.f32 %v1475_v6  ;;  %6041 = vst [vmem:[#allocation60_spill] sm:$0xff] %v5070_v34 }
 0x1ce   : > { %v1980_v47 = vadd.s32 %v1979_v25, %v1975_v1  ;;  %vm3014_vm5 = vcmp.lt.s32.totalorder %v3013_v50, 0  ;;  %v1824_v63 = vor.u32 8388608, %v1823_v33  ;;  %v5074_v51 = vand.u32 8388607, %v5913_v15  ;;  %v5081_v39 = vpop.f32.mrf.mxu1 }
 0x1cf   : > { %v5068_v18 = vsel %vm5924_vm14, %v6040_v38, %v4861_v20  ;;  %vm1827_vm10 = vcmp.gt.s32.totalorder %v1826_v40, 0  ;;  %v5077_v57 = vmul.f32 %v1482_v26, %v1480_v45  ;;  %v378_v20 = vshrl.u32 %v5955_v36, %v4150_v10  ;;  %6042 = vst [vmem:[#allocation61_spill] sm:$0xff] %v5081_v39 }
 0x1d0   : > { %v1981_v5 = vadd.s32 536870912, %v1980_v47  ;;  %v1664_v28 = vadd.s32 %v4921_v19, %v4929_v27  ;;  %v1828_v16 = vsel %vm1827_vm10, %v1826_v40, 0  ;;  %v5087_v4 = vsel %vm3014_vm5, 0, %v3013_v50  ;;  %v5097_v45 = vpop.f32.mrf.mxu1 }
 0x1d1   : > { %v5093_v52 = vshrl.u32 %v5961_v30, %v4150_v10  ;;  %v377_v33 = vshll.u32 %v5961_v30, %v4134_v32  ;;  %6044 = vst [vmem:[#allocation63_spill] sm:$0xff] %v5097_v45  ;;  %v5100_v1 = vadd.s32 %v5017_v12, %v5024_v41  ;;  %v1830_v25 = vand.u32 31, %v1828_v16  ;;  %3253 = vmatprep.subr.mxu0 %v5097_v45 }
 0x1d2   : > { %v5089_v22 = vshrl.u32 %v1981_v5, 30  ;;  %v5102_v38 = vshll.u32 %v1824_v63, 8  ;;  %v380_v40 = vshll.u32 %v5955_v36, %v4134_v32  ;;  %v381_v26 = vshrl.u32 %v5951_v59, %v4150_v10 }
 0x1d3   : > { %v5107_v50 = vor.u32 %v378_v20, %v377_v33  ;;  %v1684_v12 = vsub.s32 4294967266, %v5087_v4  ;;  %v1831_v41 = vsub.s32 32, %v1830_v25  ;;  %v383_v63 = vshll.u32 %v5951_v59, %v4134_v32 }
 0x1d4   : > { %6043 = vst [vmem:[#allocation62_spill] sm:$0xff] %v5089_v22  ;;  %v1983_v27 = vshll.u32 %v5089_v22, 30  ;;  %v384_v5 = vshrl.u32 %v5952_v13, %v4150_v10  ;;  %v5120_v2 = vshrl.u32 %v1828_v16, 5  ;;  %v1833_v20 = vshll.u32 %v5961_v30, %v1830_v25 }
 0x1d5   : > { %v1836_v33 = vshll.u32 %v5955_v36, %v1830_v25  ;;  %v1834_v6 = vshrl.u32 %v5955_v36, %v1831_v41  ;;  %v1837_v3 = vshrl.u32 %v5951_v59, %v1831_v41  ;;  %v1839_v19 = vshll.u32 %v5951_v59, %v1830_v25 }
 0x1d6   : > { %v5118_v15 = vsub.s32 %v1980_v47, %v1983_v27  ;;  %v1840_v56 = vshrl.u32 %v5952_v13, %v1831_v41  ;;  %v1842_v10 = vshll.u32 %v5952_v13, %v1830_v25  ;;  %v1843_v47 = vshrl.u32 %v5968_v8, %v1831_v41 }
 0x1d7   : > { %v1845_v16 = vshll.u32 %v5968_v8, %v1830_v25  ;;  %vm392_vm0 = vcmp.lt.s32.totalorder %v4144_v54, 1  ;;  %v1835_v27 = vor.u32 %v1834_v6, %v1833_v20  ;;  %v1838_v29 = vor.u32 %v1837_v3, %v1836_v33 }
 0x1d8   : > { %v1986_v32 = vsub.s32 0, %v5118_v15  ;;  %v1841_v61 = vor.u32 %v1840_v56, %v1839_v19  ;;  %v1846_v36 = vshrl.u32 %v5954_v23, %v1831_v41  ;;  %v1680_v31 = vsub.s32 32, %v5087_v4 }
 0x1d9   : > { %v1685_v59 = vadd.s32 127, %v1684_v12  ;;  %v1844_v34 = vor.u32 %v1843_v47, %v1842_v10  ;;  %v1681_v13 = vshll.u32 %v4993_v17, %v5087_v4  ;;  %v382_v45 = vor.u32 %v381_v26, %v380_v40 }
 0x1da   : > { %v3024_v39 = vmin.u32 %v1986_v32, %v5118_v15  ;;  %v1847_v22 = vor.u32 %v1846_v36, %v1845_v16  ;;  %v385_v48 = vor.u32 %v384_v5, %v383_v63  ;;  %vm1848_vm4 = vcmp.lt.s32.totalorder %v5120_v2, 1 }
 0x1db   : > { %vm1850_vm5 = vcmp.lt.s32.totalorder %v5120_v2, 3  ;;  %vm1851_vm10 = vcmp.lt.s32.totalorder %v5120_v2, 4  ;;  %v1856_v23 = vsel %vm1848_vm4, %v1835_v27, %v1838_v29  ;;  %v1860_v3 = vsel %vm1848_vm4, %v1838_v29, %v1841_v61 }
 0x1dc   : > { %v1988_v8 = vclz %v3024_v39  ;;  %v1857_v56 = vsel %vm1851_vm10, %v1844_v34, 920167782  ;;  %v1861_v17 = vsel %vm1851_vm10, %v1847_v22, 1326507024  ;;  %v1682_v6 = vshrl.u32 %v1664_v28, %v1680_v31 }
 0x1dd   : > { %v1686_v4 = vshll.u32 %v1685_v59, 23  ;;  %v1858_v39 = vsel %vm1850_vm5, %v1841_v61, %v1857_v56  ;;  %vm1849_vm6 = vcmp.lt.s32.totalorder %v5120_v2, 2  ;;  %v1853_v19 = vsel %vm1851_vm10, %v1841_v61, 2102212464 }
 0x1de   : > { %v3025_v25 = vadd.s32 4294967294, %v1988_v8  ;;  %v1862_v40 = vsel %vm1850_vm5, %v1844_v34, %v1861_v17  ;;  %vm394_vm7 = vcmp.lt.s32.totalorder %v4144_v54, 3  ;;  %v1832_v26 = vshrl.u32 %v5961_v30, %v1831_v41 }
 0x1df   : > { %v1859_v22 = vsel %vm1849_vm6, %v1856_v23, %v1858_v39  ;;  %v1863_v31 = vsel %vm1849_vm6, %v1860_v3, %v1862_v40  ;;  %v396_v34 = vsel %vm392_vm0, %v5093_v52, %v5107_v50  ;;  %v6045_v30 = vand.u32 2147483647, %v4371_v7 }
 0x1e0   : > { %vm3026_vm14 = vcmp.lt.s32.totalorder %v3025_v25, 0  ;;  %v5159_v12 = vmul.u32.u64.low %v5102_v38, %v1863_v31  ;;  %v5160_v61 = vmul.u32.u64.high %v5102_v38, %v1863_v31, %v5159_v12  ;;  %v1687_v63 = vor.u32 4788187, %v1686_v4 }
 0x1e1   : > { %v1991_v28 = vsel %vm3026_vm14, 0, %v3025_v25  ;;  %vm5168_vm10 = vcmp.le.f32.partialorder %v6045_v30, 0.7853982  ;;  %v1852_v20 = vsel %vm1848_vm4, %v1832_v26, %v1835_v27  ;;  %v1854_v33 = vsel %vm1850_vm5, %v1838_v29, %v1853_v19 }
 0x1e2   : > { %v1996_v5 = vsub.s32 4294967266, %v1991_v28  ;;  %v5177_v32 = vmul.u32.u64.low %v5102_v38, %v1859_v22  ;;  %v5178_v10 = vmul.u32.u64.high %v5102_v38, %v1859_v22, %v5177_v32  ;;  %v400_v52 = vsel %vm392_vm0, %v5107_v50, %v382_v45 }
 0x1e3   : > { %v402_v47 = vsel %vm394_vm7, %v385_v48, %v4394_v55  ;;  %v6048_v16 = vand.u32 2147483647, %v4504_v46  ;;  %v1683_v29 = vor.u32 %v1682_v6, %v1681_v13  ;;  %vm6051_vm4 = vcmp.lt.s32.totalorder %v4144_v54, 4 }
 0x1e4   : > { %v1997_v36 = vadd.s32 127, %v1996_v5  ;;  %v397_v59 = vsel %vm6051_vm4, %v385_v48, 2102212464  ;;  %v404_v8 = vsel %vm392_vm0, %v382_v45, %v385_v48  ;;  %v1855_v50 = vsel %vm1849_vm6, %v1852_v20, %v1854_v33 }
 0x1e5   : > { %vm5189_vm14 = vcmp.le.f32.partialorder %v6048_v16, 0.7853982  ;;  %vm6052_vm5 = vcmp.lt.s32.totalorder %v4144_v54, 2  ;;  %v406_v23 = vsel %vm394_vm7, %v4220_v53, %v4403_v35  ;;  %v6053_v13 = vor.u32 8388608, %v5074_v51 }
 0x1e6   : > { %v403_v55 = vsel %vm6052_vm5, %v400_v52, %v402_v47  ;;  %vm5931_vm1 = vcmp.lt.s32.totalorder %v4560_v11, 0  ;;  %v1688_v3 = vand.u32 2147483647, %v1687_v63  ;;  %v1992_v17 = vsub.s32 32, %v1991_v28  ;;  %vm6054_vm6 = vmmov %vm6052_vm5 }
 0x1e7   : > { %v408_v56 = vshll.u32 %v6053_v13, 8  ;;  %vm1873_vm0 = vc.u32 %v5160_v61, %v5177_v32  ;;  %v407_v48 = vsel %vm6054_vm6, %v404_v8, %v406_v23  ;;  %v1874_v2 = vadd.s32 1, %v5178_v10  ;;  %v6063_v13 = vld [vmem:[#allocation11_spill] sm:$0xff] }
 0x1e8   : > { %v398_v6 = vsel %vm394_vm7, %v382_v45, %v397_v59  ;;  %v1998_v35 = vshll.u32 %v1997_v36, 23  ;;  %v1871_v51 = vmul.u32 %v5102_v38, %v1855_v50  ;;  %3520 = vcosq.f32 %v5061_v49  ;;  %v6062_v36 = vld [vmem:[#allocation15_spill] sm:$0xff] }
 0x1e9   : > { %v5215_v4 = vmul.u32.u64.low %v408_v56, %v407_v48  ;;  %v5216_v53 = vmul.u32.u64.high %v408_v56, %v407_v48, %v5215_v4  ;;  %v5219_v25 = vmul.u32.u64.low %v408_v56, %v403_v55  ;;  %v5220_v39 = vmul.u32.u64.high %v408_v56, %v403_v55, %v5219_v25  ;;  %v6064_v48 = vld [vmem:[#allocation10_spill] sm:$0xff] }
 0x1ea   : > { %v6055_v19 = vand.u32 2147483647, %v4560_v11  ;;  %v6058_v45 = vand.u32 2147483647, %v5054_v24  ;;  %v6059_v26 = vcvt.s32.f32 %v5052_v0  ;;  %v1690_v31 = vcvt.s32.f32 %v1683_v29 }
 0x1eb   : > { %v1875_v38 = vsel %vm1873_vm0, %v1874_v2, %v5178_v10  ;;  %v6060_v12 = vxor.u32 2147483648, %v5034_v60  ;;  %vm6061_vm7 = vcmp.lt.s32.totalorder %v4504_v46, 0  ;;  %v1994_v63 = vshrl.u32 %v5100_v1, %v1992_v17 }
 0x1ec   : > { %vm5226_vm4 = vcmp.le.f32.partialorder %v6055_v19, 0.7853982  ;;  %v1795_v22 = vmul.f32 %v6059_v26, %v6058_v45  ;;  %v1876_v5 = vadd.s32 %v1875_v38, %v1871_v51  ;;  %v399_v20 = vsel %vm6052_vm5, %v396_v34, %v398_v6  ;;  %v6070_v38 = vld [vmem:[#allocation8_spill] sm:$0xff] }
 0x1ed   : > { %v1589_v30 = vsel %vm6061_vm7, %v6060_v12, %v5034_v60  ;;  %v1280_v0 = vsel %vm5168_vm10, %v4371_v7, %v5068_v18  ;;  %v1484_v24 = vxor.u32 2147483648, %v5077_v57  ;;  %v1691_v33 = vmul.f32 %v1690_v31, %v1688_v3 }
 0x1ee   : > { %vm417_vm0 = vc.u32 %v5216_v53, %v5219_v25  ;;  %v1993_v10 = vshll.u32 %v5118_v15, %v1991_v28  ;;  %v1999_v60 = vor.u32 4788187, %v1998_v35  ;;  %v1877_v52 = vadd.s32 536870912, %v1876_v5 }
 0x1ef   : > { %v418_v1 = vadd.s32 1, %v5220_v39  ;;  %3522 = vsinq.f32 %v5061_v49  ;;  %v1592_v54 = vsel %vm5189_vm14, %v4504_v46, %v1589_v30  ;;  %v1796_v34 = vxor.u32 2147483648, %v1795_v22 }
 0x1f0   : > { %v415_v18 = vmul.u32 %v408_v56, %v399_v20  ;;  %v1995_v47 = vor.u32 %v1994_v63, %v1993_v10  ;;  %v5256_v16 = vshrl.u32 %v1877_v52, 30  ;;  %v550_v59 = vsub.s32 4, %v6062_v36 }
 0x1f1   : > { %v419_v29 = vsel %vm417_vm0, %v418_v1, %v5220_v39  ;;  %3524 = vcosq.f32 %v1280_v0  ;;  %v1485_v15 = vsel %vm5931_vm1, %v1484_v24, %v5077_v57  ;;  %vm5928_vm6 = vcmp.lt.s32.totalorder %v4607_v62, 0 }
 0x1f2   : > { %v420_v49 = vadd.s32 %v419_v29, %v415_v18  ;;  %3526 = vsinq.f32 %v1280_v0  ;;  %v1692_v28 = vxor.u32 2147483648, %v1691_v33  ;;  %v2000_v8 = vand.u32 2147483647, %v1999_v60 }
 0x1f3   : > { %v1879_v50 = vshll.u32 %v5256_v16, 30  ;;  %3528 = vcosq.f32 %v1592_v54  ;;  %v1797_v55 = vsel %vm5928_vm6, %v1796_v34, %v1795_v22  ;;  %v654_v56 = vsub.s32 4, %v6063_v13  ;;  %v6083_v22 = vld [vmem:[#allocation23_spill] sm:$0xff] }
 0x1f4   : > { %v421_v23 = vadd.s32 536870912, %v420_v49  ;;  %v1488_v3 = vsel %vm5226_vm4, %v4560_v11, %v1485_v15  ;;  %v2002_v57 = vcvt.s32.f32 %v1995_v47  ;;  %vm6065_vm7 = vcmp.lt.s32.totalorder %v6064_v48, 0 }
 0x1f5   : > { %v5271_v17 = vsub.s32 %v1876_v5, %v1879_v50  ;;  %v551_v2 = vsel %vm6065_vm7, %v550_v59, %v6062_v36  ;;  %3530 = vsinq.f32 %v1592_v54  ;;  %v6066_v6 = vand.u32 2147483647, %v4607_v62  ;;  %v5297_v30 = vpop.eup %3520 }
 0x1f6   : > { %v6067_v4 = vmov 0  ;;  %vm5929_vm0 = vcmp.lt.s32.totalorder %v4807_v37, 0  ;;  %v5283_v35 = vshrl.u32 %v421_v23, 30  ;;  %v2003_v19 = vmul.f32 %v2002_v57, %v2000_v8 }
 0x1f7   : > { %vm5278_vm5 = vcmp.le.f32.partialorder %v6066_v6, 0.7853982  ;;  %v1693_v39 = vsel %vm5929_vm0, %v1692_v28, %v1691_v33  ;;  %v1882_v45 = vsub.s32 0, %v5271_v17  ;;  %3532 = vcosq.f32 %v1488_v3 }
 0x1f8   : > { %v6068_v4 = vsel %vm5278_vm5, 4294967295, %v6067_v4  ;;  %v1800_v51 = vsel %vm5278_vm5, %v4607_v62, %v1797_v55  ;;  %v423_v26 = vshll.u32 %v5283_v35, 30  ;;  %v553_v31 = vsel %vm4493_vm3, 0, %v551_v2 }
 0x1f9   : > { %vm6071_vm7 = vcmp.lt.s32.totalorder %v6070_v38, 0  ;;  %3534 = vsinq.f32 %v1488_v3  ;;  %v6072_v63 = vand.u32 2147483647, %v4807_v37  ;;  %v3020_v20 = vmin.u32 %v1882_v45, %v5271_v17 }
 0x1fa   : > { %v655_v12 = vsel %vm6071_vm7, %v654_v56, %v6063_v13  ;;  %3536 = vcosq.f32 %v1800_v51  ;;  %v5309_v24 = vsub.s32 %v420_v49, %v423_v26  ;;  %v2004_v33 = vxor.u32 2147483648, %v2003_v19  ;;  %v6080_v56 = vld [vmem:[#allocation13_spill] sm:$0xff] }
 0x1fb   : > { %vm5301_vm6 = vcmp.le.f32.partialorder %v6072_v63, 0.7853982  ;;  %v1884_v10 = vclz %v3020_v20  ;;  %v557_v60 = vadd.s32 3, %v553_v31  ;;  %v657_v1 = vsel %vm4333_vm11, 0, %v655_v12 }
 0x1fc   : > { %v1696_v0 = vsel %vm5301_vm6, %v4807_v37, %v1693_v39  ;;  %3538 = vsinq.f32 %v1800_v51  ;;  %v426_v54 = vsub.s32 0, %v5309_v24  ;;  %v5314_v34 = vpop.eup %3522  ;;  %vm5930_vm3 = vcmp.lt.s32.totalorder %v4852_v9, 0  ;;  %v6081_v51 = vld [vmem:[#allocation31_spill] sm:$0xff] }
 0x1fd   : > { %3540 = vcosq.f32 %v1696_v0  ;;  %v3021_v18 = vadd.s32 4294967294, %v1884_v10  ;;  %v6076_v47 = vand.u32 2147483647, %v4852_v9  ;;  %v6077_v29 = vmov 0  ;;  %v6087_v10 = vld [vmem:[#allocation9_spill] sm:$0xff] }
 0x1fe   : > { %3542 = vsinq.f32 %v1696_v0  ;;  %v2964_v36 = vmin.u32 %v426_v54, %v5309_v24  ;;  %v661_v59 = vadd.s32 3, %v657_v1  ;;  %v5324_v15 = vpop.eup %3524  ;;  %v2005_v49 = vsel %vm5930_vm3, %v2004_v33, %v2003_v19 }
 0x1ff   : > { %vm5319_vm7 = vcmp.le.f32.partialorder %v6076_v47, 0.7853982  ;;  %v1872_v28 = vadd.s32 %v5177_v32, %v5160_v61  ;;  %vm3022_vm11 = vcmp.lt.s32.totalorder %v3021_v18, 0  ;;  %v558_v8 = vand.u32 3, %v557_v60  ;;  %v5331_v50 = vpop.eup %3526  ;;  %v6082_v32 = vld [vmem:[#allocation24_spill] sm:$0xff] }
 0x200   : > { %v6078_v29 = vsel %vm5319_vm7, 4294967295, %v6077_v29  ;;  %v1887_v55 = vsel %vm3022_vm11, 0, %v3021_v18  ;;  %v428_v23 = vclz %v2964_v36  ;;  %v561_v13 = vxor.u32 2147483648, %v4624_v42  ;;  %v5335_v57 = vpop.eup %3528  ;;  %v6089_v18 = vld [vmem:[#allocation18_spill] sm:$0xff] }
 0x201   : > { %6079 = vst [vmem:[#allocation15_spill] sm:$0xff] %v6078_v29  ;;  %v758_v3 = vsub.s32 4, %v6080_v56  ;;  %v1892_v2 = vsub.s32 4294967266, %v1887_v55  ;;  %v416_v6 = vadd.s32 %v5219_v25, %v5216_v53  ;;  %v564_v61 = vxor.u32 2147483648, %v6081_v51 }
 0x202   : > { %v665_v39 = vxor.u32 2147483648, %v6082_v32  ;;  %v2008_v19 = vsel %vm5319_vm7, %v4852_v9, %v2005_v49  ;;  %v2965_v45 = vadd.s32 4294967294, %v428_v23  ;;  %v662_v26 = vand.u32 3, %v661_v59  ;;  %v5345_v12 = vpop.eup %3530 }
 0x203   : > { %v668_v31 = vxor.u32 2147483648, %v6083_v22  ;;  %v1888_v63 = vsub.s32 32, %v1887_v55  ;;  %v1893_v20 = vadd.s32 127, %v1892_v2  ;;  %vm560_vm3 = vcmp.eq.s32.totalorder %v558_v8, 0 }
 0x204   : > { %v6084_v53 = vand.u32 2147483647, %v4027_v58  ;;  %vm2966_vm0 = vcmp.lt.s32.totalorder %v2965_v45, 0  ;;  %v446_v0 = vsub.s32 4, %v5283_v35  ;;  %v562_v33 = vsel %vm560_vm3, %v6081_v51, %v561_v13  ;;  %v5358_v52 = vpop.eup %3532  ;;  %v6091_v51 = vld [vmem:[#allocation17_spill] sm:$0xff] }
 0x205   : > { %vm6088_vm7 = vcmp.lt.s32.totalorder %v6087_v10, 0  ;;  %v1894_v1 = vshll.u32 %v1893_v20, 23  ;;  %v431_v54 = vsel %vm2966_vm0, 0, %v2965_v45  ;;  %vm563_vm11 = vcmp.eq.s32.totalorder %v558_v8, 2 }
 0x206   : > { %vm5349_vm1 = vcmp.le.f32.partialorder %v6084_v53, 0.7853982  ;;  %v759_v60 = vsel %vm6088_vm7, %v758_v3, %v6080_v56  ;;  %v862_v47 = vsub.s32 4, %v6089_v18  ;;  %v5361_v36 = vpop.eup %3534  ;;  %v432_v59 = vsub.s32 32, %v431_v54 }
 0x207   : > { %v436_v49 = vsub.s32 4294967266, %v431_v54  ;;  %vm556_vm5 = vweird.f32 %v6064_v48  ;;  %v565_v23 = vsel %vm563_vm11, %v564_v61, %v4624_v42  ;;  %vm664_vm3 = vcmp.eq.s32.totalorder %v662_v26, 0  ;;  %v5365_v13 = vpop.eup %3536 }
 0x208   : > { %v1890_v2 = vshrl.u32 %v1872_v28, %v1888_v63  ;;  %vm667_vm7 = vcmp.eq.s32.totalorder %v662_v26, 2  ;;  %v761_v3 = vsel %vm4354_vm2, 0, %v759_v60  ;;  %v966_v45 = vsub.s32 4, %v6091_v51  ;;  %v6093_v60 = vld [vmem:[#allocation14_spill] sm:$0xff] }
 0x209   : > { %v433_v20 = vshll.u32 %v5309_v24, %v431_v54  ;;  %v434_v53 = vshrl.u32 %v416_v6, %v432_v59  ;;  %v437_v29 = vadd.s32 127, %v436_v49  ;;  %vm6092_vm0 = vcmp.lt.s32.totalorder %v4027_v58, 0  ;;  %v5375_v42 = vpop.eup %3538 }
 0x20a   : > { %v447_v9 = vsel %vm6092_vm0, %v446_v0, %v5283_v35  ;;  %vm660_vm11 = vweird.f32 %v6070_v38  ;;  %v1889_v28 = vshll.u32 %v5271_v17, %v1887_v55  ;;  %v1895_v61 = vor.u32 4788187, %v1894_v1  ;;  %v5382_v24 = vpop.eup %3540  ;;  %v6096_v55 = vld [vmem:[#allocation12_spill] sm:$0xff] }
 0x20b   : > { %v666_v63 = vsel %vm664_vm3, %v6083_v22, %v665_v39  ;;  %vm6094_vm2 = vcmp.lt.s32.totalorder %v6093_v60, 0  ;;  %v435_v6 = vor.u32 %v434_v53, %v433_v20  ;;  %v438_v54 = vshll.u32 %v437_v29, 23  ;;  %v5386_v59 = vpop.eup %3542  ;;  %v6099_v29 = vld [vmem:[#allocation22_spill] sm:$0xff] }
 0x20c   : > { %v863_v56 = vsel %vm6094_vm2, %v862_v47, %v6089_v18  ;;  %v669_v35 = vsel %vm667_vm7, %v668_v31, %v6082_v32  ;;  %v765_v0 = vadd.s32 3, %v761_v3  ;;  %3544 = vcosq.f32 %v2008_v19 }
 0x20d   : > { %v1891_v49 = vor.u32 %v1890_v2, %v1889_v28  ;;  %vm6095_vm0 = vcmp.lt.s32.totalorder %v558_v8, 2  ;;  %vm6097_vm3 = vcmp.lt.s32.totalorder %v6096_v55, 0  ;;  %v439_v22 = vor.u32 4788187, %v438_v54 }
 0x20e   : > { %v566_v17 = vsel %vm6095_vm0, %v562_v33, %v565_v23  ;;  %v967_v39 = vsel %vm6097_vm3, %v966_v45, %v6091_v51  ;;  %vm663_vm2 = vcmp.lt.s32.totalorder %v662_v26, 2  ;;  %v865_v18 = vsel %vm4616_vm13, 0, %v863_v56  ;;  %v6101_v45 = vld [vmem:[#allocation29_spill] sm:$0xff] }
 0x20f   : > { %v1070_v47 = vsub.s32 4, %v6099_v29  ;;  %3546 = vsinq.f32 %v2008_v19  ;;  %v1896_v32 = vand.u32 2147483647, %v1895_v61  ;;  %v449_v31 = vsel %vm5349_vm1, 0, %v447_v9  ;;  %v6102_v9 = vld [vmem:[#allocation27_spill] sm:$0xff] }
 0x210   : > { %v670_v3 = vsel %vm663_vm2, %v666_v63, %v669_v35  ;;  %v440_v2 = vand.u32 2147483647, %v439_v22  ;;  %v442_v8 = vcvt.s32.f32 %v435_v6  ;;  %v766_v33 = vand.u32 3, %v765_v0  ;;  %v6104_v35 = vld [vmem:[#allocation19_spill] sm:$0xff] }
 0x211   : > { %v969_v20 = vsel %vm4516_vm12, 0, %v967_v39  ;;  %v1898_v51 = vcvt.s32.f32 %v1891_v49  ;;  %v5401_v26 = vsel %vm556_vm5, nan, %v566_v17  ;;  %v769_v53 = vxor.u32 2147483648, %v6101_v45  ;;  %v6105_v39 = vld [vmem:[#allocation38_spill] sm:$0xff] }
 0x212   : > { %v869_v28 = vadd.s32 3, %v865_v18  ;;  %vm5937_vm13 = vcmp.lt.s32.totalorder %v4942_v44, 0  ;;  %v443_v19 = vmul.f32 %v442_v8, %v440_v2  ;;  %v453_v61 = vadd.s32 3, %v449_v31  ;;  %v6111_v2 = vld [vmem:[#allocation16_spill] sm:$0xff]  ;;  %v6115_v18 = vld [vmem:[#allocation33_spill] sm:$0xff] }
 0x213   : > { %v772_v63 = vxor.u32 2147483648, %v6102_v9  ;;  %vm6103_vm7 = vcmp.lt.s32.totalorder %v4228_v14, 0  ;;  %v1899_v6 = vmul.f32 %v1898_v51, %v1896_v32  ;;  %v5411_v54 = vsel %vm660_vm11, nan, %v670_v3 }
 0x214   : > { %v1071_v56 = vsel %vm6103_vm7, %v1070_v47, %v6099_v29  ;;  %v973_v48 = vadd.s32 3, %v969_v20  ;;  %v1174_v0 = vsub.s32 4, %v6104_v35  ;;  %v444_v49 = vxor.u32 2147483648, %v443_v19 }
 0x215   : > { %vm767_vm12 = vcmp.lt.s32.totalorder %v766_v33, 2  ;;  %v873_v17 = vxor.u32 2147483648, %v4890_v21  ;;  %v876_v22 = vxor.u32 2147483648, %v6105_v39  ;;  %vm768_vm5 = vcmp.eq.s32.totalorder %v766_v33, 0 }
 0x216   : > { %vm771_vm0 = vcmp.eq.s32.totalorder %v766_v33, 2  ;;  %v870_v1 = vand.u32 3, %v869_v28  ;;  %v1073_v29 = vsel %vm4815_vm15, 0, %v1071_v56  ;;  %v6107_v47 = vand.u32 2147483647, %v4942_v44  ;;  %v6113_v28 = vld [vmem:[#allocation30_spill] sm:$0xff] }
 0x217   : > { %vm6110_vm11 = vcmp.lt.s32.totalorder %v4027_v58, 0  ;;  %vm764_vm2 = vweird.f32 %v6087_v10  ;;  %v770_v31 = vsel %vm768_vm5, %v6102_v9, %v769_v53  ;;  %v773_v3 = vsel %vm771_vm0, %v772_v63, %v6101_v45  ;;  %v6122_v45 = vld [vmem:[#allocation43_spill] sm:$0xff] }
 0x218   : > { %vm5420_vm3 = vcmp.le.f32.partialorder %v6107_v47, 0.7853982  ;;  %v445_v32 = vsel %vm6110_vm11, %v444_v49, %v443_v19  ;;  %vm6112_vm7 = vcmp.lt.s32.totalorder %v6111_v2, 0  ;;  %v1900_v23 = vxor.u32 2147483648, %v1899_v6  ;;  %v6114_v19 = vld [vmem:[#allocation35_spill] sm:$0xff] }
 0x219   : > { %v1175_v8 = vsel %vm6112_vm7, %v1174_v0, %v6104_v35  ;;  %v448_v20 = vsel %vm5349_vm1, %v4027_v58, %v445_v32  ;;  %v974_v51 = vand.u32 3, %v973_v48  ;;  %v1278_v56 = vsub.s32 4, %v6113_v28  ;;  %v5440_v63 = vpop.eup %3544 }
 0x21a   : > { %3548 = vcosq.f32 %v448_v20  ;;  %v977_v49 = vxor.u32 2147483648, %v6114_v19  ;;  %v980_v47 = vxor.u32 2147483648, %v6115_v18  ;;  %v1077_v53 = vadd.s32 3, %v1073_v29 }
 0x21b   : > { %3550 = vsinq.f32 %v448_v20  ;;  %vm872_vm15 = vcmp.eq.s32.totalorder %v870_v1, 0  ;;  %vm875_vm5 = vcmp.eq.s32.totalorder %v870_v1, 2  ;;  %v1177_v9 = vsel %vm4711_vm9, 0, %v1175_v8  ;;  %v6120_v20 = vld [vmem:[#allocation26_spill] sm:$0xff] }
 0x21c   : > { %v5442_v35 = vand.u32 3, %v453_v61  ;;  %v774_v25 = vsel %vm767_vm12, %v770_v31, %v773_v3  ;;  %v874_v48 = vsel %vm872_vm15, %v6105_v39, %v873_v17  ;;  %v877_v0 = vsel %vm875_vm5, %v876_v22, %v4890_v21  ;;  %v5452_v8 = vpop.eup %3546  ;;  %v6118_v21 = vld [vmem:[#allocation45_spill] sm:$0xff] }
 0x21d   : > { %v1901_v32 = vsel %vm5937_vm13, %v1900_v23, %v1899_v6  ;;  %vm976_vm1 = vcmp.eq.s32.totalorder %v974_v51, 0  ;;  %vm979_vm0 = vcmp.eq.s32.totalorder %v974_v51, 2  ;;  %vm6117_vm11 = vcmp.lt.s32.totalorder %v4371_v7, 0  ;;  %v6119_v6 = vld [vmem:[#allocation44_spill] sm:$0xff] }
 0x21e   : > { %v1279_v29 = vsel %vm6117_vm11, %v1278_v56, %v6113_v28  ;;  %v978_v61 = vsel %vm976_vm1, %v6115_v18, %v977_v49  ;;  %v981_v33 = vsel %vm979_vm0, %v980_v47, %v6114_v19  ;;  %v1078_v31 = vand.u32 3, %v1077_v53 }
 0x21f   : > { %v1181_v3 = vadd.s32 3, %v1177_v9  ;;  %vm868_vm9 = vweird.f32 %v6093_v60  ;;  %vm871_vm12 = vcmp.lt.s32.totalorder %v870_v1, 2  ;;  %v1081_v17 = vxor.u32 2147483648, %v6118_v21 }
 0x220   : > { %v1084_v39 = vxor.u32 2147483648, %v6119_v6  ;;  %v878_v22 = vsel %vm871_vm12, %v874_v48, %v877_v0  ;;  %vm975_vm7 = vcmp.lt.s32.totalorder %v974_v51, 2  ;;  %v1281_v23 = vsel %vm5168_vm10, 0, %v1279_v29  ;;  %v6121_v51 = vld [vmem:[#allocation37_spill] sm:$0xff] }
 0x221   : > { %v1382_v28 = vsub.s32 4, %v6120_v20  ;;  %v1904_v56 = vsel %vm5420_vm3, %v4942_v44, %v1901_v32  ;;  %vm459_vm15 = vcmp.eq.s32.totalorder %v5442_v35, 2  ;;  %v5468_v1 = vsel %vm764_vm2, nan, %v774_v25  ;;  %v6123_v25 = vld [vmem:[#allocation42_spill] sm:$0xff] }
 0x222   : > { %vm972_vm5 = vweird.f32 %v6096_v55  ;;  %v982_v19 = vsel %vm975_vm7, %v978_v61, %v981_v33  ;;  %vm456_vm1 = vcmp.eq.s32.totalorder %v5442_v35, 0  ;;  %vm1080_vm0 = vcmp.eq.s32.totalorder %v1078_v31, 0  ;;  %v6126_v61 = vld [vmem:[#allocation34_spill] sm:$0xff] }
 0x223   : > { %vm1083_vm11 = vcmp.eq.s32.totalorder %v1078_v31, 2  ;;  %v1182_v41 = vand.u32 3, %v1181_v3  ;;  %v1486_v49 = vsub.s32 4, %v6121_v51  ;;  %vm455_vm10 = vcmp.lt.s32.totalorder %v5442_v35, 2 }
 0x224   : > { %v5476_v18 = vsel %vm868_vm9, nan, %v878_v22  ;;  %v1082_v10 = vsel %vm1080_vm0, %v6119_v6, %v1081_v17  ;;  %v1085_v47 = vsel %vm1083_vm11, %v1084_v39, %v6118_v21  ;;  %v1285_v53 = vadd.s32 3, %v1281_v23  ;;  %v6128_v6 = vld [vmem:[#allocation51_spill] sm:$0xff] }
 0x225   : > { %3552 = vcosq.f32 %v1904_v56  ;;  %vm452_vm2 = vweird.f32 %v4027_v58  ;;  %v1185_v9 = vxor.u32 2147483648, %v6122_v45  ;;  %v1188_v48 = vxor.u32 2147483648, %v6123_v25 }
 0x226   : > { %vm6124_vm7 = vcmp.lt.s32.totalorder %v4279_v43, 0  ;;  %3554 = vsinq.f32 %v1904_v56  ;;  %v5488_v60 = vsel %vm972_vm5, nan, %v982_v19  ;;  %vm1076_vm9 = vweird.f32 %v4228_v14 }
 0x227   : > { %v1383_v0 = vsel %vm6124_vm7, %v1382_v28, %v6120_v20  ;;  %vm1079_vm0 = vcmp.lt.s32.totalorder %v1078_v31, 2  ;;  %vm1180_vm11 = vweird.f32 %v6111_v2  ;;  %vm1184_vm13 = vcmp.eq.s32.totalorder %v1182_v41, 0  ;;  %v3549_v3 = vpop.eup %3548 }
 0x228   : > { %v1086_v32 = vsel %vm1079_vm0, %v1082_v10, %v1085_v47  ;;  %vm6125_vm12 = vcmp.lt.s32.totalorder %v4560_v11, 0  ;;  %v1590_v33 = vsub.s32 4, %v6126_v61  ;;  %vm1187_vm7 = vcmp.eq.s32.totalorder %v1182_v41, 2  ;;  %v3551_v22 = vpop.eup %3550 }
 0x229   : > { %v1487_v29 = vsel %vm6125_vm12, %v1486_v49, %v6121_v51  ;;  %v1286_v21 = vand.u32 3, %v1285_v53  ;;  %v1385_v55 = vsel %vm5001_vm8, 0, %v1383_v0  ;;  %v1694_v39 = vsub.s32 4, %v6128_v6 }
 0x22a   : > { %v460_v31 = vxor.u32 2147483648, %v3549_v3  ;;  %v1186_v23 = vsel %vm1184_vm13, %v6123_v25, %v1185_v9  ;;  %v1189_v20 = vsel %vm1187_vm7, %v1188_v48, %v6122_v45  ;;  %v1289_v28 = vxor.u32 2147483648, %v5331_v50 }
 0x22b   : > { %v457_v56 = vxor.u32 2147483648, %v3551_v22  ;;  %v5504_v19 = vsel %vm1076_vm9, nan, %v1086_v32  ;;  %v1292_v51 = vxor.u32 2147483648, %v5324_v15  ;;  %v1489_v49 = vsel %vm5226_vm4, 0, %v1487_v29  ;;  %v6131_v29 = vld [vmem:[#allocation41_spill] sm:$0xff] }
 0x22c   : > { %v461_v10 = vsel %vm459_vm15, %v460_v31, %v3551_v22  ;;  %vm1183_vm8 = vcmp.lt.s32.totalorder %v1182_v41, 2  ;;  %v1389_v47 = vadd.s32 3, %v1385_v55  ;;  %vm6129_vm13 = vcmp.lt.s32.totalorder %v4504_v46, 0 }
 0x22d   : > { %v1591_v53 = vsel %vm6129_vm13, %v1590_v33, %v6126_v61  ;;  %v458_v45 = vsel %vm456_vm1, %v3549_v3, %v457_v56  ;;  %v1190_v14 = vsel %vm1183_vm8, %v1186_v23, %v1189_v20  ;;  %vm1288_vm5 = vcmp.eq.s32.totalorder %v1286_v21, 0  ;;  %v2390_v3 = vpop.f32.mrf.mxu1 }
 0x22e   : > { %vm6130_vm12 = vcmp.lt.s32.totalorder %v4807_v37, 0  ;;  %v462_v40 = vsel %vm455_vm10, %v458_v45, %v461_v10  ;;  %v1290_v25 = vsel %vm1288_vm5, %v5324_v15, %v1289_v28  ;;  %vm1291_vm4 = vcmp.eq.s32.totalorder %v1286_v21, 2  ;;  %v6141_v10 = vld [vmem:[#allocation62_spill] sm:$0xff]  ;;  %v6143_v45 = vld [vmem:[#allocation40_spill] sm:$0xff] }
 0x22f   : > { %v1695_v9 = vsel %vm6130_vm12, %v1694_v39, %v6128_v6  ;;  %v1493_v41 = vadd.s32 3, %v1489_v49  ;;  %v463_v48 = vsel %vm452_vm2, nan, %v462_v40  ;;  %v1293_v0 = vsel %vm1291_vm4, %v1292_v51, %v5331_v50  ;;  %v6135_v39 = vld [vmem:[#allocation63_spill] sm:$0xff] }
 0x230   : > { %v1593_v32 = vsel %vm5189_vm14, 0, %v1591_v53  ;;  %v1798_v61 = vsub.s32 4, %v6131_v29  ;;  %vm6132_vm15 = vcmask 261120   ;;  %vm1284_vm1 = vweird.f32 %v4371_v7  ;;  %v6146_v40 = vld [vmem:[#allocation15_spill] sm:$0xff] }
 0x231   : > { %3173 = vmatprep.mubr.msk.f32.mxu0 %vm6132_vm15, %v463_v48  ;;  %v1390_v35 = vand.u32 3, %v1389_v47  ;;  %v1697_v15 = vsel %vm5301_vm6, 0, %v1695_v9  ;;  %v1902_v33 = vsub.s32 4, %v5256_v16  ;;  %vm6133_vm10 = vmmov %vm6132_vm15  ;;  %v1191_v58 = vsel %vm1180_vm11, nan, %v1190_v14  ;;  %v6142_v47 = vld [vmem:[#allocation60_spill] sm:$0xff]  ;;  %v6148_v48 = vld [vmem:[#allocation61_spill] sm:$0xff] }
 0x232   : > { %3174 = vmatmul.mubr.msk.f32.vlgmr.msra.gmra.mxu0 %vm6133_vm10, %v5401_v26  ;;  %vm1287_vm14 = vcmp.lt.s32.totalorder %v1286_v21, 2  ;;  %v1393_v27 = vxor.u32 2147483648, %v5314_v34  ;;  %v1396_v50 = vxor.u32 2147483648, %v5297_v30  ;;  %vm6134_vm2 = vmmov %vm6133_vm10  ;;  %v1494_v5 = vand.u32 3, %v1493_v41  ;;  %v5543_v22 = vpop.eup %3552 }
 0x233   : > { %3176 = vmatprep.mubr.msk.f32.mxu0 %vm6134_vm2, %v5411_v54  ;;  %v1294_v17 = vsel %vm1287_vm14, %v1290_v25, %v1293_v0  ;;  %v1497_v55 = vxor.u32 2147483648, %v5361_v36  ;;  %v1597_v6 = vadd.s32 3, %v1593_v32  ;;  %3254 = vmatpush3.xpose.msra.mxu0 %v6135_v39  ;;  %v1500_v26 = vxor.u32 2147483648, %v5358_v52  ;;  %v5550_v54 = vpop.eup %3554  ;;  %vm6138_vm7 = vmmov %vm6134_vm2  ;;  %v6154_v39 = vld [vmem:[#allocation59_spill] sm:$0xff] }
 0x234   : > { %v1601_v2 = vxor.u32 2147483648, %v5345_v12  ;;  %v1701_v21 = vadd.s32 3, %v1697_v15  ;;  %vm6136_vm6 = vcmp.lt.s32.totalorder %v4607_v62, 0  ;;  %3255 = vmatprep.subr.mxu0 %v2390_v3  ;;  %vm1392_vm9 = vcmp.eq.s32.totalorder %v1390_v35, 0  ;;  %vm6140_vm13 = vmmov %vm6134_vm2 }
 0x235   : > { %v1799_v31 = vsel %vm6136_vm6, %v1798_v61, %v6131_v29  ;;  %vm1395_vm0 = vcmp.eq.s32.totalorder %v1390_v35, 2  ;;  %v1604_v23 = vxor.u32 2147483648, %v5335_v57  ;;  %vm6137_vm11 = vcmp.lt.s32.totalorder %v4942_v44, 0  ;;  %vm6145_vm10 = vmmov %vm6134_vm2 }
 0x236   : > { %v1903_v20 = vsel %vm6137_vm11, %v1902_v33, %v5256_v16  ;;  %3177 = vmatmul.mubr.msk.f32.gmra.mxu0 %vm6138_vm7, %v5468_v1  ;;  %v1394_v28 = vsel %vm1392_vm9, %v5297_v30, %v1393_v27  ;;  %v1397_v56 = vsel %vm1395_vm0, %v1396_v50, %v5314_v34  ;;  %vm6139_vm8 = vnez %v6068_v4 }
 0x237   : > { %v1801_v51 = vsel %vm6139_vm8, 0, %v1799_v31  ;;  %v1905_v49 = vsel %vm5420_vm3, 0, %v1903_v20  ;;  %3179 = vmatprep.mubr.msk.f32.mxu0 %vm6140_vm13, %v5476_v18  ;;  %vm1388_vm5 = vweird.f32 %v4279_v43  ;;  %vm1496_vm12 = vcmp.eq.s32.totalorder %v1494_v5, 0  ;;  %3256 = vmatpush3.xpose.msra.mxu0 %v2390_v3  ;;  %vm6149_vm8 = vmmov %vm6134_vm2  ;;  %v6151_v3 = vld [vmem:[#allocation58_spill] sm:$0xff]  ;;  %v6166_v20 = vld [vmem:[#allocation48_spill] sm:$0xff] }
 0x238   : > { %vm1499_vm4 = vcmp.eq.s32.totalorder %v1494_v5, 2  ;;  %v1598_v16 = vand.u32 3, %v1597_v6  ;;  %v2006_v1 = vsub.s32 4, %v6141_v10  ;;  %vm1391_vm15 = vcmp.lt.s32.totalorder %v1390_v35, 2  ;;  %3257 = vmatprep.subr.mxu0 %v6142_v47  ;;  %vm6150_vm13 = vmmov %vm6134_vm2 }
 0x239   : > { %v1498_v30 = vsel %vm1496_vm12, %v5358_v52, %v1497_v55  ;;  %v1501_v4 = vsel %vm1499_vm4, %v1500_v26, %v5361_v36  ;;  %v1702_v34 = vand.u32 3, %v1701_v21  ;;  %v1705_v38 = vxor.u32 2147483648, %v5386_v59 }
 0x23a   : > { %v1805_v53 = vadd.s32 3, %v1801_v51  ;;  %v1909_v18 = vadd.s32 3, %v1905_v49  ;;  %vm6144_vm3 = vcmp.lt.s32.totalorder %v6143_v45, 0  ;;  %3180 = vmatmul.mubr.msk.f32.gmra.mxu0 %vm6145_vm10, %v5488_v60  ;;  %v1295_v9 = vsel %vm1284_vm1, nan, %v1294_v17  ;;  %v6169_v51 = vld [vmem:[#allocation47_spill] sm:$0xff] }
 0x23b   : > { %v2007_v14 = vsel %vm6144_vm3, %v2006_v1, %v6141_v10  ;;  %v1398_v52 = vsel %vm1391_vm15, %v1394_v28, %v1397_v56  ;;  %vm1492_vm14 = vweird.f32 %v4560_v11  ;;  %v1708_v36 = vxor.u32 2147483648, %v5382_v24  ;;  %3182 = vmatprep.mubr.msk.f32.mxu0 %vm6134_vm2, %v5504_v19  ;;  %3258 = vmatpush3.xpose.msra.mxu0 %v6142_v47  ;;  %v6167_v28 = vld [vmem:[#allocation49_spill] sm:$0xff]  ;;  %v6168_v56 = vld [vmem:[#allocation46_spill] sm:$0xff] }
 0x23c   : > { %vm1495_vm6 = vcmp.lt.s32.totalorder %v1494_v5, 2  ;;  %vm1600_vm9 = vcmp.eq.s32.totalorder %v1598_v16, 0  ;;  %vm1603_vm0 = vcmp.eq.s32.totalorder %v1598_v16, 2  ;;  %vm6147_vm11 = vnez %v6146_v40  ;;  %3259 = vmatprep.subr.mxu0 %v6148_v48 }
 0x23d   : > { %v2009_v25 = vsel %vm6147_vm11, 0, %v2007_v14  ;;  %v1502_v60 = vsel %vm1495_vm6, %v1498_v30, %v1501_v4  ;;  %v1602_v7 = vsel %vm1600_vm9, %v5335_v57, %v1601_v2  ;;  %v1605_v41 = vsel %vm1603_vm0, %v1604_v23, %v5345_v12  ;;  %vm6152_vm6 = vmmov %vm6149_vm8  ;;  %v6157_v2 = vld [vmem:[#allocation56_spill] sm:$0xff] }
 0x23e   : > { %vm1704_vm1 = vcmp.eq.s32.totalorder %v1702_v34, 0  ;;  %vm1707_vm7 = vcmp.eq.s32.totalorder %v1702_v34, 2  ;;  %v1806_v19 = vand.u32 3, %v1805_v53  ;;  %v1910_v32 = vand.u32 3, %v1909_v18  ;;  %3183 = vmatmul.mubr.msk.f32.gmra.mxu0 %vm6149_vm8, %v1191_v58  ;;  %v6165_v23 = vld [vmem:[#allocation52_spill] sm:$0xff] }
 0x23f   : > { %v1706_v0 = vsel %vm1704_vm1, %v5382_v24, %v1705_v38  ;;  %v1709_v29 = vsel %vm1707_vm7, %v1708_v36, %v5386_v59  ;;  %v1913_v61 = vxor.u32 2147483648, %v5550_v54  ;;  %v1916_v35 = vxor.u32 2147483648, %v5543_v22  ;;  %3185 = vmatprep.mubr.msk.f32.mxu0 %vm6150_vm13, %v1295_v9  ;;  %3260 = vmatpush3.xpose.msra.mxu0 %v6148_v48 }
 0x240   : > { %v2013_v15 = vadd.s32 3, %v2009_v25  ;;  %vm1599_vm12 = vcmp.lt.s32.totalorder %v1598_v16, 2  ;;  %vm1700_vm4 = vweird.f32 %v4807_v37  ;;  %v1809_v57 = vxor.u32 2147483648, %v5375_v42  ;;  %3261 = vmatprep.subr.mxu0 %v6151_v3 }
 0x241   : > { %v1812_v12 = vxor.u32 2147483648, %v5365_v13  ;;  %v1399_v24 = vsel %vm1388_vm5, nan, %v1398_v52  ;;  %v1503_v59 = vsel %vm1492_vm14, nan, %v1502_v60  ;;  %v1606_v33 = vsel %vm1599_vm12, %v1602_v7, %v1605_v41  ;;  %vm6153_vm5 = vmmov %vm6152_vm6 }
 0x242   : > { %vm1703_vm15 = vcmp.lt.s32.totalorder %v1702_v34, 2  ;;  %vm1808_vm3 = vcmp.eq.s32.totalorder %v1806_v19, 0  ;;  %vm1912_vm10 = vcmp.eq.s32.totalorder %v1910_v32, 0  ;;  %vm1915_vm2 = vcmp.eq.s32.totalorder %v1910_v32, 2  ;;  %3186 = vmatmul.mubr.msk.f32.gmra.mxu0 %vm6152_vm6, %v1399_v24  ;;  %vm6155_vm1 = vmmov %vm6153_vm5 }
 0x243   : > { %v1710_v58 = vsel %vm1703_vm15, %v1706_v0, %v1709_v29  ;;  %vm1811_vm9 = vcmp.eq.s32.totalorder %v1806_v19, 2  ;;  %v1914_v27 = vsel %vm1912_vm10, %v5543_v22, %v1913_v61  ;;  %v1917_v50 = vsel %vm1915_vm2, %v1916_v35, %v5550_v54  ;;  %3188 = vmatprep.mubr.msk.f32.mxu0 %vm6153_vm5, %v1503_v59  ;;  %3262 = vmatpush3.xpose.msra.mxu0 %v6151_v3  ;;  %vm6156_vm13 = vmmov %vm6155_vm1  ;;  %v6164_v54 = vld [vmem:[#allocation50_spill] sm:$0xff] }
 0x244   : > { %v2014_v43 = vand.u32 3, %v2013_v15  ;;  %v1810_v11 = vsel %vm1808_vm3, %v5365_v13, %v1809_v57  ;;  %v1813_v17 = vsel %vm1811_vm9, %v1812_v12, %v5375_v42  ;;  %v2017_v5 = vxor.u32 2147483648, %v5452_v8  ;;  %3263 = vmatprep.subr.mxu0 %v6154_v39  ;;  %vm6158_vm3 = vmmov %vm6155_vm1 }
 0x245   : > { %v2020_v55 = vxor.u32 2147483648, %v5440_v63  ;;  %vm1596_vm14 = vweird.f32 %v4504_v46  ;;  %v1711_v6 = vsel %vm1700_vm4, nan, %v1710_v58  ;;  %vm1911_vm0 = vcmp.lt.s32.totalorder %v1910_v32, 2  ;;  %vm6159_vm10 = vmmov %vm6155_vm1 }
 0x246   : > { %v1607_v22 = vsel %vm1596_vm14, nan, %v1606_v33  ;;  %vm1807_vm11 = vcmp.lt.s32.totalorder %v1806_v19, 2  ;;  %v1918_v26 = vsel %vm1911_vm0, %v1914_v27, %v1917_v50  ;;  %vm2016_vm7 = vcmp.eq.s32.totalorder %v2014_v43, 0  ;;  %vm6161_vm6 = vmmov %vm6155_vm1 }
 0x247   : > { %3189 = vmatmul.mubr.msk.f32.gmra.mxu0 %vm6155_vm1, %v1607_v22  ;;  %v1814_v13 = vsel %vm1807_vm11, %v1810_v11, %v1813_v17  ;;  %vm2019_vm8 = vcmp.eq.s32.totalorder %v2014_v43, 2  ;;  %vm1908_vm12 = vweird.f32 %v4942_v44  ;;  %v2018_v46 = vsel %vm2016_vm7, %v5440_v63, %v2017_v5  ;;  %v6160_v44 = vld [vmem:[#allocation57_spill] sm:$0xff] }
 0x248   : > { %3191 = vmatprep.mubr.msk.f32.mxu0 %vm6156_vm13, %v1711_v6  ;;  %v2021_v37 = vsel %vm2019_vm8, %v2020_v55, %v5452_v8  ;;  %3264 = vmatpush3.xpose.msra.mxu0 %v6154_v39  ;;  %vm1804_vm4 = vweird.f32 %v4607_v62  ;;  %v1919_v42 = vsel %vm1908_vm12, nan, %v1918_v26  ;;  %vm2015_vm15 = vcmp.lt.s32.totalorder %v2014_v43, 2  ;;  %v6162_v62 = vld [vmem:[#allocation53_spill] sm:$0xff]  ;;  %v6163_v8 = vld [vmem:[#allocation54_spill] sm:$0xff] }
 0x249   : > { %3265 = vmatprep.subr.mxu0 %v6157_v2  ;;  %v1815_v21 = vsel %vm1804_vm4, nan, %v1814_v13  ;;  %v2022_v31 = vsel %vm2015_vm15, %v2018_v46, %v2021_v37  ;;  %vm2012_vm2 = vweird.f32 %v6143_v45 }
 0x24a   : > { %v2023_v63 = vsel %vm2012_vm2, nan, %v2022_v31 }
 0x24b   : > { %3192 = vmatmul.mubr.msk.f32.gmra.mxu0 %vm6158_vm3, %v1815_v21 }
 0x24c   : > { %3194 = vmatprep.mubr.msk.f32.mxu0 %vm6159_vm10, %v1919_v42  ;;  %3266 = vmatpush3.xpose.msra.mxu0 %v6157_v2 }
 0x24d   : > { %3267 = vmatprep.subr.mxu0 %v6160_v44 }
 0x24f   : > { %3195 = vmatmul.mubr.msk.f32.gmra.mxu0 %vm6161_vm6, %v2023_v63 }
 0x250   : > { %3268 = vmatpush3.xpose.msra.mxu0 %v6160_v44 }
 0x251   : > { %3269 = vmatprep.subr.mxu0 %v6162_v62 }
 0x254   : > { %3270 = vmatpush3.xpose.msra.mxu0 %v6162_v62 }
 0x255   : > { %3271 = vmatprep.subr.mxu0 %v6163_v8 }
 0x258   : > { %3272 = vmatpush3.xpose.msra.mxu0 %v6163_v8 }
 0x259   : > { %3273 = vmatprep.subr.mxu0 %v6164_v54 }
 0x25c   : > { %3274 = vmatpush3.xpose.msra.mxu0 %v6164_v54 }
 0x25d   : > { %3275 = vmatprep.subr.mxu0 %v6165_v23 }
 0x260   : > { %3276 = vmatpush3.xpose.msra.mxu0 %v6165_v23 }
 0x261   : > { %3277 = vmatprep.subr.mxu0 %v6166_v20 }
 0x264   : > { %3278 = vmatpush3.xpose.msra.mxu0 %v6166_v20 }
 0x265   : > { %3279 = vmatprep.subr.mxu0 %v6167_v28 }
 0x268   : > { %3280 = vmatpush3.xpose.msra.mxu0 %v6167_v28 }
 0x269   : > { %3281 = vmatprep.subr.mxu0 %v6168_v56 }
 0x26c   : > { %3282 = vmatpush3.xpose.msra.mxu0 %v6168_v56 }
 0x26d   : > { %3283 = vmatprep.subr.mxu0 %v6169_v51 }
 0x270   : > { %3284 = vmatpush3.xpose.msra.mxu0 %v6169_v51 }
 0x2f2   : > { %v3175_v49 = vpop.f32.mrf.mxu0 }
 0x2f4   : > { %v2143_v16 = vpop.f32.mrf.mxu0 }
 0x2f5   : > { %3285 = vmatprep.mubr.f32.mxu0 %v2143_v16 }
 0x2f6   : > { %v3178_v10 = vpop.f32.mrf.mxu0  ;;  %3286 = vmatmul.mubr.f32.vlgmr.msra.gmra.mxu0 %v3175_v49 }
 0x2f8   : > { %v2153_v1 = vpop.f32.mrf.mxu0 }
 0x2f9   : > { %3288 = vmatprep.mubr.f32.mxu0 %v2153_v1 }
 0x2fa   : > { %v3181_v30 = vpop.f32.mrf.mxu0  ;;  %3289 = vmatmul.mubr.f32.gmra.mxu0 %v3178_v10 }
 0x2fc   : > { %v2163_v4 = vpop.f32.mrf.mxu0 }
 0x2fd   : > { %3291 = vmatprep.mubr.f32.mxu0 %v2163_v4 }
 0x2fe   : > { %v3184_v34 = vpop.f32.mrf.mxu0  ;;  %3292 = vmatmul.mubr.f32.gmra.mxu0 %v3181_v30 }
 0x300   : > { %v2173_v47 = vpop.f32.mrf.mxu0 }
 0x301   : > { %3294 = vmatprep.mubr.f32.mxu0 %v2173_v47 }
 0x302   : > { %v3187_v38 = vpop.f32.mrf.mxu0  ;;  %3295 = vmatmul.mubr.f32.gmra.mxu0 %v3184_v34 }
 0x304   : > { %v2183_v53 = vpop.f32.mrf.mxu0 }
 0x305   : > { %3297 = vmatprep.mubr.f32.mxu0 %v2183_v53 }
 0x306   : > { %3298 = vmatmul.mubr.f32.gmra.mxu0 %v3187_v38 }
 0x307   : > { %v3190_v18 = vpop.f32.mrf.mxu0 }
 0x309   : > { %v2193_v45 = vpop.f32.mrf.mxu0 }
 0x30a   : > { %3300 = vmatprep.mubr.f32.mxu0 %v2193_v45 }
 0x30b   : > { %v3193_v14 = vpop.f32.mrf.mxu0  ;;  %3301 = vmatmul.mubr.f32.gmra.mxu0 %v3190_v18 }
 0x30d   : > { %v2203_v9 = vpop.f32.mrf.mxu0 }
 0x30e   : > { %3303 = vmatprep.mubr.f32.mxu0 %v2203_v9 }
 0x30f   : > { %v3196_v52 = vpop.f32.mrf.mxu0  ;;  %3304 = vmatmul.mubr.f32.gmra.mxu0 %v3193_v14 }
 0x311   : > { %v2213_v36 = vpop.f32.mrf.mxu0 }
 0x312   : > { %3306 = vmatprep.mubr.f32.mxu0 %v2213_v36 }
 0x313   : > { %3307 = vmatmul.mubr.f32.gmra.mxu0 %v3196_v52 }
 0x3b6   : > { %v3287_v40 = vpop.f32.mrf.mxu0 }
 0x3b7   : > { %v2545_v25 = vmul.f32 0.088388346, %v3287_v40 }
 0x3b8   : > { %v2465_v60 = vpop.f32.mrf.mxu0 }
 0x3b9   : > { %v2544_v7 = vmul.f32 0.088388346, %v2465_v60  ;;  %2562 = vmax.xlane.f32.xlu1 %v2545_v25 }
 0x3ba   : > { %v3290_v41 = vpop.f32.mrf.mxu0 }
 0x3bb   : > { %2560 = vmax.xlane.f32.xlu0 %v2544_v7  ;;  %v2547_v29 = vmul.f32 0.088388346, %v3290_v41 }
 0x3bc   : > { %v2475_v48 = vpop.f32.mrf.mxu0 }
 0x3bd   : > { %v2546_v0 = vmul.f32 0.088388346, %v2475_v48 }
 0x3be   : > { %v3293_v19 = vpop.f32.mrf.mxu0 }
 0x3bf   : > { %2564 = vmax.xlane.f32.xlu0 %v2546_v0  ;;  %v2549_v57 = vmul.f32 0.088388346, %v3293_v19 }
 0x3c0   : > { %v2485_v32 = vpop.f32.mrf.mxu0 }
 0x3c1   : > { %v2548_v61 = vmul.f32 0.088388346, %v2485_v32 }
 0x3c2   : > { %v3296_v35 = vpop.f32.mrf.mxu0 }
 0x3c3   : > { %2566 = vmax.xlane.f32.xlu0 %v2547_v29  ;;  %2568 = vmax.xlane.f32.xlu1 %v2548_v61  ;;  %v2551_v33 = vmul.f32 0.088388346, %v3296_v35 }
 0x3c4   : > { %v2495_v15 = vpop.f32.mrf.mxu0 }
 0x3c5   : > { %v2550_v12 = vmul.f32 0.088388346, %v2495_v15 }
 0x3c6   : > { %v3299_v24 = vpop.f32.mrf.mxu0 }
 0x3c7   : > { %2570 = vmax.xlane.f32.xlu0 %v2549_v57  ;;  %2572 = vmax.xlane.f32.xlu1 %v2550_v12  ;;  %v5648_v50 = vmul.f32 0.088388346, %v3299_v24 }
 0x3c8   : > { %v2505_v59 = vpop.f32.mrf.mxu0 }
 0x3c9   : > { %v2552_v3 = vmul.f32 0.088388346, %v2505_v59 }
 0x3cb   : > { %v3302_v58 = vpop.f32.mrf.mxu0  ;;  %2574 = vmax.xlane.f32.xlu0 %v2551_v33  ;;  %2576 = vmax.xlane.f32.xlu1 %v2552_v3 }
 0x3cc   : > { %v5654_v5 = vmul.f32 0.088388346, %v3302_v58 }
 0x3cd   : > { %v2515_v27 = vpop.f32.mrf.mxu0 }
 0x3ce   : > { %v5650_v43 = vmul.f32 0.088388346, %v2515_v27 }
 0x3cf   : > { %v3305_v11 = vpop.f32.mrf.mxu0  ;;  %2578 = vmax.xlane.f32.xlu0 %v5648_v50 }
 0x3d0   : > { %2580 = vmax.xlane.f32.xlu1 %v5650_v43  ;;  %v5660_v22 = vmul.f32 0.088388346, %v3305_v11 }
 0x3d1   : > { %v2525_v17 = vpop.f32.mrf.mxu0 }
 0x3d2   : > { %v5656_v55 = vmul.f32 0.088388346, %v2525_v17 }
 0x3d3   : > { %v3308_v6 = vpop.f32.mrf.mxu0  ;;  %2582 = vmax.xlane.f32.xlu0 %v5654_v5 }
 0x3d4   : > { %2584 = vmax.xlane.f32.xlu1 %v5656_v55  ;;  %v5666_v13 = vmul.f32 0.088388346, %v3308_v6 }
 0x3d5   : > { %v2535_v39 = vpop.f32.mrf.mxu0 }
 0x3d6   : > { %v5662_v26 = vmul.f32 0.088388346, %v2535_v39 }
 0x3d7   : > { %2586 = vmax.xlane.f32.xlu0 %v5660_v22 }
 0x3d8   : > { %2588 = vmax.xlane.f32.xlu1 %v5662_v26 }
 0x3db   : > { %2590 = vmax.xlane.f32.xlu0 %v5666_v13 }
 0x442   : > { %v2563_v46 = vpop.xlane.xlu1 %2562 }
 0x443   : > { %v2593_v37 = vsub.f32 %v2545_v25, %v2563_v46 }
 0x444   : > { %v2561_v42 = vpop.xlane.xlu0 %2560 }
 0x445   : > { %v2610_v2 = vmul.f32 1.442695, %v2593_v37  ;;  %v2592_v21 = vsub.f32 %v2544_v7, %v2561_v42 }
 0x447   : > { %3556 = vpow2.f32 %v2610_v2  ;;  %v2608_v31 = vmul.f32 1.442695, %v2592_v21 }
 0x448   : > { %v2565_v44 = vpop.xlane.xlu0 %2564 }
 0x449   : > { %3558 = vpow2.f32 %v2608_v31  ;;  %v2594_v63 = vsub.f32 %v2546_v0, %v2565_v44 }
 0x44b   : > { %v2612_v62 = vmul.f32 1.442695, %v2594_v63 }
 0x44c   : > { %v2567_v8 = vpop.xlane.xlu0 %2566  ;;  %v2569_v54 = vpop.xlane.xlu1 %2568 }
 0x44d   : > { %3560 = vpow2.f32 %v2612_v62  ;;  %v2595_v23 = vsub.f32 %v2547_v29, %v2567_v8  ;;  %v2596_v20 = vsub.f32 %v2548_v61, %v2569_v54 }
 0x44f   : > { %v2614_v28 = vmul.f32 1.442695, %v2595_v23  ;;  %v2616_v56 = vmul.f32 1.442695, %v2596_v20 }
 0x450   : > { %v2571_v51 = vpop.xlane.xlu0 %2570  ;;  %v2573_v49 = vpop.xlane.xlu1 %2572 }
 0x451   : > { %3562 = vpow2.f32 %v2614_v28  ;;  %v2597_v16 = vsub.f32 %v2549_v57, %v2571_v51  ;;  %v2598_v10 = vsub.f32 %v2550_v12, %v2573_v49 }
 0x452   : > { %3564 = vpow2.f32 %v2616_v56 }
 0x453   : > { %v2618_v1 = vmul.f32 1.442695, %v2597_v16  ;;  %v2620_v30 = vmul.f32 1.442695, %v2598_v10 }
 0x454   : > { %v5669_v4 = vpop.eup %3556  ;;  %v2575_v34 = vpop.xlane.xlu0 %2574 }
 0x455   : > { %v2577_v47 = vpop.xlane.xlu1 %2576  ;;  %3566 = vpow2.f32 %v2618_v1  ;;  %v2599_v38 = vsub.f32 %v2551_v33, %v2575_v34  ;;  %2642 = vadd.xlane.f32.xlu0 %v5669_v4 }
 0x456   : > { %v2600_v53 = vsub.f32 %v2552_v3, %v2577_v47  ;;  %v5672_v18 = vpop.eup %3558  ;;  %3568 = vpow2.f32 %v2620_v30 }
 0x457   : > { %v2622_v45 = vmul.f32 1.442695, %v2599_v38  ;;  %2640 = vadd.xlane.f32.xlu1 %v5672_v18 }
 0x458   : > { %v2624_v14 = vmul.f32 1.442695, %v2600_v53  ;;  %v2579_v9 = vpop.xlane.xlu0 %2578 }
 0x459   : > { %v2581_v52 = vpop.xlane.xlu1 %2580  ;;  %3570 = vpow2.f32 %v2622_v45  ;;  %v2601_v36 = vsub.f32 %v5648_v50, %v2579_v9 }
 0x45a   : > { %v2602_v40 = vsub.f32 %v5650_v43, %v2581_v52  ;;  %v5677_v25 = vpop.eup %3560  ;;  %3572 = vpow2.f32 %v2624_v14 }
 0x45b   : > { %v2626_v60 = vmul.f32 1.442695, %v2601_v36  ;;  %2644 = vadd.xlane.f32.xlu1 %v5677_v25 }
 0x45c   : > { %v2628_v7 = vmul.f32 1.442695, %v2602_v40  ;;  %v2583_v41 = vpop.xlane.xlu0 %2582 }
 0x45d   : > { %v2585_v48 = vpop.xlane.xlu1 %2584  ;;  %3574 = vpow2.f32 %v2626_v60  ;;  %v2603_v0 = vsub.f32 %v5654_v5, %v2583_v41 }
 0x45e   : > { %v2604_v19 = vsub.f32 %v5656_v55, %v2585_v48  ;;  %v5682_v32 = vpop.eup %3562  ;;  %3576 = vpow2.f32 %v2628_v7 }
 0x45f   : > { %v5684_v29 = vpop.eup %3564  ;;  %v2630_v61 = vmul.f32 1.442695, %v2603_v0  ;;  %2646 = vadd.xlane.f32.xlu0 %v5682_v32 }
 0x460   : > { %v2632_v35 = vmul.f32 1.442695, %v2604_v19  ;;  %2648 = vadd.xlane.f32.xlu1 %v5684_v29  ;;  %v2587_v15 = vpop.xlane.xlu0 %2586 }
 0x461   : > { %v2589_v57 = vpop.xlane.xlu1 %2588  ;;  %3578 = vpow2.f32 %v2630_v61  ;;  %v2605_v12 = vsub.f32 %v5660_v22, %v2587_v15 }
 0x462   : > { %v2606_v24 = vsub.f32 %v5662_v26, %v2589_v57  ;;  %v5690_v59 = vpop.eup %3566  ;;  %3580 = vpow2.f32 %v2632_v35 }
 0x463   : > { %v5692_v33 = vpop.eup %3568  ;;  %v2634_v3 = vmul.f32 1.442695, %v2605_v12  ;;  %2650 = vadd.xlane.f32.xlu0 %v5690_v59 }
 0x464   : > { %v2636_v58 = vmul.f32 1.442695, %v2606_v24  ;;  %2652 = vadd.xlane.f32.xlu1 %v5692_v33  ;;  %v2591_v27 = vpop.xlane.xlu0 %2590 }
 0x465   : > { %3582 = vpow2.f32 %v2634_v3  ;;  %v2607_v50 = vsub.f32 %v5666_v13, %v2591_v27 }
 0x466   : > { %v5697_v43 = vpop.eup %3570  ;;  %3584 = vpow2.f32 %v2636_v58 }
 0x467   : > { %v5699_v11 = vpop.eup %3572  ;;  %v2638_v17 = vmul.f32 1.442695, %v2607_v50  ;;  %2654 = vadd.xlane.f32.xlu0 %v5697_v43 }
 0x468   : > { %2656 = vadd.xlane.f32.xlu1 %v5699_v11 }
 0x469   : > { %3586 = vpow2.f32 %v2638_v17 }
 0x46a   : > { %v5703_v5 = vpop.eup %3574 }
 0x46b   : > { %v5705_v55 = vpop.eup %3576  ;;  %2658 = vadd.xlane.f32.xlu0 %v5703_v5 }
 0x46c   : > { %2660 = vadd.xlane.f32.xlu1 %v5705_v55 }
 0x46e   : > { %v5709_v6 = vpop.eup %3578 }
 0x46f   : > { %v5711_v39 = vpop.eup %3580  ;;  %2662 = vadd.xlane.f32.xlu0 %v5709_v6 }
 0x470   : > { %2664 = vadd.xlane.f32.xlu1 %v5711_v39 }
 0x472   : > { %v5715_v22 = vpop.eup %3582 }
 0x473   : > { %v5717_v26 = vpop.eup %3584  ;;  %2666 = vadd.xlane.f32.xlu0 %v5715_v22 }
 0x474   : > { %2668 = vadd.xlane.f32.xlu1 %v5717_v26 }
 0x476   : > { %v5721_v13 = vpop.eup %3586 }
 0x477   : > { %2670 = vadd.xlane.f32.xlu0 %v5721_v13 }
 0x4de   : > { %v2643_v46 = vpop.xlane.xlu0 %2642 }
 0x4df   : > { %3588 = vrcp.f32 %v2643_v46 }
 0x4e0   : > { %v2641_v37 = vpop.xlane.xlu1 %2640 }
 0x4e1   : > { %3590 = vrcp.f32 %v2641_v37 }
 0x4e4   : > { %v2645_v42 = vpop.xlane.xlu1 %2644 }
 0x4e5   : > { %3592 = vrcp.f32 %v2645_v42 }
 0x4e8   : > { %v2647_v2 = vpop.xlane.xlu0 %2646 }
 0x4e9   : > { %3594 = vrcp.f32 %v2647_v2  ;;  %v2649_v21 = vpop.xlane.xlu1 %2648 }
 0x4ea   : > { %3596 = vrcp.f32 %v2649_v21 }
 0x4ec   : > { %v2651_v31 = vpop.xlane.xlu0 %2650  ;;  %v3589_v44 = vpop.eup %3588 }
 0x4ed   : > { %3598 = vrcp.f32 %v2651_v31  ;;  %v2653_v63 = vpop.xlane.xlu1 %2652  ;;  %v2675_v23 = vmul.f32 %v3589_v44, %v5669_v4 }
 0x4ee   : > { %v3591_v62 = vpop.eup %3590  ;;  %3600 = vrcp.f32 %v2653_v63 }
 0x4ef   : > { %v2673_v8 = vmul.f32 %v3591_v62, %v5672_v18 }
 0x4f0   : > { %v2655_v54 = vpop.xlane.xlu0 %2654 }
 0x4f1   : > { %3602 = vrcp.f32 %v2655_v54  ;;  %v2657_v20 = vpop.xlane.xlu1 %2656  ;;  %3341 = vmatprep.mubr.f32.mxu1 %v2673_v8 }
 0x4f2   : > { %v3593_v28 = vpop.eup %3592  ;;  %3604 = vrcp.f32 %v2657_v20  ;;  %3342 = vmatmul.mubr.f32.vlgmr.msra.gmra.mxu1 %v2675_v23 }
 0x4f3   : > { %v2677_v56 = vmul.f32 %v3593_v28, %v5677_v25 }
 0x4f4   : > { %v2659_v51 = vpop.xlane.xlu0 %2658 }
 0x4f5   : > { %3606 = vrcp.f32 %v2659_v51  ;;  %v2661_v49 = vpop.xlane.xlu1 %2660  ;;  %3344 = vmatprep.mubr.f32.mxu1 %v2677_v56 }
 0x4f6   : > { %v3595_v16 = vpop.eup %3594  ;;  %3608 = vrcp.f32 %v2661_v49 }
 0x4f7   : > { %v3597_v10 = vpop.eup %3596  ;;  %v2679_v1 = vmul.f32 %v3595_v16, %v5682_v32 }
 0x4f8   : > { %v2663_v30 = vpop.xlane.xlu0 %2662  ;;  %v2681_v4 = vmul.f32 %v3597_v10, %v5684_v29 }
 0x4f9   : > { %3610 = vrcp.f32 %v2663_v30  ;;  %v2665_v34 = vpop.xlane.xlu1 %2664  ;;  %3345 = vmatmul.mubr.f32.gmra.mxu1 %v2679_v1 }
 0x4fa   : > { %v3599_v47 = vpop.eup %3598  ;;  %3612 = vrcp.f32 %v2665_v34  ;;  %3347 = vmatprep.mubr.f32.mxu1 %v2681_v4 }
 0x4fb   : > { %v3601_v38 = vpop.eup %3600  ;;  %v2683_v53 = vmul.f32 %v3599_v47, %v5690_v59 }
 0x4fc   : > { %v2667_v18 = vpop.xlane.xlu0 %2666  ;;  %v2685_v45 = vmul.f32 %v3601_v38, %v5692_v33 }
 0x4fd   : > { %3614 = vrcp.f32 %v2667_v18  ;;  %v2669_v14 = vpop.xlane.xlu1 %2668  ;;  %3348 = vmatmul.mubr.f32.gmra.mxu1 %v2683_v53 }
 0x4fe   : > { %v3603_v9 = vpop.eup %3602  ;;  %3616 = vrcp.f32 %v2669_v14  ;;  %3350 = vmatprep.mubr.f32.mxu1 %v2685_v45 }
 0x4ff   : > { %v3605_v52 = vpop.eup %3604  ;;  %v2687_v36 = vmul.f32 %v3603_v9, %v5697_v43 }
 0x500   : > { %v2671_v40 = vpop.xlane.xlu0 %2670  ;;  %v2689_v25 = vmul.f32 %v3605_v52, %v5699_v11 }
 0x501   : > { %3618 = vrcp.f32 %v2671_v40  ;;  %3351 = vmatmul.mubr.f32.gmra.mxu1 %v2687_v36 }
 0x502   : > { %v3607_v60 = vpop.eup %3606  ;;  %3353 = vmatprep.mubr.f32.mxu1 %v2689_v25 }
 0x503   : > { %v3609_v7 = vpop.eup %3608  ;;  %v2691_v41 = vmul.f32 %v3607_v60, %v5703_v5 }
 0x504   : > { %v2693_v48 = vmul.f32 %v3609_v7, %v5705_v55 }
 0x505   : > { %3354 = vmatmul.mubr.f32.gmra.mxu1 %v2691_v41 }
 0x506   : > { %v3611_v0 = vpop.eup %3610  ;;  %3356 = vmatprep.mubr.f32.mxu1 %v2693_v48 }
 0x507   : > { %v3613_v19 = vpop.eup %3612  ;;  %v2695_v32 = vmul.f32 %v3611_v0, %v5709_v6 }
 0x508   : > { %v2697_v29 = vmul.f32 %v3613_v19, %v5711_v39 }
 0x509   : > { %3357 = vmatmul.mubr.f32.gmra.mxu1 %v2695_v32 }
 0x50a   : > { %v3615_v61 = vpop.eup %3614  ;;  %3359 = vmatprep.mubr.f32.mxu1 %v2697_v29 }
 0x50b   : > { %v3617_v35 = vpop.eup %3616  ;;  %v2699_v15 = vmul.f32 %v3615_v61, %v5715_v22 }
 0x50c   : > { %v2701_v57 = vmul.f32 %v3617_v35, %v5717_v26 }
 0x50d   : > { %3360 = vmatmul.mubr.f32.gmra.mxu1 %v2699_v15 }
 0x50e   : > { %v3619_v12 = vpop.eup %3618  ;;  %3362 = vmatprep.mubr.f32.mxu1 %v2701_v57 }
 0x50f   : > { %v2703_v24 = vmul.f32 %v3619_v12, %v5721_v13 }
 0x511   : > { %3363 = vmatmul.mubr.f32.gmra.mxu1 %v2703_v24 }
 0x5b2   : > { %v3343_v59 = vpop.f32.mrf.mxu1 }
 0x5b3   : > { %2850 = vst [vmem:[%s5743_s11 + $0x8] sm:$0xff] %v3343_v59 }
 0x5b4   : > { %v2770_v33 = vpop.f32.mrf.mxu1 }
 0x5b5   : > { %2849 = vst [vmem:[%s5743_s11] sm:$0xff] %v2770_v33 }
 0x5b9   : > { %v3346_v3 = vpop.f32.mrf.mxu1 }
 0x5ba   : > { %2852 = vst [vmem:[%s5743_s11 + $0x18] sm:$0xff] %v3346_v3 }
 0x5bb   : > { %v2780_v58 = vpop.f32.mrf.mxu1 }
 0x5bc   : > { %2851 = vst [vmem:[%s5743_s11 + $0x10] sm:$0xff] %v2780_v58 }
 0x5bd   : > { %v3349_v27 = vpop.f32.mrf.mxu1 }
 0x5be   : > { %2854 = vst [vmem:[%s5743_s11 + $0x28] sm:$0xff] %v3349_v27 }
 0x5bf   : > { %v2790_v50 = vpop.f32.mrf.mxu1 }
 0x5c0   : > { %2853 = vst [vmem:[%s5743_s11 + $0x20] sm:$0xff] %v2790_v50 }
 0x5c1   : > { %v3352_v43 = vpop.f32.mrf.mxu1 }
 0x5c2   : > { %2856 = vst [vmem:[%s5743_s11 + $0x38] sm:$0xff] %v3352_v43 }
 0x5c3   : > { %v2800_v11 = vpop.f32.mrf.mxu1 }
 0x5c4   : > { %2855 = vst [vmem:[%s5743_s11 + $0x30] sm:$0xff] %v2800_v11 }
 0x5c5   : > { %v3355_v17 = vpop.f32.mrf.mxu1 }
 0x5c6   : > { %2858 = vst [vmem:[%s5743_s11 + $0x48] sm:$0xff] %v3355_v17 }
 0x5c7   : > { %v2810_v5 = vpop.f32.mrf.mxu1 }
 0x5c8   : > { %2857 = vst [vmem:[%s5743_s11 + $0x40] sm:$0xff] %v2810_v5 }
 0x5c9   : > { %v3358_v55 = vpop.f32.mrf.mxu1 }
 0x5ca   : > { %2860 = vst [vmem:[%s5743_s11 + $0x58] sm:$0xff] %v3358_v55 }
 0x5cb   : > { %v2820_v6 = vpop.f32.mrf.mxu1 }
 0x5cc   : > { %2859 = vst [vmem:[%s5743_s11 + $0x50] sm:$0xff] %v2820_v6 }
 0x5cd   : > { %v3361_v39 = vpop.f32.mrf.mxu1 }
 0x5ce   : > { %2862 = vst [vmem:[%s5743_s11 + $0x68] sm:$0xff] %v3361_v39 }
 0x5cf   : > { %v2830_v22 = vpop.f32.mrf.mxu1 }
 0x5d0   : > { %2861 = vst [vmem:[%s5743_s11 + $0x60] sm:$0xff] %v2830_v22 }
 0x5d1   : > { %v3364_v26 = vpop.f32.mrf.mxu1 }
 0x5d2   : > { %2864 = vst [vmem:[%s5743_s11 + $0x78] sm:$0xff] %v3364_v26 }
 0x5d3   : > { %v2840_v13 = vpop.f32.mrf.mxu1 }
 0x5d4   : > { %2863 = vst [vmem:[%s5743_s11 + $0x70] sm:$0xff] %v2840_v13 }
 0x5d5   : > { %3661 = shalt.err (!%p3658_p0)
}
 0x5d6   : > { %s3662_s17 = scalar_lea.hbm %s5764_s16, 2048  ;;  %s3666_s8 = scalar_lea.hbm %s5817_s5, 4096 }
 0x5d7   : > { %p3663_p1 = scmp.ne.s32.totalorder %s5764_s16, %s3662_s17  ;;  %p3667_p4 = scmp.lt.s32.totalorder %s5764_s16, %s5817_s5 }
 0x5d8   : > { %p3668_p7 = scmp.lt.s32.totalorder %s3666_s8, %s3662_s17 }
 0x5d9   : > { %p3664_p2 = pnand %p3663_p1, %p3795_p5 }
 0x5da   : > { %p3669_p6 = por %p3668_p7, %p3667_p4 }
 0x5db   : > { %p3665_p3 = pneg %p3664_p2 }
 0x5dd   : > { %p3670_p8 = pnand %p3669_p6, %p3665_p3 }
 0x5df   : > { %3673 = shalt.err (!%p3670_p8)
}
 0x5e0   : > { %s3725_s11 = smov 128   ;;  %s3726_s12 = smov 8  }
 0x5e1   : > { %3433 = dma.vmem_to_hbm [thread:$0]  (%p3795_p5), %s5766_s13, 2048, %s5764_s16, %s5772_s23, %s3725_s11, %s3725_s11, %s3726_s12  }
 0x5e2 PF: > { %p3445_p9 = scmp.ge.s32.totalorder %s3712_s21, 2  ;;  %s2894_s14 = sand.u32 1, %s3700_s18  }
 0x5e3   : > { %p6170_p10 = scmp.ne.s32.totalorder %s5939_s29, 0  ;;  %s2895_s15 = scalar_lea.sflag [#allocation4], %s2894_s14 }
 0x5e5   : > { %p3440_p11 = pnand %p3445_p9, %p6170_p10 }
 0x5e7   : > { %p3441_p12 = pneg %p3440_p11 }
 0x5e9   : > { %3695 = dma.done.wait (%p3441_p12), %s2895_s15, 2048  }
 0x5ea   : > { %3697 = vsyncadd (%p3441_p12), %s2895_s15, 4294965248  ;;  %p16_p13 = scmp.ge.s32.totalorder %s3782_s24, 4   ;;  %s6171_s18 = smov %s3704_s19 }
 0x5eb   : > { %s6172_s19 = smov %s3708_s20  ;;  %s6173_s20 = smov %s3793_s27 }
 0x5ec   : > { %s6174_s21 = smov %s3782_s24  ;;  %18 = sbr.rel (!%p16_p13) target bundleno = 4 (0x4), region = 80 }
 0x5f1   :  { %2900 = vsyncpa [#allocation3], 1 }
 0x5f2   :  { %2902 = vsyncpa [#allocation3 + $0x1], 1 }
 0x5f3   :  { %2903 = vsyncpa [#allocation4], 1 }
 0x5f4   :  { %2905 = vsyncpa [#allocation4 + $0x1], 1 }

</bundles_post_ra>
